<compile_context>
chip_gen: v5e
topology: v5e:2x2
jax: 0.10.0
libtpu: 0.0.40
codegen_flags: <defaults>
</compile_context>

<pallas_src>
import functools
import math

import jax
import jax.numpy as jnp
from jax import lax
from jax.experimental import pallas as pl
from jax.experimental.pallas import tpu as pltpu

SQ_K = 3            # InceptionDWConv2d square_kernel_size
BAND_K = 11         # InceptionDWConv2d band_kernel_size
BRANCH_RATIO = 0.125
BN_EPS = 1e-5
PAD = BAND_K // 2
_VMEM_LIMIT = 32 * 1024 * 1024   # explicit scoped-VMEM budget, safe on v5e/v6e/v7x


def _erf_approx(x):
    # Abramowitz & Stegun 7.1.26 (max abs err ~1.5e-7); the divide uses the
    # approximate EUP reciprocal so the whole rational part stays off the VALU.
    a1, a2, a3, a4, a5 = 0.254829592, -0.284496736, 1.421413741, -1.453152027, 1.061405429
    p = 0.3275911
    sgn = jnp.where(x >= 0, 1.0, -1.0)
    ax = jnp.abs(x)
    t = pl.reciprocal(1.0 + p * ax, approx=True)      # EUP, not a VALU divide
    poly = ((((a5 * t + a4) * t + a3) * t + a2) * t + a1) * t
    return sgn * (1.0 - poly * jnp.exp(-ax * ax))     # exp also rides the EUP


def _gelu_exact(x):
    # matches torch.nn.GELU() (exact erf form)
    return 0.5 * x * (1.0 + _erf_approx(x * 0.7071067811865476))


def _branch_taps():
    """Structurally non-zero (ky, kx) of the folded (3x3 | 1x11 | 11x1) branch
    stencil, plus the same taps grouped by kx (one lane shift per distinct kx)."""
    ctr = PAD
    off = ctr - SQ_K // 2
    taps = sorted(set(
        [(off + i, off + j) for i in range(SQ_K) for j in range(SQ_K)]
        + [(ctr, k) for k in range(BAND_K)]
        + [(k, ctr) for k in range(BAND_K)]))
    groups = {}
    for t, (ky, kx) in enumerate(taps):
        groups.setdefault(kx, []).append((ky, t))
    kx_groups = tuple((kx, tuple(sorted(v))) for kx, v in sorted(groups.items()))
    return tuple(taps), kx_groups


# --------------------------------------------------------------------------- #
# Stage A: depthwise Inception token mixer on the conv-branch channels only,
# lane-dense (H, W*3gc) layout.  One grid step = one image.  Taps grouped by
# kx: 11 lane-shifted slab loads; ky taps are sublane slices of the slab.
# --------------------------------------------------------------------------- #
def _mixer_kernel(xb_ref, wv_ref, out_ref, *, H, W, GC, kx_groups):
    f32 = jnp.float32
    WGC = W * GC
    n_acc = 4
    accs = [None] * n_acc
    n = 0
    for kx, kys in kx_groups:
        ky0 = kys[0][0]
        nrows = kys[-1][0] - ky0 + H
        # one lane-shifted window load per distinct kx (11 total, not 25)
        slab = xb_ref[0, ky0:ky0 + nrows, kx * GC:kx * GC + WGC].astype(f32)
        for ky, t in kys:
            w_row = wv_ref[t:t + 1, :].astype(f32)            # (1, W*GC)
            term = slab[ky - ky0:ky - ky0 + H, :] * w_row     # sublane slice + FMA
            slot = n % n_acc
            accs[slot] = term if accs[slot] is None else accs[slot] + term
            n += 1
    acc = accs[0]
    for part in accs[1:]:
        if part is not None:
            acc = acc + part
    # bf16 store: exactly the operand precision Stage B feeds to the MXU, and
    # it halves the intermediate HBM traffic.
    out_ref[0] = acc.astype(out_ref.dtype)


# --------------------------------------------------------------------------- #
# Stage B: ConvMlp (1x1 -> GELU -> 1x1) + layer scale + residual.
# BatchNorm(eval) and the depthwise bias are pre-folded into fc1, which is
# split into an identity-path matmul (raw x, branch rows zeroed) and a
# conv-path matmul (Stage A output) -- no channel concat needed.
# --------------------------------------------------------------------------- #
def _mlp_kernel(conv_ref, x_ref, w1x_ref, w1b_ref, b1_ref, w2_ref, g_ref,
                b2g_ref, out_ref):
    f32 = jnp.float32
    bf16 = jnp.bfloat16
    xv = x_ref[...]                                            # (TM, C)
    h = (jnp.dot(xv.astype(bf16), w1x_ref[...], preferred_element_type=f32)
         + jnp.dot(conv_ref[...], w1b_ref[...], preferred_element_type=f32)
         + b1_ref[...])
    h = _gelu_exact(h)                                         # (TM, hidden) f32
    o = jnp.dot(h.astype(bf16), w2_ref[...], preferred_element_type=f32)
    res = xv.astype(f32) + g_ref[...] * o + b2g_ref[...]
    out_ref[...] = res.astype(out_ref.dtype)


# --------------------------------------------------------------------------- #
# Wrapper (HGLM.forward): (B, N, C), H, W  ->  (B, N, C)
# --------------------------------------------------------------------------- #
def hglm_forward(x_tokens, H, W, params):
    B, N, C = x_tokens.shape
    assert N == H * W
    f32, bf16 = jnp.float32, jnp.bfloat16

    gc = int(C * BRANCH_RATIO)
    c_id = C - 3 * gc                 # identity channels [0, c_id); branches after
    GC = 3 * gc                       # conv-branch channels processed by Stage A
    taps, kx_groups = _branch_taps()
    Hp, Wp = H + 2 * PAD, W + 2 * PAD
    WGC = W * GC
    hidden = params['fc1_w'].shape[1]

    # ---- wrapper-side preprocessing (cheap; fuses under jit) ----------------
    # Branch channels only, bf16, zero halo, lane-dense (Hp, Wp*GC).
    x_img = x_tokens.reshape(B, H, W, C)
    xb = x_img[..., c_id:].astype(bf16)
    xb_pad = jnp.pad(xb, ((0, 0), (PAD, PAD), (PAD, PAD), (0, 0)))
    xb_pad = xb_pad.reshape(B, Hp, Wp * GC)

    # per-tap per-lane weights for the branch channels, tiled over W (bf16)
    Wf_br = params['dw_w_folded'].astype(f32)[:, :, c_id:]           # (11,11,GC)
    wv = jnp.stack([jnp.tile(Wf_br[ky, kx], W) for (ky, kx) in taps]).astype(bf16)

    dwb = params['dw_b_folded'].astype(f32)[0]       # (C,)
    s = params['bn_scale'].astype(f32)[0]
    bsh = params['bn_shift'].astype(f32)[0]
    fc1_w = params['fc1_w'].astype(f32)              # (C, hidden)
    fc1_b = params['fc1_b'].astype(f32)[0]
    fc2_w = params['fc2_w'].astype(f32)              # (hidden, C)
    fc2_b = params['fc2_b'].astype(f32)[0]
    gamma = params['gamma'].astype(f32)[0]

    # fold BatchNorm(eval) + depthwise bias into fc1 (exact preprocessing)
    w1_eff = s[:, None] * fc1_w                                       # (C, hidden)
    w1_idn = w1_eff.at[c_id:].set(0.0).astype(bf16)   # raw-x path, branch rows 0
    w1_brn = w1_eff[c_id:].astype(bf16)               # conv-out path (GC, hidden)
    b1_eff = (jnp.dot(dwb * s + bsh, fc1_w,
                      precision=lax.Precision.HIGHEST) + fc1_b).reshape(1, hidden)
    w2_eff = fc2_w.astype(bf16)
    g_row = gamma.reshape(1, C)
    b2g_row = (gamma * fc2_b).reshape(1, C)

    def full_spec(a):
        return pl.BlockSpec(a.shape, lambda *_, nd=a.ndim: (0,) * nd)

    # ---- Stage A: depthwise Inception token mixer (branch channels) ---------
    mixer = functools.partial(_mixer_kernel, H=H, W=W, GC=GC, kx_groups=kx_groups)
    conv_out = pl.pallas_call(
        mixer,
        out_shape=jax.ShapeDtypeStruct((B, H, WGC), bf16),
        grid_spec=pltpu.PrefetchScalarGridSpec(
            num_scalar_prefetch=0,
            grid=(B,),
            in_specs=[pl.BlockSpec((1, Hp, Wp * GC), lambda b: (b, 0, 0)),
                      full_spec(wv)],
            out_specs=pl.BlockSpec((1, H, WGC), lambda b: (b, 0, 0)),
        ),
        compiler_params=pltpu.CompilerParams(
            dimension_semantics=("parallel",),
            vmem_limit_bytes=_VMEM_LIMIT),
    )(xb_pad, wv)

    # ---- Stage B: ConvMlp + layer scale + residual --------------------------
    conv2 = conv_out.reshape(B * N, GC)    # free reshape: row-major identical
    x2 = x_tokens.reshape(B * N, C)
    TM = N
    while TM > 512 and TM % 2 == 0:        # chunk tokens at production sizes
        TM //= 2
    assert TM % 8 == 0 and (B * N) % TM == 0
    consts = [w1_idn, w1_brn, b1_eff, w2_eff, g_row, b2g_row]

    out2 = pl.pallas_call(
        _mlp_kernel,
        out_shape=jax.ShapeDtypeStruct((B * N, C), x_tokens.dtype),
        grid_spec=pltpu.PrefetchScalarGridSpec(
            num_scalar_prefetch=0,
            grid=(B * N // TM,),
            in_specs=[pl.BlockSpec((TM, GC), lambda i: (i, 0)),
                      pl.BlockSpec((TM, C), lambda i: (i, 0))]
                     + [full_spec(a) for a in consts],
            out_specs=pl.BlockSpec((TM, C), lambda i: (i, 0)),
        ),
        compiler_params=pltpu.CompilerParams(
            dimension_semantics=("parallel",),
            vmem_limit_bytes=_VMEM_LIMIT),
    )(conv2, x2, *consts)

    # HGLM: out = mlp(x).flatten(2).transpose(1, 2)  -> (B, N, C)
    return out2.reshape(B, N, C)


# --------------------------------------------------------------------------- #
# Deterministic parameter init (mirrors HGLM._init_weights / module defaults).
# Biases and BN running stats get small non-zero values (rather than torch's
# zero init) purely to exercise every folded term during validation.
# --------------------------------------------------------------------------- #
def init_hglm_params(key, dim):
    gc = int(dim * BRANCH_RATIO)            # channels per dw branch
    c_id = dim - 3 * gc                     # identity channels
    hidden = int(dim * 4)                   # ConvMlp hidden (mlp_ratio = 4)
    ks = jax.random.split(key, 12)

    # Conv2d init: N(0, sqrt(2 / fan_out)), fan_out = kh*kw*out_ch / groups
    w_hw = jax.random.normal(ks[0], (SQ_K, SQ_K, gc), jnp.float32) * math.sqrt(2.0 / (SQ_K * SQ_K))
    w_w = jax.random.normal(ks[1], (BAND_K, gc), jnp.float32) * math.sqrt(2.0 / BAND_K)
    w_h = jax.random.normal(ks[2], (BAND_K, gc), jnp.float32) * math.sqrt(2.0 / BAND_K)
    b_hw = 0.02 * jax.random.normal(ks[3], (1, gc), jnp.float32)
    b_w = 0.02 * jax.random.normal(ks[4], (1, gc), jnp.float32)
    b_h = 0.02 * jax.random.normal(ks[5], (1, gc), jnp.float32)

    fc1_w = jax.random.normal(ks[6], (dim, hidden), jnp.float32) * math.sqrt(2.0 / hidden)
    fc1_b = 0.02 * jax.random.normal(ks[7], (1, hidden), jnp.float32)
    fc2_w = jax.random.normal(ks[8], (hidden, dim), jnp.float32) * math.sqrt(2.0 / dim)
    fc2_b = 0.02 * jax.random.normal(ks[9], (1, dim), jnp.float32)

    # BatchNorm2d (eval): weight=1, bias=0, non-trivial running stats
    run_mean = 0.1 * jax.random.normal(ks[10], (dim,), jnp.float32)
    run_var = 1.0 + 0.1 * jnp.abs(jax.random.normal(ks[11], (dim,), jnp.float32))
    inv_std = 1.0 / jnp.sqrt(run_var + BN_EPS)
    bn_scale = inv_std.reshape(1, dim)
    bn_shift = (-run_mean * inv_std).reshape(1, dim)

    gamma = jnp.ones((1, dim), jnp.float32)          # layer scale

    # fold InceptionDWConv2d (identity | 3x3 dw | 1x11 dw | 11x1 dw) into one
    # per-channel (BAND_K x BAND_K) stencil -- numerically identical.
    ctr = BAND_K // 2
    off = ctr - SQ_K // 2
    Wf = jnp.zeros((BAND_K, BAND_K, dim), jnp.float32)
    Wf = Wf.at[ctr, ctr, :c_id].set(1.0)
    Wf = Wf.at[off:off + SQ_K, off:off + SQ_K, c_id:c_id + gc].set(w_hw)
    Wf = Wf.at[ctr, :, c_id + gc:c_id + 2 * gc].set(w_w)
    Wf = Wf.at[:, ctr, c_id + 2 * gc:].set(w_h)
    bf = jnp.zeros((1, dim), jnp.float32)
    bf = bf.at[:, c_id:c_id + gc].set(b_hw)
    bf = bf.at[:, c_id + gc:c_id + 2 * gc].set(b_w)
    bf = bf.at[:, c_id + 2 * gc:].set(b_h)

    return dict(gc=gc, c_id=c_id,
                w_hw=w_hw, w_w=w_w, w_h=w_h, b_hw=b_hw, b_w=b_w, b_h=b_h,
                dw_w_folded=Wf, dw_b_folded=bf,
                bn_scale=bn_scale, bn_shift=bn_shift,
                fc1_w=fc1_w, fc1_b=fc1_b, fc2_w=fc2_w, fc2_b=fc2_b,
                gamma=gamma)


# --------------------------------------------------------------------------- #
# Pure-JAX reference (faithful split-branch, exact f32) used for validation.
# --------------------------------------------------------------------------- #
def hglm_reference(x_tokens, H, W, p):
    B, N, C = x_tokens.shape
    gc, c_id = p['gc'], p['c_id']
    x = x_tokens.reshape(B, H, W, C).astype(jnp.float32)
    x_id = x[..., :c_id]
    x_hw = x[..., c_id:c_id + gc]
    x_w = x[..., c_id + gc:c_id + 2 * gc]
    x_h = x[..., c_id + 2 * gc:]

    def dw(inp, w_hwio, ph, pw):
        return lax.conv_general_dilated(
            inp, w_hwio, (1, 1), padding=((ph, ph), (pw, pw)),
            dimension_numbers=('NHWC', 'HWIO', 'NHWC'),
            feature_group_count=gc)

    y_hw = dw(x_hw, p['w_hw'].reshape(SQ_K, SQ_K, 1, gc), SQ_K // 2, SQ_K // 2) + p['b_hw'][0]
    y_w = dw(x_w, p['w_w'].reshape(1, BAND_K, 1, gc), 0, BAND_K // 2) + p['b_w'][0]
    y_h = dw(x_h, p['w_h'].reshape(BAND_K, 1, 1, gc), BAND_K // 2, 0) + p['b_h'][0]
    mixed = jnp.concatenate([x_id, y_hw, y_w, y_h], axis=-1)

    y = mixed * p['bn_scale'][0] + p['bn_shift'][0]
    h = jnp.einsum('bhwc,cd->bhwd', y, p['fc1_w'],
                   precision=lax.Precision.HIGHEST) + p['fc1_b'][0]
    h = jax.nn.gelu(h, approximate=False)
    o = jnp.einsum('bhwd,dc->bhwc', h, p['fc2_w'],
                   precision=lax.Precision.HIGHEST) + p['fc2_b'][0]
    out = x + p['gamma'][0] * o
    return out.reshape(B, N, C)


if __name__ == "__main__":
    B, H, W, dim = 2, 16, 16, 32
    N = H * W

    key = jax.random.PRNGKey(0)
    k_par, k_x = jax.random.split(key)
    params = init_hglm_params(k_par, dim)
    x_tokens = jax.random.normal(k_x, (B, N, dim), jnp.float32)

    fwd = jax.jit(functools.partial(hglm_forward, H=H, W=W))
    out = jax.block_until_ready(fwd(x_tokens, params=params))
    assert out.shape == (B, N, dim), out.shape

    ref = hglm_reference(x_tokens, H, W, params)
    max_err = float(jnp.max(jnp.abs(out - ref)))
    # bf16 MXU operands (vs the f32/HIGHEST reference) set the tolerance.
    if not bool(jnp.allclose(out, ref, atol=5e-2, rtol=5e-2)):
        raise AssertionError(f"Pallas kernel mismatch vs reference (max abs err {max_err:.3e})")

    print("KERNEL_OK")
</pallas_src>

<mosaic_0001>
module attributes {stable_mosaic.version = 11 : i64} {
  func.func @_mixer_kernel(%arg0: i32, %arg1: memref<1x26x312xbf16, #tpu.memory_space<vmem>>, %arg2: memref<25x192xbf16, #tpu.memory_space<vmem>>, %arg3: memref<1x16x192xbf16, #tpu.memory_space<vmem>>) attributes {dimension_semantics = [#tpu.dimension_semantics<parallel>], iteration_bounds = array<i64: 2>, scalar_prefetch = 0 : i64, scratch_operands = 0 : i64, tpu.core_type = #tpu.core_type<tc>, window_params = [{transform_indices = @transform_0, window_bounds = array<i64: 1, 26, 312>}, {pipeline_mode = #tpu.pipeline_mode<synchronous>, transform_indices = @transform_1, window_bounds = array<i64: 25, 192>}, {transform_indices = @transform_2, window_bounds = array<i64: 1, 16, 192>}]} {
    %c0 = arith.constant 0 : index
    %c5 = arith.constant 5 : index
    %c0_0 = arith.constant 0 : index
    %0 = vector.load %arg1[%c0, %c5, %c0_0] : memref<1x26x312xbf16, #tpu.memory_space<vmem>>, vector<1x16x192xbf16>
    %1 = vector.shape_cast %0 : vector<1x16x192xbf16> to vector<16x192xbf16>
    %2 = arith.extf %1 : vector<16x192xbf16> to vector<16x192xf32>
    %c7 = arith.constant 7 : index
    %c0_1 = arith.constant 0 : index
    %3 = vector.load %arg2[%c7, %c0_1] : memref<25x192xbf16, #tpu.memory_space<vmem>>, vector<1x192xbf16>
    %4 = arith.extf %3 : vector<1x192xbf16> to vector<1x192xf32>
    %5 = vector.broadcast %4 : vector<1x192xf32> to vector<16x192xf32>
    %6 = arith.mulf %2, %5 : vector<16x192xf32>
    %c0_2 = arith.constant 0 : index
    %c5_3 = arith.constant 5 : index
    %c12 = arith.constant 12 : index
    %7 = vector.load %arg1[%c0_2, %c5_3, %c12] : memref<1x26x312xbf16, #tpu.memory_space<vmem>>, vector<1x16x192xbf16>
    %8 = vector.shape_cast %7 : vector<1x16x192xbf16> to vector<16x192xbf16>
    %9 = arith.extf %8 : vector<16x192xbf16> to vector<16x192xf32>
    %c8 = arith.constant 8 : index
    %c0_4 = arith.constant 0 : index
    %10 = vector.load %arg2[%c8, %c0_4] : memref<25x192xbf16, #tpu.memory_space<vmem>>, vector<1x192xbf16>
    %11 = arith.extf %10 : vector<1x192xbf16> to vector<1x192xf32>
    %12 = vector.broadcast %11 : vector<1x192xf32> to vector<16x192xf32>
    %13 = arith.mulf %9, %12 : vector<16x192xf32>
    %c0_5 = arith.constant 0 : index
    %c5_6 = arith.constant 5 : index
    %c24 = arith.constant 24 : index
    %14 = vector.load %arg1[%c0_5, %c5_6, %c24] : memref<1x26x312xbf16, #tpu.memory_space<vmem>>, vector<1x16x192xbf16>
    %15 = vector.shape_cast %14 : vector<1x16x192xbf16> to vector<16x192xbf16>
    %16 = arith.extf %15 : vector<16x192xbf16> to vector<16x192xf32>
    %c9 = arith.constant 9 : index
    %c0_7 = arith.constant 0 : index
    %17 = vector.load %arg2[%c9, %c0_7] : memref<25x192xbf16, #tpu.memory_space<vmem>>, vector<1x192xbf16>
    %18 = arith.extf %17 : vector<1x192xbf16> to vector<1x192xf32>
    %19 = vector.broadcast %18 : vector<1x192xf32> to vector<16x192xf32>
    %20 = arith.mulf %16, %19 : vector<16x192xf32>
    %c0_8 = arith.constant 0 : index
    %c5_9 = arith.constant 5 : index
    %c36 = arith.constant 36 : index
    %21 = vector.load %arg1[%c0_8, %c5_9, %c36] : memref<1x26x312xbf16, #tpu.memory_space<vmem>>, vector<1x16x192xbf16>
    %22 = vector.shape_cast %21 : vector<1x16x192xbf16> to vector<16x192xbf16>
    %23 = arith.extf %22 : vector<16x192xbf16> to vector<16x192xf32>
    %c10 = arith.constant 10 : index
    %c0_10 = arith.constant 0 : index
    %24 = vector.load %arg2[%c10, %c0_10] : memref<25x192xbf16, #tpu.memory_space<vmem>>, vector<1x192xbf16>
    %25 = arith.extf %24 : vector<1x192xbf16> to vector<1x192xf32>
    %26 = vector.broadcast %25 : vector<1x192xf32> to vector<16x192xf32>
    %27 = arith.mulf %23, %26 : vector<16x192xf32>
    %c0_11 = arith.constant 0 : index
    %c4 = arith.constant 4 : index
    %c48 = arith.constant 48 : index
    %28 = vector.load %arg1[%c0_11, %c4, %c48] : memref<1x26x312xbf16, #tpu.memory_space<vmem>>, vector<1x18x192xbf16>
    %29 = vector.shape_cast %28 : vector<1x18x192xbf16> to vector<18x192xbf16>
    %30 = arith.extf %29 : vector<18x192xbf16> to vector<18x192xf32>
    %c4_12 = arith.constant 4 : index
    %c0_13 = arith.constant 0 : index
    %31 = vector.load %arg2[%c4_12, %c0_13] : memref<25x192xbf16, #tpu.memory_space<vmem>>, vector<1x192xbf16>
    %32 = arith.extf %31 : vector<1x192xbf16> to vector<1x192xf32>
    %33 = vector.extract_strided_slice %30 {offsets = [0, 0], sizes = [16, 192], strides = [1, 1]} : vector<18x192xf32> to vector<16x192xf32>
    %34 = vector.broadcast %32 : vector<1x192xf32> to vector<16x192xf32>
    %35 = arith.mulf %33, %34 : vector<16x192xf32>
    %36 = arith.addf %6, %35 : vector<16x192xf32>
    %c11 = arith.constant 11 : index
    %c0_14 = arith.constant 0 : index
    %37 = vector.load %arg2[%c11, %c0_14] : memref<25x192xbf16, #tpu.memory_space<vmem>>, vector<1x192xbf16>
    %38 = arith.extf %37 : vector<1x192xbf16> to vector<1x192xf32>
    %39 = vector.extract_strided_slice %30 {offsets = [1, 0], sizes = [16, 192], strides = [1, 1]} : vector<18x192xf32> to vector<16x192xf32>
    %40 = vector.broadcast %38 : vector<1x192xf32> to vector<16x192xf32>
    %41 = arith.mulf %39, %40 : vector<16x192xf32>
    %42 = arith.addf %13, %41 : vector<16x192xf32>
    %c18 = arith.constant 18 : index
    %c0_15 = arith.constant 0 : index
    %43 = vector.load %arg2[%c18, %c0_15] : memref<25x192xbf16, #tpu.memory_space<vmem>>, vector<1x192xbf16>
    %44 = arith.extf %43 : vector<1x192xbf16> to vector<1x192xf32>
    %45 = vector.extract_strided_slice %30 {offsets = [2, 0], sizes = [16, 192], strides = [1, 1]} : vector<18x192xf32> to vector<16x192xf32>
    %46 = vector.broadcast %44 : vector<1x192xf32> to vector<16x192xf32>
    %47 = arith.mulf %45, %46 : vector<16x192xf32>
    %48 = arith.addf %20, %47 : vector<16x192xf32>
    %c0_16 = arith.constant 0 : index
    %c0_17 = arith.constant 0 : index
    %c60 = arith.constant 60 : index
    %49 = vector.load %arg1[%c0_16, %c0_17, %c60] : memref<1x26x312xbf16, #tpu.memory_space<vmem>>, vector<1x26x192xbf16>
    %50 = vector.shape_cast %49 : vector<1x26x192xbf16> to vector<26x192xbf16>
    %51 = arith.extf %50 : vector<26x192xbf16> to vector<26x192xf32>
    %c0_18 = arith.constant 0 : index
    %c0_19 = arith.constant 0 : index
    %52 = vector.load %arg2[%c0_18, %c0_19] : memref<25x192xbf16, #tpu.memory_space<vmem>>, vector<1x192xbf16>
    %53 = arith.extf %52 : vector<1x192xbf16> to vector<1x192xf32>
    %54 = vector.extract_strided_slice %51 {offsets = [0, 0], sizes = [16, 192], strides = [1, 1]} : vector<26x192xf32> to vector<16x192xf32>
    %55 = vector.broadcast %53 : vector<1x192xf32> to vector<16x192xf32>
    %56 = arith.mulf %54, %55 : vector<16x192xf32>
    %57 = arith.addf %27, %56 : vector<16x192xf32>
    %c1 = arith.constant 1 : index
    %c0_20 = arith.constant 0 : index
    %58 = vector.load %arg2[%c1, %c0_20] : memref<25x192xbf16, #tpu.memory_space<vmem>>, vector<1x192xbf16>
    %59 = arith.extf %58 : vector<1x192xbf16> to vector<1x192xf32>
    %60 = vector.extract_strided_slice %51 {offsets = [1, 0], sizes = [16, 192], strides = [1, 1]} : vector<26x192xf32> to vector<16x192xf32>
    %61 = vector.broadcast %59 : vector<1x192xf32> to vector<16x192xf32>
    %62 = arith.mulf %60, %61 : vector<16x192xf32>
    %63 = arith.addf %36, %62 : vector<16x192xf32>
    %c2 = arith.constant 2 : index
    %c0_21 = arith.constant 0 : index
    %64 = vector.load %arg2[%c2, %c0_21] : memref<25x192xbf16, #tpu.memory_space<vmem>>, vector<1x192xbf16>
    %65 = arith.extf %64 : vector<1x192xbf16> to vector<1x192xf32>
    %66 = vector.extract_strided_slice %51 {offsets = [2, 0], sizes = [16, 192], strides = [1, 1]} : vector<26x192xf32> to vector<16x192xf32>
    %67 = vector.broadcast %65 : vector<1x192xf32> to vector<16x192xf32>
    %68 = arith.mulf %66, %67 : vector<16x192xf32>
    %69 = arith.addf %42, %68 : vector<16x192xf32>
    %c3 = arith.constant 3 : index
    %c0_22 = arith.constant 0 : index
    %70 = vector.load %arg2[%c3, %c0_22] : memref<25x192xbf16, #tpu.memory_space<vmem>>, vector<1x192xbf16>
    %71 = arith.extf %70 : vector<1x192xbf16> to vector<1x192xf32>
    %72 = vector.extract_strided_slice %51 {offsets = [3, 0], sizes = [16, 192], strides = [1, 1]} : vector<26x192xf32> to vector<16x192xf32>
    %73 = vector.broadcast %71 : vector<1x192xf32> to vector<16x192xf32>
    %74 = arith.mulf %72, %73 : vector<16x192xf32>
    %75 = arith.addf %48, %74 : vector<16x192xf32>
    %c5_23 = arith.constant 5 : index
    %c0_24 = arith.constant 0 : index
    %76 = vector.load %arg2[%c5_23, %c0_24] : memref<25x192xbf16, #tpu.memory_space<vmem>>, vector<1x192xbf16>
    %77 = arith.extf %76 : vector<1x192xbf16> to vector<1x192xf32>
    %78 = vector.extract_strided_slice %51 {offsets = [4, 0], sizes = [16, 192], strides = [1, 1]} : vector<26x192xf32> to vector<16x192xf32>
    %79 = vector.broadcast %77 : vector<1x192xf32> to vector<16x192xf32>
    %80 = arith.mulf %78, %79 : vector<16x192xf32>
    %81 = arith.addf %57, %80 : vector<16x192xf32>
    %c12_25 = arith.constant 12 : index
    %c0_26 = arith.constant 0 : index
    %82 = vector.load %arg2[%c12_25, %c0_26] : memref<25x192xbf16, #tpu.memory_space<vmem>>, vector<1x192xbf16>
    %83 = arith.extf %82 : vector<1x192xbf16> to vector<1x192xf32>
    %84 = vector.extract_strided_slice %51 {offsets = [5, 0], sizes = [16, 192], strides = [1, 1]} : vector<26x192xf32> to vector<16x192xf32>
    %85 = vector.broadcast %83 : vector<1x192xf32> to vector<16x192xf32>
    %86 = arith.mulf %84, %85 : vector<16x192xf32>
    %87 = arith.addf %63, %86 : vector<16x192xf32>
    %c19 = arith.constant 19 : index
    %c0_27 = arith.constant 0 : index
    %88 = vector.load %arg2[%c19, %c0_27] : memref<25x192xbf16, #tpu.memory_space<vmem>>, vector<1x192xbf16>
    %89 = arith.extf %88 : vector<1x192xbf16> to vector<1x192xf32>
    %90 = vector.extract_strided_slice %51 {offsets = [6, 0], sizes = [16, 192], strides = [1, 1]} : vector<26x192xf32> to vector<16x192xf32>
    %91 = vector.broadcast %89 : vector<1x192xf32> to vector<16x192xf32>
    %92 = arith.mulf %90, %91 : vector<16x192xf32>
    %93 = arith.addf %69, %92 : vector<16x192xf32>
    %c21 = arith.constant 21 : index
    %c0_28 = arith.constant 0 : index
    %94 = vector.load %arg2[%c21, %c0_28] : memref<25x192xbf16, #tpu.memory_space<vmem>>, vector<1x192xbf16>
    %95 = arith.extf %94 : vector<1x192xbf16> to vector<1x192xf32>
    %96 = vector.extract_strided_slice %51 {offsets = [7, 0], sizes = [16, 192], strides = [1, 1]} : vector<26x192xf32> to vector<16x192xf32>
    %97 = vector.broadcast %95 : vector<1x192xf32> to vector<16x192xf32>
    %98 = arith.mulf %96, %97 : vector<16x192xf32>
    %99 = arith.addf %75, %98 : vector<16x192xf32>
    %c22 = arith.constant 22 : index
    %c0_29 = arith.constant 0 : index
    %100 = vector.load %arg2[%c22, %c0_29] : memref<25x192xbf16, #tpu.memory_space<vmem>>, vector<1x192xbf16>
    %101 = arith.extf %100 : vector<1x192xbf16> to vector<1x192xf32>
    %102 = vector.extract_strided_slice %51 {offsets = [8, 0], sizes = [16, 192], strides = [1, 1]} : vector<26x192xf32> to vector<16x192xf32>
    %103 = vector.broadcast %101 : vector<1x192xf32> to vector<16x192xf32>
    %104 = arith.mulf %102, %103 : vector<16x192xf32>
    %105 = arith.addf %81, %104 : vector<16x192xf32>
    %c23 = arith.constant 23 : index
    %c0_30 = arith.constant 0 : index
    %106 = vector.load %arg2[%c23, %c0_30] : memref<25x192xbf16, #tpu.memory_space<vmem>>, vector<1x192xbf16>
    %107 = arith.extf %106 : vector<1x192xbf16> to vector<1x192xf32>
    %108 = vector.extract_strided_slice %51 {offsets = [9, 0], sizes = [16, 192], strides = [1, 1]} : vector<26x192xf32> to vector<16x192xf32>
    %109 = vector.broadcast %107 : vector<1x192xf32> to vector<16x192xf32>
    %110 = arith.mulf %108, %109 : vector<16x192xf32>
    %111 = arith.addf %87, %110 : vector<16x192xf32>
    %c24_31 = arith.constant 24 : index
    %c0_32 = arith.constant 0 : index
    %112 = vector.load %arg2[%c24_31, %c0_32] : memref<25x192xbf16, #tpu.memory_space<vmem>>, vector<1x192xbf16>
    %113 = arith.extf %112 : vector<1x192xbf16> to vector<1x192xf32>
    %114 = vector.extract_strided_slice %51 {offsets = [10, 0], sizes = [16, 192], strides = [1, 1]} : vector<26x192xf32> to vector<16x192xf32>
    %115 = vector.broadcast %113 : vector<1x192xf32> to vector<16x192xf32>
    %116 = arith.mulf %114, %115 : vector<16x192xf32>
    %117 = arith.addf %93, %116 : vector<16x192xf32>
    %c0_33 = arith.constant 0 : index
    %c4_34 = arith.constant 4 : index
    %c72 = arith.constant 72 : index
    %118 = vector.load %arg1[%c0_33, %c4_34, %c72] : memref<1x26x312xbf16, #tpu.memory_space<vmem>>, vector<1x18x192xbf16>
    %119 = vector.shape_cast %118 : vector<1x18x192xbf16> to vector<18x192xbf16>
    %120 = arith.extf %119 : vector<18x192xbf16> to vector<18x192xf32>
    %c6 = arith.constant 6 : index
    %c0_35 = arith.constant 0 : index
    %121 = vector.load %arg2[%c6, %c0_35] : memref<25x192xbf16, #tpu.memory_space<vmem>>, vector<1x192xbf16>
    %122 = arith.extf %121 : vector<1x192xbf16> to vector<1x192xf32>
    %123 = vector.extract_strided_slice %120 {offsets = [0, 0], sizes = [16, 192], strides = [1, 1]} : vector<18x192xf32> to vector<16x192xf32>
    %124 = vector.broadcast %122 : vector<1x192xf32> to vector<16x192xf32>
    %125 = arith.mulf %123, %124 : vector<16x192xf32>
    %126 = arith.addf %99, %125 : vector<16x192xf32>
    %c13 = arith.constant 13 : index
    %c0_36 = arith.constant 0 : index
    %127 = vector.load %arg2[%c13, %c0_36] : memref<25x192xbf16, #tpu.memory_space<vmem>>, vector<1x192xbf16>
    %128 = arith.extf %127 : vector<1x192xbf16> to vector<1x192xf32>
    %129 = vector.extract_strided_slice %120 {offsets = [1, 0], sizes = [16, 192], strides = [1, 1]} : vector<18x192xf32> to vector<16x192xf32>
    %130 = vector.broadcast %128 : vector<1x192xf32> to vector<16x192xf32>
    %131 = arith.mulf %129, %130 : vector<16x192xf32>
    %132 = arith.addf %105, %131 : vector<16x192xf32>
    %c20 = arith.constant 20 : index
    %c0_37 = arith.constant 0 : index
    %133 = vector.load %arg2[%c20, %c0_37] : memref<25x192xbf16, #tpu.memory_space<vmem>>, vector<1x192xbf16>
    %134 = arith.extf %133 : vector<1x192xbf16> to vector<1x192xf32>
    %135 = vector.extract_strided_slice %120 {offsets = [2, 0], sizes = [16, 192], strides = [1, 1]} : vector<18x192xf32> to vector<16x192xf32>
    %136 = vector.broadcast %134 : vector<1x192xf32> to vector<16x192xf32>
    %137 = arith.mulf %135, %136 : vector<16x192xf32>
    %138 = arith.addf %111, %137 : vector<16x192xf32>
    %c0_38 = arith.constant 0 : index
    %c5_39 = arith.constant 5 : index
    %c84 = arith.constant 84 : index
    %139 = vector.load %arg1[%c0_38, %c5_39, %c84] : memref<1x26x312xbf16, #tpu.memory_space<vmem>>, vector<1x16x192xbf16>
    %140 = vector.shape_cast %139 : vector<1x16x192xbf16> to vector<16x192xbf16>
    %141 = arith.extf %140 : vector<16x192xbf16> to vector<16x192xf32>
    %c14 = arith.constant 14 : index
    %c0_40 = arith.constant 0 : index
    %142 = vector.load %arg2[%c14, %c0_40] : memref<25x192xbf16, #tpu.memory_space<vmem>>, vector<1x192xbf16>
    %143 = arith.extf %142 : vector<1x192xbf16> to vector<1x192xf32>
    %144 = vector.broadcast %143 : vector<1x192xf32> to vector<16x192xf32>
    %145 = arith.mulf %141, %144 : vector<16x192xf32>
    %146 = arith.addf %117, %145 : vector<16x192xf32>
    %c0_41 = arith.constant 0 : index
    %c5_42 = arith.constant 5 : index
    %c96 = arith.constant 96 : index
    %147 = vector.load %arg1[%c0_41, %c5_42, %c96] : memref<1x26x312xbf16, #tpu.memory_space<vmem>>, vector<1x16x192xbf16>
    %148 = vector.shape_cast %147 : vector<1x16x192xbf16> to vector<16x192xbf16>
    %149 = arith.extf %148 : vector<16x192xbf16> to vector<16x192xf32>
    %c15 = arith.constant 15 : index
    %c0_43 = arith.constant 0 : index
    %150 = vector.load %arg2[%c15, %c0_43] : memref<25x192xbf16, #tpu.memory_space<vmem>>, vector<1x192xbf16>
    %151 = arith.extf %150 : vector<1x192xbf16> to vector<1x192xf32>
    %152 = vector.broadcast %151 : vector<1x192xf32> to vector<16x192xf32>
    %153 = arith.mulf %149, %152 : vector<16x192xf32>
    %154 = arith.addf %126, %153 : vector<16x192xf32>
    %c0_44 = arith.constant 0 : index
    %c5_45 = arith.constant 5 : index
    %c108 = arith.constant 108 : index
    %155 = vector.load %arg1[%c0_44, %c5_45, %c108] : memref<1x26x312xbf16, #tpu.memory_space<vmem>>, vector<1x16x192xbf16>
    %156 = vector.shape_cast %155 : vector<1x16x192xbf16> to vector<16x192xbf16>
    %157 = arith.extf %156 : vector<16x192xbf16> to vector<16x192xf32>
    %c16 = arith.constant 16 : index
    %c0_46 = arith.constant 0 : index
    %158 = vector.load %arg2[%c16, %c0_46] : memref<25x192xbf16, #tpu.memory_space<vmem>>, vector<1x192xbf16>
    %159 = arith.extf %158 : vector<1x192xbf16> to vector<1x192xf32>
    %160 = vector.broadcast %159 : vector<1x192xf32> to vector<16x192xf32>
    %161 = arith.mulf %157, %160 : vector<16x192xf32>
    %162 = arith.addf %132, %161 : vector<16x192xf32>
    %c0_47 = arith.constant 0 : index
    %c5_48 = arith.constant 5 : index
    %c120 = arith.constant 120 : index
    %163 = vector.load %arg1[%c0_47, %c5_48, %c120] : memref<1x26x312xbf16, #tpu.memory_space<vmem>>, vector<1x16x192xbf16>
    %164 = vector.shape_cast %163 : vector<1x16x192xbf16> to vector<16x192xbf16>
    %165 = arith.extf %164 : vector<16x192xbf16> to vector<16x192xf32>
    %c17 = arith.constant 17 : index
    %c0_49 = arith.constant 0 : index
    %166 = vector.load %arg2[%c17, %c0_49] : memref<25x192xbf16, #tpu.memory_space<vmem>>, vector<1x192xbf16>
    %167 = arith.extf %166 : vector<1x192xbf16> to vector<1x192xf32>
    %168 = vector.broadcast %167 : vector<1x192xf32> to vector<16x192xf32>
    %169 = arith.mulf %165, %168 : vector<16x192xf32>
    %170 = arith.addf %138, %169 : vector<16x192xf32>
    %171 = arith.addf %170, %146 : vector<16x192xf32>
    %172 = arith.addf %171, %154 : vector<16x192xf32>
    %173 = arith.addf %172, %162 : vector<16x192xf32>
    %174 = arith.truncf %173 : vector<16x192xf32> to vector<16x192xbf16>
    %c0_50 = arith.constant 0 : index
    %c0_51 = arith.constant 0 : index
    %c0_52 = arith.constant 0 : index
    %175 = vector.load %arg3[%c0_50, %c0_51, %c0_52] : memref<1x16x192xbf16, #tpu.memory_space<vmem>>, vector<1x16x192xbf16>
    %176 = vector.shape_cast %175 : vector<1x16x192xbf16> to vector<16x192xbf16>
    %177 = vector.shape_cast %174 : vector<16x192xbf16> to vector<1x16x192xbf16>
    tpu.vector_store %arg3[%c0_50, %c0_51, %c0_52], %177 {strides = array<i32>} : memref<1x16x192xbf16, #tpu.memory_space<vmem>>, vector<1x16x192xbf16>,
    return
  }
  func.func @transform_0(%arg0: i32) -> (i32, i32, i32) {
    %c0_i32 = arith.constant 0 : i32
    %c0_i32_0 = arith.constant 0 : i32
    %c0_i32_1 = arith.constant 0 : i32
    return %arg0, %c0_i32, %c0_i32_0 : i32, i32, i32
  }
  func.func @transform_1(%arg0: i32) -> (i32, i32) {
    %c0_i32 = arith.constant 0 : i32
    %c0_i32_0 = arith.constant 0 : i32
    %c0_i32_1 = arith.constant 0 : i32
    return %c0_i32, %c0_i32_0 : i32, i32
  }
  func.func @transform_2(%arg0: i32) -> (i32, i32, i32) {
    %c0_i32 = arith.constant 0 : i32
    %c0_i32_0 = arith.constant 0 : i32
    %c0_i32_1 = arith.constant 0 : i32
    return %arg0, %c0_i32, %c0_i32_0 : i32, i32, i32
  }
}

module attributes {stable_mosaic.version = 11 : i64} {
  func.func @_mlp_kernel(%arg0: i32, %arg1: memref<256x12xbf16, #tpu.memory_space<vmem>>, %arg2: memref<256x32xf32, #tpu.memory_space<vmem>>, %arg3: memref<32x128xbf16, #tpu.memory_space<vmem>>, %arg4: memref<12x128xbf16, #tpu.memory_space<vmem>>, %arg5: memref<1x128xf32, #tpu.memory_space<vmem>>, %arg6: memref<128x32xbf16, #tpu.memory_space<vmem>>, %arg7: memref<1x32xf32, #tpu.memory_space<vmem>>, %arg8: memref<1x32xf32, #tpu.memory_space<vmem>>, %arg9: memref<256x32xf32, #tpu.memory_space<vmem>>) attributes {dimension_semantics = [#tpu.dimension_semantics<parallel>], iteration_bounds = array<i64: 2>, scalar_prefetch = 0 : i64, scratch_operands = 0 : i64, tpu.core_type = #tpu.core_type<tc>, window_params = [{transform_indices = @transform_0, window_bounds = array<i64: 256, 12>}, {transform_indices = @transform_1, window_bounds = array<i64: 256, 32>}, {pipeline_mode = #tpu.pipeline_mode<synchronous>, transform_indices = @transform_2, window_bounds = array<i64: 32, 128>}, {pipeline_mode = #tpu.pipeline_mode<synchronous>, transform_indices = @transform_3, window_bounds = array<i64: 12, 128>}, {pipeline_mode = #tpu.pipeline_mode<synchronous>, transform_indices = @transform_4, window_bounds = array<i64: 1, 128>}, {pipeline_mode = #tpu.pipeline_mode<synchronous>, transform_indices = @transform_5, window_bounds = array<i64: 128, 32>}, {pipeline_mode = #tpu.pipeline_mode<synchronous>, transform_indices = @transform_6, window_bounds = array<i64: 1, 32>}, {pipeline_mode = #tpu.pipeline_mode<synchronous>, transform_indices = @transform_7, window_bounds = array<i64: 1, 32>}, {transform_indices = @transform_8, window_bounds = array<i64: 256, 32>}]} {
    %c0 = arith.constant 0 : index
    %c0_0 = arith.constant 0 : index
    %0 = vector.load %arg2[%c0, %c0_0] : memref<256x32xf32, #tpu.memory_space<vmem>>, vector<256x32xf32>
    %1 = arith.truncf %0 : vector<256x32xf32> to vector<256x32xbf16>
    %c0_1 = arith.constant 0 : index
    %c0_2 = arith.constant 0 : index
    %2 = vector.load %arg3[%c0_1, %c0_2] : memref<32x128xbf16, #tpu.memory_space<vmem>>, vector<32x128xbf16>
    %cst = arith.constant dense<0.000000e+00> : vector<256x128xf32>
    %3 = tpu.matmul %1, %2, %cst {dimension_numbers = #tpu.dot_dimension_numbers<[1], [0], [0], [1], [0, 0, 1, 1], [], []>} : vector<256x32xbf16>, vector<32x128xbf16>, vector<256x128xf32> -> vector<256x128xf32>
    %c0_3 = arith.constant 0 : index
    %c0_4 = arith.constant 0 : index
    %4 = vector.load %arg1[%c0_3, %c0_4] : memref<256x12xbf16, #tpu.memory_space<vmem>>, vector<256x12xbf16>
    %c0_5 = arith.constant 0 : index
    %c0_6 = arith.constant 0 : index
    %5 = vector.load %arg4[%c0_5, %c0_6] : memref<12x128xbf16, #tpu.memory_space<vmem>>, vector<12x128xbf16>
    %cst_7 = arith.constant dense<0.000000e+00> : vector<256x128xf32>
    %6 = tpu.matmul %4, %5, %cst_7 {dimension_numbers = #tpu.dot_dimension_numbers<[1], [0], [0], [1], [0, 0, 1, 1], [], []>} : vector<256x12xbf16>, vector<12x128xbf16>, vector<256x128xf32> -> vector<256x128xf32>
    %7 = arith.addf %3, %6 : vector<256x128xf32>
    %c0_8 = arith.constant 0 : index
    %c0_9 = arith.constant 0 : index
    %8 = vector.load %arg5[%c0_8, %c0_9] : memref<1x128xf32, #tpu.memory_space<vmem>>, vector<1x128xf32>
    %9 = vector.broadcast %8 : vector<1x128xf32> to vector<256x128xf32>
    %10 = arith.addf %7, %9 : vector<256x128xf32>
    %cst_10 = arith.constant 5.000000e-01 : f32
    %11 = vector.broadcast %cst_10 : f32 to vector<256x128xf32>
    %12 = arith.mulf %11, %10 : vector<256x128xf32>
    %cst_11 = arith.constant 0.707106769 : f32
    %13 = vector.broadcast %cst_11 : f32 to vector<256x128xf32>
    %14 = arith.mulf %10, %13 : vector<256x128xf32>
    %cst_12 = arith.constant 0.000000e+00 : f32
    %15 = vector.broadcast %cst_12 : f32 to vector<256x128xf32>
    %16 = arith.cmpf oge, %14, %15 : vector<256x128xf32>
    %cst_13 = arith.constant 1.000000e+00 : f32
    %cst_14 = arith.constant -1.000000e+00 : f32
    %17 = vector.broadcast %cst_13 : f32 to vector<256x128xf32>
    %18 = vector.broadcast %cst_14 : f32 to vector<256x128xf32>
    %19 = arith.select %16, %17, %18 : vector<256x128xi1>, vector<256x128xf32>
    %20 = math.absf %14 : vector<256x128xf32>
    %cst_15 = arith.constant 0.327591091 : f32
    %21 = vector.broadcast %cst_15 : f32 to vector<256x128xf32>
    %22 = arith.mulf %21, %20 : vector<256x128xf32>
    %cst_16 = arith.constant 1.000000e+00 : f32
    %23 = vector.broadcast %cst_16 : f32 to vector<256x128xf32>
    %24 = arith.addf %23, %22 : vector<256x128xf32>
    %25 = tpu.reciprocal %24 {approx = true} : vector<256x128xf32> -> vector<256x128xf32>
    %cst_17 = arith.constant 1.06140542 : f32
    %26 = vector.broadcast %cst_17 : f32 to vector<256x128xf32>
    %27 = arith.mulf %26, %25 : vector<256x128xf32>
    %cst_18 = arith.constant -1.45315206 : f32
    %28 = vector.broadcast %cst_18 : f32 to vector<256x128xf32>
    %29 = arith.addf %27, %28 : vector<256x128xf32>
    %30 = arith.mulf %29, %25 : vector<256x128xf32>
    %cst_19 = arith.constant 1.42141378 : f32
    %31 = vector.broadcast %cst_19 : f32 to vector<256x128xf32>
    %32 = arith.addf %30, %31 : vector<256x128xf32>
    %33 = arith.mulf %32, %25 : vector<256x128xf32>
    %cst_20 = arith.constant -0.284496725 : f32
    %34 = vector.broadcast %cst_20 : f32 to vector<256x128xf32>
    %35 = arith.addf %33, %34 : vector<256x128xf32>
    %36 = arith.mulf %35, %25 : vector<256x128xf32>
    %cst_21 = arith.constant 0.254829586 : f32
    %37 = vector.broadcast %cst_21 : f32 to vector<256x128xf32>
    %38 = arith.addf %36, %37 : vector<256x128xf32>
    %39 = arith.mulf %38, %25 : vector<256x128xf32>
    %cst_22 = arith.constant 0.000000e+00 : f32
    %40 = vector.broadcast %cst_22 : f32 to vector<256x128xf32>
    %41 = arith.subf %40, %20 : vector<256x128xf32>
    %42 = arith.mulf %41, %20 : vector<256x128xf32>
    %43 = math.exp %42 : vector<256x128xf32>
    %44 = arith.mulf %39, %43 : vector<256x128xf32>
    %cst_23 = arith.constant 1.000000e+00 : f32
    %45 = vector.broadcast %cst_23 : f32 to vector<256x128xf32>
    %46 = arith.subf %45, %44 : vector<256x128xf32>
    %47 = arith.mulf %19, %46 : vector<256x128xf32>
    %cst_24 = arith.constant 1.000000e+00 : f32
    %48 = vector.broadcast %cst_24 : f32 to vector<256x128xf32>
    %49 = arith.addf %48, %47 : vector<256x128xf32>
    %50 = arith.mulf %12, %49 : vector<256x128xf32>
    %51 = arith.truncf %50 : vector<256x128xf32> to vector<256x128xbf16>
    %c0_25 = arith.constant 0 : index
    %c0_26 = arith.constant 0 : index
    %52 = vector.load %arg6[%c0_25, %c0_26] : memref<128x32xbf16, #tpu.memory_space<vmem>>, vector<128x32xbf16>
    %cst_27 = arith.constant dense<0.000000e+00> : vector<256x32xf32>
    %53 = tpu.matmul %51, %52, %cst_27 {dimension_numbers = #tpu.dot_dimension_numbers<[1], [0], [0], [1], [0, 0, 1, 1], [], []>} : vector<256x128xbf16>, vector<128x32xbf16>, vector<256x32xf32> -> vector<256x32xf32>
    %c0_28 = arith.constant 0 : index
    %c0_29 = arith.constant 0 : index
    %54 = vector.load %arg7[%c0_28, %c0_29] : memref<1x32xf32, #tpu.memory_space<vmem>>, vector<1x32xf32>
    %55 = vector.broadcast %54 : vector<1x32xf32> to vector<256x32xf32>
    %56 = arith.mulf %55, %53 : vector<256x32xf32>
    %57 = arith.addf %0, %56 : vector<256x32xf32>
    %c0_30 = arith.constant 0 : index
    %c0_31 = arith.constant 0 : index
    %58 = vector.load %arg8[%c0_30, %c0_31] : memref<1x32xf32, #tpu.memory_space<vmem>>, vector<1x32xf32>
    %59 = vector.broadcast %58 : vector<1x32xf32> to vector<256x32xf32>
    %60 = arith.addf %57, %59 : vector<256x32xf32>
    %c0_32 = arith.constant 0 : index
    %c0_33 = arith.constant 0 : index
    %61 = vector.load %arg9[%c0_32, %c0_33] : memref<256x32xf32, #tpu.memory_space<vmem>>, vector<256x32xf32>
    tpu.vector_store %arg9[%c0_32, %c0_33], %60 {strides = array<i32>} : memref<256x32xf32, #tpu.memory_space<vmem>>, vector<256x32xf32>,
    return
  }
  func.func @transform_0(%arg0: i32) -> (i32, i32) {
    %c0_i32 = arith.constant 0 : i32
    %c0_i32_0 = arith.constant 0 : i32
    return %arg0, %c0_i32 : i32, i32
  }
  func.func @transform_1(%arg0: i32) -> (i32, i32) {
    %c0_i32 = arith.constant 0 : i32
    %c0_i32_0 = arith.constant 0 : i32
    return %arg0, %c0_i32 : i32, i32
  }
  func.func @transform_2(%arg0: i32) -> (i32, i32) {
    %c0_i32 = arith.constant 0 : i32
    %c0_i32_0 = arith.constant 0 : i32
    %c0_i32_1 = arith.constant 0 : i32
    return %c0_i32, %c0_i32_0 : i32, i32
  }
  func.func @transform_3(%arg0: i32) -> (i32, i32) {
    %c0_i32 = arith.constant 0 : i32
    %c0_i32_0 = arith.constant 0 : i32
    %c0_i32_1 = arith.constant 0 : i32
    return %c0_i32, %c0_i32_0 : i32, i32
  }
  func.func @transform_4(%arg0: i32) -> (i32, i32) {
    %c0_i32 = arith.constant 0 : i32
    %c0_i32_0 = arith.constant 0 : i32
    %c0_i32_1 = arith.constant 0 : i32
    return %c0_i32, %c0_i32_0 : i32, i32
  }
  func.func @transform_5(%arg0: i32) -> (i32, i32) {
    %c0_i32 = arith.constant 0 : i32
    %c0_i32_0 = arith.constant 0 : i32
    %c0_i32_1 = arith.constant 0 : i32
    return %c0_i32, %c0_i32_0 : i32, i32
  }
  func.func @transform_6(%arg0: i32) -> (i32, i32) {
    %c0_i32 = arith.constant 0 : i32
    %c0_i32_0 = arith.constant 0 : i32
    %c0_i32_1 = arith.constant 0 : i32
    return %c0_i32, %c0_i32_0 : i32, i32
  }
  func.func @transform_7(%arg0: i32) -> (i32, i32) {
    %c0_i32 = arith.constant 0 : i32
    %c0_i32_0 = arith.constant 0 : i32
    %c0_i32_1 = arith.constant 0 : i32
    return %c0_i32, %c0_i32_0 : i32, i32
  }
  func.func @transform_8(%arg0: i32) -> (i32, i32) {
    %c0_i32 = arith.constant 0 : i32
    %c0_i32_0 = arith.constant 0 : i32
    return %arg0, %c0_i32 : i32, i32
  }
}

</mosaic_0001>

<bundles_post_ra>
// kernel: mul.0
= control target key start
LH: loop header
LB: loop body
LE: loop exit
PB: predicated region body
PF: predicated region fallthrough
CT: control target
= control target key end

     0   :  { %s34_s0 = inlined_call_operand.vmem [shape: f32[1,32], index: 0, kind: input, shape index: {}]   ;;  %s35_s1 = inlined_call_operand.vmem [shape: f32[1,32], index: 1, kind: input, shape index: {}]   ;;  %s36_s2 = inlined_call_operand.vmem [shape: f32[1,32], index: 2, kind: output, shape index: {}]  }
   0x1   :  { %v3_v0 = vld [vmem:[%s34_s0] sm:$0x1] }
   0x2   :  { %v4_v1 = vld [vmem:[%s35_s1] sm:$0x1] }
   0x3   :  { %v7_v2 = vmul.f32 %v4_v1, %v3_v0 }
   0x5   :  { %9 = vst [vmem:[%s36_s2] sm:$0x1] %v7_v2 }

// kernel: tile.19
= control target key start
LH: loop header
LB: loop body
LE: loop exit
PB: predicated region body
PF: predicated region fallthrough
CT: control target
= control target key end

     0   :  { %s173_s8 = smov 96   ;;  %vm39_vm0 = vcmask 64512   ;;  %s174_s9 = smov 72   ;;  %vm33_vm1 = vcmask 97280   ;;  %vm43_vm2 = vcmask 31744   ;;  %vm46_vm3 = vcmask 1048512   ;;  %s206_s0 = inlined_call_operand.vmem [shape: bf16[16,12], index: 0, kind: input, shape index: {}]   ;;  %s207_s1 = inlined_call_operand.vmem [shape: bf16[1,192], index: 1, kind: output, shape index: {}]  }
   0x1   :  { %v154_v0 = vld [vmem:[%s206_s0] sm:$0xff]   ;;  %s172_s0 = smov 108   ;;  %s175_s10 = smov 120   ;;  %vm52_vm4 = vcmask 982880   ;;  %vm58_vm5 = vcmask 884480   ;;  %vm64_vm6 = vcmask 786080  }
   0x2   :  { %v156_v1 = vunpack.c.h.bf16 %v154_v0  ;;  %v155_v2 = vunpack.c.l.bf16 %v154_v0  ;;  %s176_s11 = smov 84   ;;  %s177_s12 = smov 60   ;;  %vm70_vm7 = vcmask 687680   ;;  %vm76_vm8 = vcmask 589280  }
   0x3   :  { %s178_s13 = smov 52   ;;  %s179_s14 = smov 48   ;;  %vm82_vm9 = vcmask 523680   ;;  %vm95_vm10 = vcmask 425280   ;;  %vm89_vm11 = vcmask 490880   ;;  %vm102_vm12 = vcmask 392480  }
   0x4   :  { %18 = vst [vmem:[#allocation1 + $0x8] sm:$0xff] %v156_v1  ;;  %s180_s15 = smov 40   ;;  %s181_s16 = smov 36   ;;  %vm115_vm13 = vcmask 294080   ;;  %vm108_vm14 = vcmask 326880   ;;  %vm121_vm15 = vcmask 228480  }
   0x5   :  { %31 = vst [vmem:[#allocation1] sm:$0xff] %v155_v2  ;;  %s182_s17 = smov 28   ;;  %s183_s18 = smov 24  }
   0x6   :  { %s184_s19 = smov 16   ;;  %s185_s20 = smov 12  }
   0x7   :  { %s186_s21 = smov 4  }
   0xb   :  { %v49_v3 = vld [vmem:[#allocation1 + $0x9] sm:$0x1]   ;;  %v55_v4 = vld [vmem:[#allocation1 + $0x8] sm:$0x1]   ;;  %v36_v6 = vld [vmem:[#allocation1 + $0xa] sm:$0x1]  }
   0xc   :  { %50 = vrot.lane.b32.xlu0 %v49_v3, %s172_s0  ;;  %56 = vrot.lane.b32.xlu1 %v55_v4, %s173_s8  ;;  %v67_v5 = vld [vmem:[#allocation1 + $0x6] sm:$0x1]   ;;  %v38_v7 = vld [vmem:[#allocation1 + $0xa] sm:$0x1]   ;;  %v61_v9 = vld [vmem:[#allocation1 + $0x7] sm:$0x1]  }
   0xd   :  { %68 = vrot.lane.b32.xlu2 %v67_v5, %s174_s9  ;;  %v40_v8 = vsel %vm39_vm0, %v38_v7, %v36_v6  ;;  %v73_v10 = vld [vmem:[#allocation1 + $0x5] sm:$0x1]   ;;  %v79_v11 = vld [vmem:[#allocation1 + $0xf] sm:$0x1]   ;;  %v86_v12 = vld [vmem:[#allocation1 + $0x4] sm:$0x1]  }
   0xe   :  { %v92_v13 = vld [vmem:[#allocation1 + $0xe] sm:$0x1]   ;;  %v99_v14 = vld [vmem:[#allocation1 + $0x3] sm:$0x1]   ;;  %v105_v15 = vld [vmem:[#allocation1 + $0xd] sm:$0x1]  }
   0xf   :  { %v112_v16 = vld [vmem:[#allocation1 + $0x2] sm:$0x1]   ;;  %v118_v17 = vld [vmem:[#allocation1 + $0xc] sm:$0x1]   ;;  %v125_v18 = vld [vmem:[#allocation1 + $0x1] sm:$0x1]  }
  0x10   :  { %v131_v19 = vld [vmem:[#allocation1 + $0xb] sm:$0x1]   ;;  %v32_v20 = vld [vmem:[#allocation1] sm:$0x1]   ;;  %vm134_vm0 = vcmask 130080  }
  0x11   :  { %34 = vst.msk [vmem:[#allocation0] sm:$0x1] %vm33_vm1, %v32_v20   ;;  %vm128_vm1 = vcmask 195680  }
  0x14   :  { %41 = vrot.lane.b32.xlu0 %v40_v8, %s175_s10  ;;  %62 = vrot.lane.b32.xlu1 %v61_v9, %s176_s11 }
  0x15   :  { %74 = vrot.lane.b32.xlu2 %v73_v10, %s177_s12 }
  0x1c   :  { %80 = vrot.lane.b32.xlu0 %v79_v11, %s178_s13  ;;  %87 = vrot.lane.b32.xlu1 %v86_v12, %s179_s14 }
  0x1d   :  { %93 = vrot.lane.b32.xlu2 %v92_v13, %s180_s15 }
  0x24   :  { %100 = vrot.lane.b32.xlu0 %v99_v14, %s181_s16  ;;  %106 = vrot.lane.b32.xlu1 %v105_v15, %s182_s17 }
  0x25   :  { %113 = vrot.lane.b32.xlu2 %v112_v16, %s183_s18 }
  0x2c   :  { %119 = vrot.lane.b32.xlu0 %v118_v17, %s184_s19  ;;  %126 = vrot.lane.b32.xlu1 %v125_v18, %s185_s20 }
  0x2d   :  { %132 = vrot.lane.b32.xlu2 %v131_v19, %s186_s21 }
  0x67   :  { %v69_v21 = vpop.permute.xlu2 %68  }
  0x6f   :  { %v75_v22 = vpop.permute.xlu2 %74  }
  0x77   :  { %v94_v23 = vpop.permute.xlu2 %93  }
  0x7e   :  { %v51_v24 = vpop.permute.xlu0 %50   ;;  %v57_v25 = vpop.permute.xlu1 %56  }
  0x7f   :  { %v114_v26 = vpop.permute.xlu2 %113  }
  0x86   :  { %v42_v27 = vpop.permute.xlu0 %41   ;;  %v63_v28 = vpop.permute.xlu1 %62  }
  0x87   :  { %45 = vst.msk [vmem:[#allocation0 + $0x8] sm:$0x1] %vm43_vm2, %v42_v27   ;;  %v133_v29 = vpop.permute.xlu2 %132  }
  0x88   :  { %47 = vst.msk [vmem:[#allocation0] sm:$0x1] %vm46_vm3, %v42_v27  }
  0x89   :  { %53 = vst.msk [vmem:[#allocation0] sm:$0x1] %vm52_vm4, %v51_v24  }
  0x8a   :  { %59 = vst.msk [vmem:[#allocation0] sm:$0x1] %vm58_vm5, %v57_v25  }
  0x8b   :  { %65 = vst.msk [vmem:[#allocation0] sm:$0x1] %vm64_vm6, %v63_v28  }
  0x8c   :  { %71 = vst.msk [vmem:[#allocation0] sm:$0x1] %vm70_vm7, %v69_v21  }
  0x8d   :  { %77 = vst.msk [vmem:[#allocation0] sm:$0x1] %vm76_vm8, %v75_v22  }
  0x8e   :  { %v81_v30 = vpop.permute.xlu0 %80   ;;  %v88_v31 = vpop.permute.xlu1 %87  }
  0x8f   :  { %84 = vst.msk [vmem:[#allocation0 + $0x8] sm:$0x1] %vm82_vm9, %v81_v30  }
  0x90   :  { %97 = vst.msk [vmem:[#allocation0 + $0x8] sm:$0x1] %vm95_vm10, %v94_v23  }
  0x91   :  { %90 = vst.msk [vmem:[#allocation0] sm:$0x1] %vm89_vm11, %v88_v31  }
  0x96   :  { %v101_v32 = vpop.permute.xlu0 %100   ;;  %v107_v33 = vpop.permute.xlu1 %106  }
  0x97   :  { %103 = vst.msk [vmem:[#allocation0] sm:$0x1] %vm102_vm12, %v101_v32  }
  0x98   :  { %116 = vst.msk [vmem:[#allocation0] sm:$0x1] %vm115_vm13, %v114_v26  }
  0x99   :  { %110 = vst.msk [vmem:[#allocation0 + $0x8] sm:$0x1] %vm108_vm14, %v107_v33  }
  0x9e   :  { %v120_v34 = vpop.permute.xlu0 %119   ;;  %v127_v35 = vpop.permute.xlu1 %126  }
  0x9f   :  { %123 = vst.msk [vmem:[#allocation0 + $0x8] sm:$0x1] %vm121_vm15, %v120_v34  }
  0xa0   :  { %136 = vst.msk [vmem:[#allocation0 + $0x8] sm:$0x1] %vm134_vm0, %v133_v29  }
  0xa1   :  { %129 = vst.msk [vmem:[#allocation0] sm:$0x1] %vm128_vm1, %v127_v35  }
  0xa7   :  { %v145_v36 = vld [vmem:[#allocation0 + $0x8] sm:$0x3] }
  0xa8   :  { %v146_v37 = vpack.c.bf16 0.0, %v145_v36  ;;  %v139_v38 = vld [vmem:[#allocation0] sm:$0x3] }
  0xa9   :  { %v140_v39 = vpack.c.bf16 0.0, %v139_v38 }
  0xaa   :  { %152 = vst [vmem:[%s207_s1 + $0x1] sm:$0x1] %v146_v37 }
  0xab   :  { %143 = vst [vmem:[%s207_s1] sm:$0x1] %v140_v39 }

// kernel: hglm_forward.2
= control target key start
LH: loop header
LB: loop body
LE: loop exit
PB: predicated region body
PF: predicated region fallthrough
CT: control target
= control target key end

     0   :  { %s1977_s9 = smov 0   ;;  %s3176_s0 = inlined_call_operand.vmem [shape: bf16[2,26,312], index: 0, kind: input, shape index: {}]   ;;  %s3177_s1 = inlined_call_operand.vmem [shape: bf16[25,192], index: 1, kind: input, shape index: {}]   ;;  %s3178_s2 = inlined_call_operand.vmem [shape: bf16[2,16,192], index: 2, kind: output, shape index: {}]  }
   0x1 LB: > { %s1780_s10 = sadd.s32 4294967295, %s1943_s9   ;;  %p1784_p0 = scmp.ge.s32.totalorder %s1943_s9, 1  ;;  %s1943_s9 = sphi %s1977_s9, %s12_s9  }
   0x2   : > { %p112_p1 = scmp.lt.s32.totalorder %s1943_s9, 3 }
   0x4   : > { %p113_p2 = pnand %p1784_p0, %p112_p1 }
   0x6   : > { %116 = sbr.rel (%p113_p2) target bundleno = 2241 (0x8c1), region = 28 }
   0xb   : > { %v203_v0 = vld [vmem:[%s3177_s1 + $0x8] sm:$0x22]  ;;  %v1991_v1 = vld [vmem:[%s3177_s1] sm:$0x44]  ;;  %v164_v4 = vld [vmem:[%s3177_s1 + $0x8] sm:$0x11] }
   0xc   : > { %v204_v2 = vunpack.c.l.bf16 %v203_v0  ;;  %v205_v3 = vunpack.c.h.bf16 %v203_v0  ;;  %v165_v5 = vunpack.c.l.bf16 %v164_v4  ;;  %v166_v6 = vunpack.c.h.bf16 %v164_v4  ;;  %v2001_v13 = vld [vmem:[%s3177_s1 + $0x10] sm:$0x22]  ;;  %s1945_s19 = smov 36   ;;  %s1946_s20 = smov 12   ;;  %v534_v22 = vld [vmem:[%s3177_s1] sm:$0x22] }
   0xd   : > { %v225_v9 = vunpack.c.l.bf16 %v1991_v1  ;;  %v226_v10 = vunpack.c.h.bf16 %v1991_v1  ;;  %v3182_v18 = vunpack.c.l.bf16 %v2001_v13  ;;  %v3181_v19 = vunpack.c.h.bf16 %v2001_v13  ;;  %v415_v23 = vld [vmem:[%s3177_s1] sm:$0x11]  ;;  %s1947_s25 = smov 48   ;;  %s1948_s26 = smov 24  }
   0xe   : > { %v206_v7 = vperm.slane %v204_v2, 2  ;;  %v207_v8 = vperm.slane %v205_v3, 2  ;;  %v167_v11 = vperm.slane %v165_v5, 0  ;;  %v168_v12 = vperm.slane %v166_v6, 0  ;;  %s1949_s27 = smov 60   ;;  %p134_p3 = scmp.lt.s32.totalorder %s1780_s10, 1 }
   0xf   : > { %v227_v16 = vperm.slane %v225_v9, 4  ;;  %v228_v17 = vperm.slane %v226_v10, 4  ;;  %v185_v20 = vperm.slane %v165_v5, 1  ;;  %v186_v21 = vperm.slane %v166_v6, 1  ;;  %s1950_s4 = smov 92   ;;  %s1951_s5 = smov 104  }
  0x10   : > { %v1827_v14 = vpack.i.bf16 %v207_v8, %v206_v7  ;;  %v1817_v15 = vpack.i.bf16 %v168_v12, %v167_v11  ;;  %v344_v24 = vperm.slane %v3182_v18, 2  ;;  %v345_v25 = vperm.slane %v3181_v19, 2  ;;  %s3271_s10 = smov (!%p134_p3, %s1780_s10), 1  ;;  %s1952_s6 = smov 80  }
  0x11   : > { %v1832_v26 = vpack.i.bf16 %v228_v17, %v227_v16  ;;  %v535_v28 = vunpack.c.l.bf16 %v534_v22  ;;  %v536_v29 = vunpack.c.h.bf16 %v534_v22  ;;  %v1822_v30 = vpack.i.bf16 %v186_v21, %v185_v20  ;;  %s1791_s28 = smul.u32 48, %s3271_s10  ;;  %s1953_s7 = smov 68  }
  0x12   : > { %1828 = vrot.lane.b32.xlu1 %v1827_v14, %s1945_s19  ;;  %1818 = vrot.lane.b32.xlu0 %v1817_v15, %s1946_s20  ;;  %v1842_v27 = vpack.i.bf16 %v345_v25, %v344_v24  ;;  %v416_v31 = vunpack.c.l.bf16 %v415_v23  ;;  %v417_v32 = vunpack.c.h.bf16 %v415_v23  ;;  %v290_v35 = vperm.slane %v204_v2, 3  ;;  %s1954_s20 = smov 72   ;;  %s1955_s21 = smov 56  }
  0x13   : > { %v537_v33 = vperm.slane %v535_v28, 2  ;;  %v538_v34 = vperm.slane %v536_v29, 2  ;;  %v291_v36 = vperm.slane %v205_v3, 3  ;;  %v598_v44 = vperm.slane %v535_v28, 3  ;;  %s2041_s3 = scalar_lea.vmem %s3176_s0, %s1791_s28  ;;  %s1956_s24 = smov 84  }
  0x14   : > { %1843 = vrot.lane.b32.xlu2 %v1842_v27, %s1947_s25  ;;  %v418_v37 = vperm.slane %v416_v31, 0  ;;  %v419_v38 = vperm.slane %v417_v32, 0  ;;  %v472_v42 = vperm.slane %v416_v31, 1  ;;  %v473_v43 = vperm.slane %v417_v32, 1  ;;  %v146_v53 = vld [vmem:[%s2041_s3 + $0x18] sm:$0x77] }
  0x15   : > { %v1857_v39 = vpack.i.bf16 %v538_v34, %v537_v33  ;;  %v1837_v40 = vpack.i.bf16 %v291_v36, %v290_v35  ;;  %v599_v45 = vperm.slane %v536_v29, 3  ;;  %v145_v54 = vld [vmem:[%s2041_s3 + $0xc] sm:$0xff]  ;;  %v144_v55 = vld [vmem:[%s2041_s3] sm:$0xcc]  ;;  %v2048_v58 = vunpack.c.l.bf16 %v146_v53  ;;  %s1958_s28 = smov 108   ;;  %s1959_s29 = smov 120  }
  0x16   : > { %v1847_v41 = vpack.i.bf16 %v419_v38, %v418_v37  ;;  %v1852_v46 = vpack.i.bf16 %v473_v43, %v472_v42  ;;  %v2050_v59 = vunpack.c.l.bf16 %v145_v54  ;;  %v2052_v60 = vunpack.c.l.bf16 %v144_v55  ;;  %v2065_v4 = vld [vmem:[%s2041_s3] sm:$0xff]  ;;  %s1960_s30 = smov 8  }
  0x17   : > { %v1862_v47 = vpack.i.bf16 %v599_v45, %v598_v44  ;;  %vm235_vm0 = vcmask 392192   ;;  %v2067_v5 = vunpack.c.h.bf16 %v146_v53  ;;  %v2073_v8 = vunpack.c.h.bf16 %v144_v55 }
  0x18   : > { %v2079_v12 = vunpack.c.l.bf16 %v2065_v4  ;;  %v2083_v15 = vunpack.c.h.bf16 %v145_v54  ;;  %vm621_vm1 = vcmask 1041408   ;;  %vm251_vm2 = vcmask 1040384  }
  0x19   : > { %vm367_vm3 = vcmask 1046528   ;;  %vm495_vm4 = vcmask 1043456   ;;  %vm438_vm5 = vcmask 1044480   ;;  %vm426_vm6 = vcmask 490496  }
  0x1a   : > { %1833 = vrot.lane.b32.xlu1 %v1832_v26, %s1947_s25  ;;  %1823 = vrot.lane.b32.xlu0 %v1822_v30, %s1948_s26  ;;  %vm560_vm7 = vcmask 1042432   ;;  %vm193_vm8 = vcmask 195584   ;;  %vm390_vm9 = vcmask 850944   ;;  %vm325_vm10 = vcmask 752640  }
  0x1b   : > { %vm214_vm11 = vcmask 293888   ;;  %vm518_vm12 = vcmask 556032   ;;  %vm274_vm13 = vcmask 654336   ;;  %vm175_vm14 = vcmask 97280  }
  0x1c   : > { %1858 = vrot.lane.b32.xlu2 %v1857_v39, %s1949_s27  ;;  %vm858_vm15 = vcmask 1045504  }
  0x22   : > { %1838 = vrot.lane.b32.xlu1 %v1837_v40, %s1947_s25  ;;  %1848 = vrot.lane.b32.xlu0 %v1847_v41, %s1949_s27  ;;  %s1957_s25 = smov 96  }
  0x2a   : > { %1853 = vrot.lane.b32.xlu1 %v1852_v46, %s1949_s27  ;;  %1863 = vrot.lane.b32.xlu0 %v1862_v47, %s1949_s27 }
  0x6e   : > { %v2043_v52 = vpop.permute.xlu2 %1843 }
  0x6f   : > { %v2071_v7 = vunpack.i.l.bf16 %v2043_v52 }
  0x71   : > { %v2100_v24 = vmul.f32 %v2071_v7, %v2048_v58  ;;  %v355_v44 = vmul.f32 %v2071_v7, %v2052_v60  ;;  %v357_v45 = vmul.f32 %v2071_v7, %v2050_v59 }
  0x73   : > { %v374_v29 = vrot.slane %v2100_v24, 1  ;;  %v368_v47 = vrot.slane %v355_v44, 1  ;;  %v369_v53 = vrot.slane %v357_v45, 1 }
  0x76   : > { %v2062_v3 = vpop.permute.xlu2 %1858 }
  0x77   : > { %v2076_v11 = vunpack.i.l.bf16 %v2062_v3 }
  0x79   : > { %v2104_v25 = vmul.f32 %v2076_v11, %v2079_v12 }
  0x7b   : > { %v561_v30 = vrot.slane %v2104_v25, 5 }
  0x84   : > { %v2025_v48 = vpop.permute.xlu1 %1828  ;;  %v2027_v49 = vpop.permute.xlu0 %1818 }
  0x8c   : > { %v2034_v50 = vpop.permute.xlu1 %1833  ;;  %v2036_v51 = vpop.permute.xlu0 %1823 }
  0x8d   : > { %v2091_v21 = vunpack.i.l.bf16 %v2034_v50  ;;  %v1836_v54 = vunpack.i.h.bf16 %v2034_v50 }
  0x8f   : > { %v239_v26 = vmul.f32 %v2091_v21, %v2052_v60  ;;  %v2119_v34 = vmul.f32 %v2091_v21, %v2050_v59 }
  0x91   : > { %v252_v33 = vrot.slane %v239_v26, 7  ;;  %v254_v39 = vrot.slane %v2119_v34, 7  ;;  %v243_v26 = vmul.f32 %v2091_v21, %v2048_v58 }
  0x93   : > { %v255_v43 = vsel %vm251_vm2, %v252_v33, %v254_v39 }
  0x94   : > { %v1839_v56 = vpop.permute.xlu1 %1838  ;;  %v2054_v61 = vpop.permute.xlu0 %1848 }
  0x95   : > { %v1840_v57 = vunpack.i.l.bf16 %v1839_v56  ;;  %v1841_v2 = vunpack.i.h.bf16 %v1839_v56  ;;  %v1850_v31 = vunpack.i.l.bf16 %v2054_v61  ;;  %v1851_v50 = vunpack.i.h.bf16 %v2054_v61 }
  0x97   : > { %v305_v62 = vmul.f32 %v1840_v57, %v2048_v58  ;;  %v303_v63 = vmul.f32 %v1840_v57, %v2050_v59  ;;  %v301_v0 = vmul.f32 %v1840_v57, %v2052_v60  ;;  %v298_v6 = vsel %vm235_vm0, %v1840_v57, %v1841_v2 }
  0x98   : > { %v306_v17 = vmul.f32 %v298_v6, %v2067_v5  ;;  %v302_v20 = vmul.f32 %v298_v6, %v2073_v8  ;;  %v304_v22 = vmul.f32 %v298_v6, %v2083_v15  ;;  %v430_v36 = vmul.f32 %v1850_v31, %v2079_v12 }
  0x99   : > { %321 = vrot.lane.b32.xlu0 %v305_v62, %s1950_s4  ;;  %317 = vrot.lane.b32.xlu1 %v303_v63, %s1950_s4  ;;  %v432_v37 = vmul.f32 %v1850_v31, %v2050_v59  ;;  %v370_v57 = vsel %vm367_vm3, %v368_v47, %v369_v53  ;;  %v236_v62 = vsel %vm235_vm0, %v2091_v21, %v1836_v54  ;;  %v1861_v63 = vunpack.i.h.bf16 %v2062_v3 }
  0x9a   : > { %313 = vrot.lane.b32.xlu2 %v301_v0, %s1950_s4  ;;  %v439_v40 = vrot.slane %v430_v36, 3  ;;  %v240_v2 = vmul.f32 %v236_v62, %v2073_v8  ;;  %v2162_v3 = vunpack.c.h.bf16 %v2065_v4  ;;  %v242_v54 = vmul.f32 %v236_v62, %v2083_v15 }
  0x9b   : > { %v441_v41 = vrot.slane %v432_v37, 3 }
  0x9c   : > { %v2081_v14 = vpop.permute.xlu0 %1863  ;;  %v1854_v38 = vpop.permute.xlu1 %1853 }
  0x9d   : > { %v2086_v16 = vunpack.i.l.bf16 %v2081_v14  ;;  %v1855_v42 = vunpack.i.l.bf16 %v1854_v38 }
  0x9f   : > { %v609_v23 = vmul.f32 %v2086_v16, %v2079_v12  ;;  %v2111_v28 = vmul.f32 %v2086_v16, %v2050_v59  ;;  %v483_v46 = vmul.f32 %v1855_v42, %v2079_v12  ;;  %v485_v56 = vmul.f32 %v1855_v42, %v2050_v59 }
  0xa1   : > { %323 = vrot.lane.b32.xlu1 %v306_v17, %s1950_s4  ;;  %315 = vrot.lane.b32.xlu0 %v302_v20, %s1950_s4  ;;  %v622_v27 = vrot.slane %v609_v23, 6  ;;  %v624_v32 = vrot.slane %v2111_v28, 6  ;;  %v496_v55 = vrot.slane %v483_v46, 4  ;;  %v498_v0 = vrot.slane %v485_v56, 4 }
  0xa2   : > { %319 = vrot.lane.b32.xlu2 %v304_v22, %s1950_s4  ;;  %v2159_v17 = vsel %vm426_vm6, %v2076_v11, %v1861_v63  ;;  %v253_v20 = vrot.slane %v240_v2, 7  ;;  %v442_v22 = vsel %vm438_vm5, %v439_v40, %v441_v41  ;;  %v427_v23 = vsel %vm426_vm6, %v1850_v31, %v1851_v50 }
  0xa3   : > { %v2124_v35 = vsel %vm621_vm1, %v622_v27, %v624_v32  ;;  %v499_v6 = vsel %vm495_vm4, %v496_v55, %v498_v0  ;;  %v2170_v61 = vmul.f32 %v2159_v17, %v2162_v3  ;;  %v433_v4 = vmul.f32 %v427_v23, %v2083_v15 }
  0xa4   : > { %v258_v31 = vrot.slane %v243_v26, 7  ;;  %v1846_v46 = vunpack.i.h.bf16 %v2043_v52  ;;  %v256_v56 = vrot.slane %v242_v54, 7 }
  0xa5   : > { %v562_v34 = vrot.slane %v2170_v61, 5  ;;  %v443_v37 = vrot.slane %v433_v4, 3  ;;  %v659_v61 = vperm.slane %v225_v9, 5 }
  0xa6   : > { %v352_v52 = vsel %vm235_vm0, %v2071_v7, %v1846_v46  ;;  %v257_v2 = vsel %vm251_vm2, %v253_v20, %v256_v56  ;;  %vm1088_vm0 = vcmask 588800  }
  0xa7   : > { %v356_v50 = vmul.f32 %v352_v52, %v2073_v8 }
  0xa9   : > { %386 = vrot.lane.b32.xlu1 %v374_v29, %s1951_s5  ;;  %571 = vrot.lane.b32.xlu0 %v561_v30, %s1952_s6  ;;  %v371_v7 = vrot.slane %v356_v50, 1 }
  0xaa   : > { %262 = vrot.lane.b32.xlu2 %v252_v33, %s1952_s6  ;;  %v1856_v33 = vunpack.i.h.bf16 %v1854_v38  ;;  %v259_v38 = vsel %vm251_vm2, %v254_v39, %v258_v31 }
  0xac   : > { %v480_v21 = vsel %vm426_vm6, %v1855_v42, %v1856_v33 }
  0xb1   : > { %445 = vrot.lane.b32.xlu1 %v439_v40, %s1951_s5  ;;  %266 = vrot.lane.b32.xlu0 %v255_v43, %s1952_s6  ;;  %v550_v40 = vmul.f32 %v2076_v11, %v2050_v59  ;;  %v2192_v43 = vmul.f32 %v480_v21, %v2162_v3 }
  0xb2   : > { %453 = vrot.lane.b32.xlu2 %v441_v41, %s1951_s5 }
  0xb3   : > { %v563_v44 = vrot.slane %v550_v40, 5  ;;  %v486_v40 = vmul.f32 %v480_v21, %v2083_v15 }
  0xb9   : > { %632 = vrot.lane.b32.xlu1 %v622_v27, %s1950_s4  ;;  %378 = vrot.lane.b32.xlu0 %v370_v57, %s1951_s5  ;;  %v407_v27 = vld [vmem:[%s2041_s3 + $0x18] sm:$0xff]  ;;  %v360_v57 = vmul.f32 %v352_v52, %v2067_v5 }
  0xba   : > { %506 = vrot.lane.b32.xlu2 %v496_v55, %s1953_s7  ;;  %v2178_v36 = vunpack.c.l.bf16 %v407_v27  ;;  %v375_v55 = vsel %vm367_vm3, %v369_v53, %v374_v29  ;;  %v244_v53 = vmul.f32 %v236_v62, %v2067_v5  ;;  %v1866_v62 = vunpack.i.h.bf16 %v2081_v14 }
  0xbb   : > { %v376_v24 = vrot.slane %v360_v57, 1 }
  0xbc   : > { %v552_v41 = vmul.f32 %v2076_v11, %v2178_v36  ;;  %v497_v11 = vrot.slane %v2192_v43, 4  ;;  %v487_v39 = vmul.f32 %v1855_v42, %v2178_v36  ;;  %v358_v42 = vmul.f32 %v352_v52, %v2083_v15 }
  0xbd   : > { %v260_v26 = vrot.slane %v244_v53, 7  ;;  %v564_v43 = vsel %vm560_vm7, %v561_v30, %v563_v44  ;;  %v606_v14 = vsel %vm426_vm6, %v2086_v16, %v1866_v62  ;;  %v613_v1 = vmul.f32 %v2086_v16, %v2178_v36 }
  0xbe   : > { %v567_v45 = vrot.slane %v552_v41, 5  ;;  %v502_v63 = vrot.slane %v487_v39, 4  ;;  %v612_v30 = vmul.f32 %v606_v14, %v2083_v15 }
  0xbf   : > { %v628_v9 = vrot.slane %v613_v1, 6 }
  0xc0   : > { %v568_v47 = vsel %vm560_vm7, %v563_v44, %v567_v45  ;;  %v503_v29 = vsel %vm495_vm4, %v498_v0, %v502_v63  ;;  %v2223_v0 = vunpack.c.h.bf16 %v407_v27  ;;  %v500_v27 = vrot.slane %v486_v40, 4 }
  0xc1   : > { %510 = vrot.lane.b32.xlu1 %v499_v6, %s1953_s7  ;;  %449 = vrot.lane.b32.xlu0 %v442_v22, %s1951_s5  ;;  %v372_v6 = vrot.slane %v358_v42, 1  ;;  %v431_v22 = vmul.f32 %v427_v23, %v2162_v3  ;;  %v626_v44 = vrot.slane %v612_v30, 6 }
  0xc2   : > { %264 = vrot.lane.b32.xlu2 %v253_v20, %s1952_s6  ;;  %v261_v20 = vsel %vm251_vm2, %v256_v56, %v260_v26  ;;  %v488_v41 = vmul.f32 %v480_v21, %v2223_v0  ;;  %v610_v21 = vmul.f32 %v606_v14, %v2162_v3  ;;  %v614_v39 = vmul.f32 %v606_v14, %v2223_v0 }
  0xc3   : > { %v373_v4 = vsel %vm367_vm3, %v371_v7, %v372_v6  ;;  %v440_v33 = vrot.slane %v431_v22, 3  ;;  %v377_v31 = vsel %vm367_vm3, %v372_v6, %v376_v24  ;;  %v553_v52 = vmul.f32 %v2159_v17, %v2223_v0 }
  0xc4   : > { %v630_v56 = vrot.slane %v614_v39, 6 }
  0xc5   : > { %v444_v23 = vsel %vm438_vm5, %v440_v33, %v443_v37  ;;  %v569_v63 = vrot.slane %v553_v52, 5 }
  0xc6   : > { %v631_v50 = vsel %vm621_vm1, %v626_v44, %v630_v56 }
  0xc9   : > { %573 = vrot.lane.b32.xlu1 %v562_v34, %s1952_s6  ;;  %455 = vrot.lane.b32.xlu0 %v443_v37, %s1951_s5  ;;  %v504_v37 = vrot.slane %v488_v41, 4 }
  0xca   : > { %270 = vrot.lane.b32.xlu2 %v259_v38, %s1952_s6  ;;  %v551_v38 = vmul.f32 %v2159_v17, %v2083_v15 }
  0xcb   : > { %v505_v46 = vsel %vm495_vm4, %v500_v27, %v504_v37 }
  0xcc   : > { %v565_v45 = vrot.slane %v551_v38, 5 }
  0xce   : > { %v566_v25 = vsel %vm560_vm7, %v562_v34, %v565_v45  ;;  %v660_v34 = vperm.slane %v226_v10, 5  ;;  %v629_v10 = vsel %vm621_vm1, %v624_v32, %v628_v9 }
  0xd0   : > { %v1867_v57 = vpack.i.bf16 %v660_v34, %v659_v61 }
  0xd1   : > { %579 = vrot.lane.b32.xlu1 %v568_v47, %s1952_s6  ;;  %508 = vrot.lane.b32.xlu0 %v497_v11, %s1953_s7  ;;  %v623_v47 = vrot.slane %v610_v21, 6 }
  0xd2   : > { %382 = vrot.lane.b32.xlu2 %v375_v55, %s1951_s5  ;;  %v501_v55 = vsel %vm495_vm4, %v497_v11, %v500_v27 }
  0xd3   : > { %v627_v54 = vsel %vm621_vm1, %v623_v47, %v626_v44  ;;  %vm1321_vm1 = vcmask 687104  }
  0xd9   : > { %268 = vrot.lane.b32.xlu1 %v257_v2, %s1952_s6  ;;  %514 = vrot.lane.b32.xlu0 %v503_v29, %s1953_s7 }
  0xda   : > { %388 = vrot.lane.b32.xlu2 %v376_v24, %s1951_s5 }
  0xe1   : > { %380 = vrot.lane.b32.xlu1 %v373_v4, %s1951_s5  ;;  %272 = vrot.lane.b32.xlu0 %v261_v20, %s1952_s6 }
  0xe2   : > { %447 = vrot.lane.b32.xlu2 %v440_v33, %s1951_s5 }
  0xe9   : > { %451 = vrot.lane.b32.xlu1 %v444_v23, %s1951_s5  ;;  %384 = vrot.lane.b32.xlu0 %v377_v31, %s1951_s5 }
  0xea   : > { %575 = vrot.lane.b32.xlu2 %v564_v43, %s1952_s6 }
  0xf1   : > { %516 = vrot.lane.b32.xlu1 %v505_v46, %s1953_s7  ;;  %577 = vrot.lane.b32.xlu0 %v566_v25, %s1952_s6  ;;  %v1826_v46 = vunpack.i.h.bf16 %v2036_v51 }
  0xf2   : > { %634 = vrot.lane.b32.xlu2 %v623_v47, %s1950_s4  ;;  %v2330_v47 = vunpack.i.l.bf16 %v2036_v51 }
  0xf4   : > { %v2284_v29 = vpop.permute.xlu2 %313  ;;  %v2337_v44 = vsel %vm193_vm8, %v2330_v47, %v1826_v46  ;;  %v199_v61 = vmul.f32 %v2330_v47, %v2050_v59  ;;  %vm1603_vm8 = vcmask 949248  }
  0xf5   : > { %v200_v39 = vmul.f32 %v2337_v44, %v2083_v15 }
  0xf9   : > { %638 = vrot.lane.b32.xlu1 %v627_v54, %s1950_s4  ;;  %636 = vrot.lane.b32.xlu0 %v2124_v35, %s1950_s4  ;;  %v570_v35 = vsel %vm560_vm7, %v565_v45, %v569_v63 }
  0xfa   : > { %512 = vrot.lane.b32.xlu2 %v501_v55, %s1953_s7 }
  0xfc   : > { %v2290_v32 = vpop.permute.xlu2 %319 }
 0x101   : > { %1868 = vrot.lane.b32.xlu1 %v1867_v57, %s1949_s27  ;;  %642 = vrot.lane.b32.xlu0 %v631_v50, %s1950_s4 }
 0x102   : > { %581 = vrot.lane.b32.xlu2 %v570_v35, %s1952_s6 }
 0x104   : > { %v2300_v4 = vpop.permute.xlu2 %262 }
 0x10a   : > { %640 = vrot.lane.b32.xlu2 %v629_v10, %s1950_s4 }
 0x10b   : > { %v2272_v17 = vpop.permute.xlu0 %321  ;;  %v2274_v11 = vpop.permute.xlu1 %317 }
 0x10c   : > { %3203 = vst [vmem:[#allocation2_spill] sm:$0xff] %v2272_v17  ;;  %v2306_v62 = vpop.permute.xlu2 %453 }
 0x10d   : > { %3208 = vst [vmem:[#allocation7_spill] sm:$0xff] %v2306_v62 }
 0x113   : > { %v2276_v42 = vpop.permute.xlu1 %323  ;;  %v2278_v2 = vpop.permute.xlu0 %315 }
 0x114   : > { %3204 = vst [vmem:[#allocation3_spill] sm:$0xff] %v2276_v42  ;;  %v2312_v40 = vpop.permute.xlu2 %506 }
 0x11b   : > { %v2280_v24 = vpop.permute.xlu1 %386  ;;  %v2282_v16 = vpop.permute.xlu0 %571 }
 0x11c   : > { %3205 = vst [vmem:[#allocation4_spill] sm:$0xff] %v2280_v24  ;;  %v2318_v43 = vpop.permute.xlu2 %264 }
 0x123   : > { %v2286_v53 = vpop.permute.xlu1 %445  ;;  %v2288_v28 = vpop.permute.xlu0 %266 }
 0x124   : > { %v2326_v45 = vpop.permute.xlu2 %270 }
 0x125   : > { %3212 = vst [vmem:[#allocation11_spill] sm:$0xff] %v2326_v45 }
 0x12b   : > { %v2292_v7 = vpop.permute.xlu1 %632  ;;  %v2294_v6 = vpop.permute.xlu0 %378 }
 0x12c   : > { %3206 = vst [vmem:[#allocation5_spill] sm:$0xff] %v2292_v7  ;;  %v383_v54 = vpop.permute.xlu2 %382 }
 0x133   : > { %v2296_v22 = vpop.permute.xlu1 %510  ;;  %v2298_v26 = vpop.permute.xlu0 %449 }
 0x13b   : > { %v2302_v33 = vpop.permute.xlu1 %573  ;;  %v2304_v20 = vpop.permute.xlu0 %455 }
 0x13c   : > { %3207 = vst [vmem:[#allocation6_spill] sm:$0xff] %v2304_v20 }
 0x143   : > { %v2308_v31 = vpop.permute.xlu1 %579  ;;  %v2310_v23 = vpop.permute.xlu0 %508 }
 0x144   : > { %3209 = vst [vmem:[#allocation8_spill] sm:$0xff] %v2308_v31 }
 0x14b   : > { %v2314_v41 = vpop.permute.xlu1 %268  ;;  %v2316_v38 = vpop.permute.xlu0 %514 }
 0x14c   : > { %3210 = vst [vmem:[#allocation9_spill] sm:$0xff] %v2316_v38 }
 0x153   : > { %v2320_v14 = vpop.permute.xlu1 %380  ;;  %v2322_v27 = vpop.permute.xlu0 %272 }
 0x154   : > { %3211 = vst [vmem:[#allocation10_spill] sm:$0xff] %v2322_v27 }
 0x15b   : > { %v2324_v37 = vpop.permute.xlu1 %451  ;;  %v385_v21 = vpop.permute.xlu0 %384 }
 0x15c   : > { %v392_v55 = vsel %vm390_vm9, %v383_v54, %v385_v21  ;;  %v403_v51 = vadd.f32 %v385_v21, %v200_v39 }
 0x15d   : > { %v402_v34 = vadd.f32 %v392_v55, %v199_v61 }
 0x163   : > { %v2332_v25 = vpop.permute.xlu1 %516  ;;  %v2334_v30 = vpop.permute.xlu0 %577 }
 0x164   : > { %3213 = vst [vmem:[#allocation12_spill] sm:$0xff] %v2332_v25 }
 0x16b   : > { %v639_v52 = vpop.permute.xlu1 %638  ;;  %v637_v56 = vpop.permute.xlu0 %636 }
 0x16c   : > { %v2344_v57 = vadd.f32 %v639_v52, %v403_v51  ;;  %v645_v63 = vsel %vm325_vm10, %v637_v56, %v639_v52 }
 0x16d   : > { %v2347_v50 = vadd.f32 %v645_v63, %v402_v34  ;;  %v2363_v63 = vld [vmem:[%s3177_s1 + $0x8] sm:$0x44] }
 0x173   : > { %v1869_v35 = vpop.permute.xlu1 %1868  ;;  %v2402_v62 = vpop.permute.xlu0 %642 }
 0x174   : > { %v1871_v1 = vunpack.i.h.bf16 %v1869_v35  ;;  %v1870_v9 = vunpack.i.l.bf16 %v1869_v35  ;;  %3219 = vst [vmem:[#allocation18_spill] sm:$0xff] %v2402_v62 }
 0x176   : > { %v667_v10 = vsel %vm426_vm6, %v1870_v9, %v1871_v1  ;;  %v670_v46 = vmul.f32 %v1870_v9, %v2079_v12  ;;  %v672_v54 = vmul.f32 %v1870_v9, %v2050_v59  ;;  %v674_v56 = vmul.f32 %v1870_v9, %v2178_v36 }
 0x177   : > { %v671_v21 = vmul.f32 %v667_v10, %v2162_v3  ;;  %v673_v51 = vmul.f32 %v667_v10, %v2083_v15  ;;  %v675_v52 = vmul.f32 %v667_v10, %v2223_v0 }
 0x178   : > { %v682_v39 = vrot.slane %v670_v46, 7  ;;  %v684_v55 = vrot.slane %v672_v54, 7  ;;  %v688_v46 = vrot.slane %v674_v56, 7  ;;  %v3180_v54 = vunpack.c.l.bf16 %v2363_v63 }
 0x179   : > { %v683_v61 = vrot.slane %v671_v21, 7  ;;  %v686_v35 = vrot.slane %v673_v51, 7  ;;  %v690_v1 = vrot.slane %v675_v52, 7  ;;  %v3179_v21 = vunpack.c.h.bf16 %v2363_v63 }
 0x17a   : > { %692 = vrot.lane.b32.xlu2 %v682_v39, %s1951_s5  ;;  %v685_v34 = vsel %vm251_vm2, %v682_v39, %v684_v55  ;;  %v689_v39 = vsel %vm251_vm2, %v684_v55, %v688_v46 }
 0x17b   : > { %696 = vrot.lane.b32.xlu1 %v685_v34, %s1951_s5  ;;  %694 = vrot.lane.b32.xlu0 %v683_v61, %s1951_s5  ;;  %v687_v10 = vsel %vm251_vm2, %v683_v61, %v686_v35  ;;  %v691_v9 = vsel %vm251_vm2, %v686_v35, %v690_v1  ;;  %v722_v34 = vperm.slane %v3180_v54, 4  ;;  %v723_v51 = vperm.slane %v3179_v21, 4  ;;  %v2378_v61 = vpop.permute.xlu2 %388 }
 0x17c   : > { %3214 = vst [vmem:[#allocation13_spill] sm:$0xff] %v2378_v61 }
 0x17d   : > { %v1872_v52 = vpack.i.bf16 %v723_v51, %v722_v34 }
 0x182   : > { %698 = vrot.lane.b32.xlu2 %v687_v10, %s1951_s5 }
 0x183   : > { %702 = vrot.lane.b32.xlu1 %v691_v9, %s1951_s5  ;;  %700 = vrot.lane.b32.xlu0 %v689_v39, %s1951_s5  ;;  %v2380_v56 = vpop.permute.xlu2 %447  ;;  %v1831_v9 = vunpack.i.h.bf16 %v2025_v48  ;;  %v2392_v39 = vunpack.i.l.bf16 %v2025_v48 }
 0x185   : > { %3217 = vst [vmem:[#allocation16_spill] sm:$0xff] %v2392_v39  ;;  %v2395_v51 = vsel %vm214_vm11, %v2392_v39, %v1831_v9  ;;  %vm1689_vm11 = vsmask.f32 5392 }
 0x186   : > { %3218 = vst [vmem:[#allocation17_spill] sm:$0xff] %v2395_v51 }
 0x18a   : > { %1873 = vrot.lane.b32.xlu2 %v1872_v52, %s1949_s27  ;;  %v221_v52 = vmul.f32 %v2395_v51, %v2083_v15 }
 0x18b   : > { %v2382_v35 = vpop.permute.xlu2 %575 }
 0x18c   : > { %v469_v21 = vadd.f32 %v2324_v37, %v221_v52 }
 0x193   : > { %v2384_v55 = vpop.permute.xlu2 %634 }
 0x19b   : > { %v513_v1 = vpop.permute.xlu2 %512 }
 0x1a3   : > { %v2386_v46 = vpop.permute.xlu2 %581 }
 0x1a4   : > { %3215 = vst [vmem:[#allocation14_spill] sm:$0xff] %v2386_v46 }
 0x1ab   : > { %v2388_v10 = vpop.permute.xlu2 %640 }
 0x1ac   : > { %3216 = vst [vmem:[#allocation15_spill] sm:$0xff] %v2388_v10 }
 0x1d4   : > { %v693_v34 = vpop.permute.xlu2 %692 }
 0x1dc   : > { %v699_v54 = vpop.permute.xlu2 %698 }
 0x1dd   : > { %v2400_v19 = vadd.f32 %v699_v54, %v469_v21  ;;  %v458_v21 = vsel %vm390_vm9, %v2298_v26, %v2324_v37 }
 0x1e4   : > { %v1874_v18 = vpop.permute.xlu2 %1873 }
 0x1e5   : > { %v1876_v20 = vunpack.i.h.bf16 %v1874_v18  ;;  %v1875_v10 = vunpack.i.l.bf16 %v1874_v18  ;;  %v220_v18 = vmul.f32 %v2392_v39, %v2050_v59 }
 0x1e7   : > { %v735_v48 = vmul.f32 %v1875_v10, %v2050_v59  ;;  %v733_v24 = vmul.f32 %v1875_v10, %v2079_v12  ;;  %v730_v9 = vsel %vm426_vm6, %v1875_v10, %v1876_v20  ;;  %v468_v52 = vadd.f32 %v458_v21, %v220_v18 }
 0x1e8   : > { %v734_v61 = vmul.f32 %v730_v9, %v2162_v3  ;;  %v738_v46 = vmul.f32 %v730_v9, %v2223_v0  ;;  %v736_v26 = vmul.f32 %v730_v9, %v2083_v15  ;;  %v737_v37 = vmul.f32 %v1875_v10, %v2178_v36  ;;  %v2439_v9 = vld [vmem:[%s3177_s1] sm:$0x88] }
 0x1e9   : > { %749 = vrot.lane.b32.xlu2 %v735_v48, %s1953_s7  ;;  %745 = vrot.lane.b32.xlu0 %v733_v24, %s1953_s7  ;;  %v3187_v18 = vunpack.c.h.bf16 %v2439_v9 }
 0x1ea   : > { %747 = vrot.lane.b32.xlu1 %v734_v61, %s1953_s7  ;;  %v3220_v61 = vunpack.c.l.bf16 %v2001_v13 }
 0x1ec   : > { %v772_v21 = vperm.slane %v3220_v61, 3 }
 0x1ed   : > { %v697_v62 = vpop.permute.xlu1 %696  ;;  %v2416_v31 = vpop.permute.xlu0 %694 }
 0x1ee   : > { %v705_v20 = vsel %vm390_vm9, %v697_v62, %v699_v54  ;;  %v2421_v48 = vsel %vm390_vm9, %v693_v34, %v2416_v31  ;;  %v3221_v62 = vunpack.c.h.bf16 %v2001_v13  ;;  %v2449_v13 = vperm.slane %v3187_v18, 7 }
 0x1ef   : > { %v2423_v24 = vadd.f32 %v705_v20, %v468_v52  ;;  %v3188_v52 = vunpack.c.l.bf16 %v2439_v9  ;;  %v520_v18 = vsel %vm518_vm12, %v2296_v22, %v513_v1 }
 0x1f0   : > { %v773_v54 = vperm.slane %v3221_v62, 3  ;;  %3224 = vst [vmem:[#allocation21_spill] sm:$0xff] %v2449_v13 }
 0x1f1   : > { %755 = vrot.lane.b32.xlu2 %v738_v46, %s1953_s7  ;;  %751 = vrot.lane.b32.xlu0 %v736_v26, %s1953_s7  ;;  %v2453_v20 = vperm.slane %v3188_v52, 7 }
 0x1f2   : > { %753 = vrot.lane.b32.xlu1 %v737_v37, %s1953_s7  ;;  %v1877_v34 = vpack.i.bf16 %v773_v54, %v772_v21  ;;  %v161_v37 = vmul.f32 %v2449_v13, %v2083_v15  ;;  %v276_v54 = vsel %vm274_vm13, %v2288_v28, %v2314_v41 }
 0x1f3   : > { %v160_v21 = vmul.f32 %v2453_v20, %v2050_v59 }
 0x1f5   : > { %v2441_v10 = vpop.permute.xlu0 %700  ;;  %v2443_v46 = vpop.permute.xlu1 %702  ;;  %v286_v52 = vadd.f32 %v276_v54, %v160_v21  ;;  %v2492_v21 = vld [vmem:[%s3177_s1 + $0x10] sm:$0x44] }
 0x1f6   : > { %3222 = vst [vmem:[#allocation19_spill] sm:$0xff] %v2441_v10 }
 0x1f7   : > { %3223 = vst [vmem:[#allocation20_spill] sm:$0xff] %v2443_v46  ;;  %v530_v46 = vadd.f32 %v520_v18, %v286_v52 }
 0x1f8   : > { %3225 = vst [vmem:[#allocation22_spill] sm:$0xff] %v2492_v21 }
 0x1f9   : > { %1878 = vrot.lane.b32.xlu0 %v1877_v34, %s1949_s27  ;;  %v287_v34 = vadd.f32 %v2314_v41, %v161_v37 }
 0x1fb   : > { %v531_v10 = vadd.f32 %v513_v1, %v287_v34  ;;  %v3194_v34 = vunpack.c.l.bf16 %v2492_v21 }
 0x243   : > { %v750_v17 = vpop.permute.xlu2 %749 }
 0x25b   : > { %v746_v26 = vpop.permute.xlu0 %745 }
 0x25c   : > { %v2457_v61 = vpop.permute.xlu1 %747 }
 0x25d   : > { %v2463_v62 = vsel %vm518_vm12, %v746_v26, %v2457_v61 }
 0x263   : > { %v752_v42 = vpop.permute.xlu0 %751 }
 0x264   : > { %v758_v38 = vsel %vm518_vm12, %v750_v17, %v752_v42  ;;  %v2472_v25 = vadd.f32 %v752_v42, %v531_v10 }
 0x265   : > { %v2474_v26 = vadd.f32 %v758_v38, %v530_v46 }
 0x26b   : > { %v1879_v45 = vpop.permute.xlu0 %1878 }
 0x26c   : > { %v1881_v27 = vunpack.i.h.bf16 %v1879_v45  ;;  %v1880_v7 = vunpack.i.l.bf16 %v1879_v45 }
 0x26e   : > { %v780_v28 = vsel %vm426_vm6, %v1880_v7, %v1881_v27  ;;  %v785_v41 = vmul.f32 %v1880_v7, %v2050_v59  ;;  %v787_v22 = vmul.f32 %v1880_v7, %v2178_v36  ;;  %v783_v1 = vmul.f32 %v1880_v7, %v2079_v12 }
 0x26f   : > { %v784_v18 = vmul.f32 %v780_v28, %v2162_v3  ;;  %v786_v52 = vmul.f32 %v780_v28, %v2083_v15  ;;  %v788_v27 = vmul.f32 %v780_v28, %v2223_v0 }
 0x270   : > { %v796_v17 = vrot.slane %v785_v41, 1  ;;  %v801_v42 = vrot.slane %v787_v22, 1  ;;  %v795_v10 = vrot.slane %v783_v1, 1  ;;  %v3193_v41 = vunpack.c.h.bf16 %v2492_v21 }
 0x271   : > { %v798_v38 = vrot.slane %v784_v18, 1  ;;  %v799_v46 = vrot.slane %v786_v52, 1  ;;  %v803_v54 = vrot.slane %v788_v27, 1  ;;  %v835_v22 = vperm.slane %v3194_v34, 5  ;;  %v2505_v52 = vpop.permute.xlu2 %755 }
 0x272   : > { %v802_v37 = vsel %vm367_vm3, %v796_v17, %v801_v42  ;;  %v797_v45 = vsel %vm367_vm3, %v795_v10, %v796_v17  ;;  %v836_v1 = vperm.slane %v3193_v41, 5  ;;  %3226 = vst [vmem:[#allocation23_spill] sm:$0xff] %v2505_v52  ;;  %v2507_v17 = vpop.permute.xlu1 %753  ;;  %v1821_v10 = vunpack.i.h.bf16 %v2027_v49 }
 0x273   : > { %809 = vrot.lane.b32.xlu0 %v802_v37, %s1952_s6  ;;  %805 = vrot.lane.b32.xlu1 %v797_v45, %s1952_s6  ;;  %v800_v7 = vsel %vm367_vm3, %v798_v38, %v799_v46  ;;  %v804_v28 = vsel %vm367_vm3, %v799_v46, %v803_v54  ;;  %3227 = vst [vmem:[#allocation24_spill] sm:$0xff] %v2507_v17  ;;  %v2511_v38 = vunpack.i.l.bf16 %v2027_v49 }
 0x274   : > { %807 = vrot.lane.b32.xlu2 %v800_v7, %s1952_s6  ;;  %v1882_v18 = vpack.i.bf16 %v836_v1, %v835_v22  ;;  %v327_v7 = vsel %vm325_vm10, %v2274_v11, %v2290_v32 }
 0x275   : > { %v2514_v46 = vsel %vm175_vm14, %v2511_v38, %v1821_v10  ;;  %v181_v49 = vmul.f32 %v2511_v38, %v2050_v59 }
 0x276   : > { %v182_v27 = vmul.f32 %v2514_v46, %v2083_v15 }
 0x277   : > { %v337_v22 = vadd.f32 %v327_v7, %v181_v49 }
 0x27b   : > { %815 = vrot.lane.b32.xlu0 %v803_v54, %s1952_s6  ;;  %811 = vrot.lane.b32.xlu1 %v804_v28, %s1952_s6  ;;  %v338_v54 = vadd.f32 %v2290_v32, %v182_v27  ;;  %v584_v28 = vsel %vm274_vm13, %v2382_v35, %v2334_v30 }
 0x27c   : > { %813 = vrot.lane.b32.xlu2 %v801_v42, %s1952_s6 }
 0x27d   : > { %v595_v1 = vadd.f32 %v2334_v30, %v338_v54 }
 0x283   : > { %1883 = vrot.lane.b32.xlu1 %v1882_v18, %s1949_s27  ;;  %v594_v18 = vadd.f32 %v584_v28, %v337_v22 }
 0x2ce   : > { %v2516_v37 = vpop.permute.xlu2 %807 }
 0x2e5   : > { %v806_v45 = vpop.permute.xlu1 %805  ;;  %v810_v10 = vpop.permute.xlu0 %809 }
 0x2e6   : > { %v2520_v42 = vsel %vm274_vm13, %v806_v45, %v2516_v37 }
 0x2ed   : > { %v812_v45 = vpop.permute.xlu1 %811 }
 0x2ee   : > { %v818_v41 = vsel %vm274_vm13, %v810_v10, %v812_v45  ;;  %v2535_v34 = vadd.f32 %v812_v45, %v595_v1 }
 0x2ef   : > { %v2537_v11 = vadd.f32 %v818_v41, %v594_v18 }
 0x2f5   : > { %v1884_v17 = vpop.permute.xlu1 %1883 }
 0x2f6   : > { %v1886_v52 = vunpack.i.h.bf16 %v1884_v17  ;;  %v1885_v21 = vunpack.i.l.bf16 %v1884_v17 }
 0x2f8   : > { %v843_v32 = vsel %vm426_vm6, %v1885_v21, %v1886_v52  ;;  %v848_v27 = vmul.f32 %v1885_v21, %v2050_v59  ;;  %v850_v35 = vmul.f32 %v1885_v21, %v2178_v36  ;;  %v846_v30 = vmul.f32 %v1885_v21, %v2079_v12 }
 0x2f9   : > { %v847_v7 = vmul.f32 %v843_v32, %v2162_v3  ;;  %v849_v49 = vmul.f32 %v843_v32, %v2083_v15  ;;  %v851_v18 = vmul.f32 %v843_v32, %v2223_v0  ;;  %v896_v3 = vld [vmem:[%s3177_s1 + $0x10] sm:$0x88] }
 0x2fa   : > { %v860_v54 = vrot.slane %v848_v27, 2  ;;  %v865_v28 = vrot.slane %v850_v35, 2  ;;  %v859_v41 = vrot.slane %v846_v30, 2  ;;  %v897_v10 = vunpack.c.l.bf16 %v896_v3 }
 0x2fb   : > { %v862_v22 = vrot.slane %v847_v7, 2  ;;  %v863_v1 = vrot.slane %v849_v49, 2  ;;  %v867_v21 = vrot.slane %v851_v18, 2  ;;  %v898_v45 = vunpack.c.h.bf16 %v896_v3  ;;  %v2560_v7 = vpop.permute.xlu2 %813 }
 0x2fc   : > { %v866_v17 = vsel %vm858_vm15, %v860_v54, %v865_v28  ;;  %v861_v52 = vsel %vm858_vm15, %v859_v41, %v860_v54  ;;  %v899_v32 = vperm.slane %v897_v10, 6  ;;  %3228 = vst [vmem:[#allocation25_spill] sm:$0xff] %v2560_v7 }
 0x2fd   : > { %873 = vrot.lane.b32.xlu1 %v866_v17, %s1950_s4  ;;  %869 = vrot.lane.b32.xlu2 %v861_v52, %s1950_s4  ;;  %v864_v12 = vsel %vm858_vm15, %v862_v22, %v863_v1  ;;  %v868_v27 = vsel %vm858_vm15, %v863_v1, %v867_v21  ;;  %v900_v35 = vperm.slane %v898_v45, 6  ;;  %v2565_v1 = vpop.permute.xlu0 %815 }
 0x2fe   : > { %871 = vrot.lane.b32.xlu0 %v864_v12, %s1950_s4 }
 0x2ff   : > { %v1887_v30 = vpack.i.bf16 %v900_v35, %v899_v32 }
 0x305   : > { %879 = vrot.lane.b32.xlu1 %v867_v21, %s1950_s4  ;;  %875 = vrot.lane.b32.xlu2 %v868_v27, %s1950_s4 }
 0x306   : > { %877 = vrot.lane.b32.xlu0 %v865_v28, %s1950_s4 }
 0x30d   : > { %1888 = vrot.lane.b32.xlu2 %v1887_v30, %s1949_s27 }
 0x357   : > { %v870_v49 = vpop.permute.xlu2 %869 }
 0x35f   : > { %v876_v54 = vpop.permute.xlu2 %875 }
 0x360   : > { %v2563_v41 = vadd.f32 %v876_v54, %v2344_v57 }
 0x367   : > { %v1889_v22 = vpop.permute.xlu2 %1888 }
 0x368   : > { %v1891_v17 = vunpack.i.h.bf16 %v1889_v22  ;;  %v1890_v52 = vunpack.i.l.bf16 %v1889_v22 }
 0x36a   : > { %v912_v18 = vmul.f32 %v1890_v52, %v2178_v36  ;;  %v910_v12 = vmul.f32 %v1890_v52, %v2050_v59  ;;  %v907_v28 = vsel %vm426_vm6, %v1890_v52, %v1891_v17 }
 0x36b   : > { %v911_v3 = vmul.f32 %v907_v28, %v2083_v15  ;;  %v913_v32 = vmul.f32 %v907_v28, %v2223_v0  ;;  %v951_v28 = vperm.slane %v897_v10, 7  ;;  %v218_v10 = vmul.f32 %v2392_v39, %v2052_v60 }
 0x36c   : > { %v918_v21 = vrot.slane %v910_v12, 3  ;;  %v920_v27 = vrot.slane %v912_v18, 3 }
 0x36d   : > { %v919_v35 = vrot.slane %v911_v3, 3  ;;  %v922_v18 = vrot.slane %v913_v32, 3  ;;  %v952_v3 = vperm.slane %v898_v45, 7  ;;  %v457_v32 = vsel %vm390_vm9, %v2286_v53, %v2380_v56 }
 0x36e   : > { %924 = vrot.lane.b32.xlu0 %v918_v21, %s1951_s5  ;;  %v921_v57 = vsel %vm438_vm5, %v918_v21, %v920_v27 }
 0x36f   : > { %v874_v30 = vpop.permute.xlu1 %873  ;;  %928 = vrot.lane.b32.xlu2 %v921_v57, %s1951_s5  ;;  %926 = vrot.lane.b32.xlu1 %v919_v35, %s1951_s5  ;;  %v923_v12 = vsel %vm438_vm5, %v919_v35, %v922_v18  ;;  %vm1458_vm5 = vcmask 883712  }
 0x370   : > { %v882_v22 = vsel %vm325_vm10, %v874_v30, %v876_v54  ;;  %v2577_v7 = vpop.permute.xlu0 %871  ;;  %v1892_v54 = vpack.i.bf16 %v952_v3, %v951_v28 }
 0x371   : > { %v2580_v17 = vadd.f32 %v882_v22, %v2347_v50  ;;  %v2584_v52 = vsel %vm325_vm10, %v870_v49, %v2577_v7  ;;  %v219_v49 = vmul.f32 %v2395_v51, %v2073_v8 }
 0x373   : > { %v467_v45 = vadd.f32 %v2380_v56, %v219_v49 }
 0x375   : > { %v714_v35 = vadd.f32 %v2416_v31, %v467_v45  ;;  %v2618_v31 = vld [vmem:[%s2041_s3 + $0x24] sm:$0x11] }
 0x376   : > { %930 = vrot.lane.b32.xlu0 %v923_v12, %s1951_s5 }
 0x377   : > { %934 = vrot.lane.b32.xlu2 %v922_v18, %s1951_s5  ;;  %932 = vrot.lane.b32.xlu1 %v920_v27, %s1951_s5  ;;  %v2593_v21 = vpop.permute.xlu1 %879  ;;  %v466_v27 = vadd.f32 %v457_v32, %v218_v10  ;;  %v3201_v10 = vunpack.c.h.bf16 %v2618_v31 }
 0x378   : > { %v2591_v50 = vpop.permute.xlu0 %877 }
 0x379   : > { %v713_v30 = vadd.f32 %v2421_v48, %v466_v27 }
 0x37e   : > { %1893 = vrot.lane.b32.xlu0 %v1892_v54, %s1949_s27 }
 0x3c9   : > { %v929_v53 = vpop.permute.xlu2 %928 }
 0x3e0   : > { %v925_v57 = vpop.permute.xlu0 %924 }
 0x3e1   : > { %v927_v22 = vpop.permute.xlu1 %926 }
 0x3e2   : > { %v936_v18 = vsel %vm390_vm9, %v925_v57, %v927_v22  ;;  %v2606_v12 = vadd.f32 %v927_v22, %v714_v35  ;;  %v3200_v57 = vunpack.c.l.bf16 %v2618_v31 }
 0x3e3   : > { %v2608_v28 = vadd.f32 %v936_v18, %v713_v30 }
 0x3e8   : > { %v931_v3 = vpop.permute.xlu0 %930 }
 0x3e9   : > { %v937_v54 = vsel %vm390_vm9, %v929_v53, %v931_v3  ;;  %v2612_v39 = vadd.f32 %v931_v3, %v2400_v19 }
 0x3ea   : > { %v2615_v56 = vadd.f32 %v937_v54, %v2423_v24 }
 0x3f0   : > { %v1894_v48 = vpop.permute.xlu0 %1893 }
 0x3f1   : > { %v1896_v49 = vunpack.i.h.bf16 %v1894_v48  ;;  %v1895_v32 = vunpack.i.l.bf16 %v1894_v48  ;;  %v1011_v48 = vld [vmem:[%s3177_s1 + $0x18] sm:$0x11] }
 0x3f2   : > { %v1013_v51 = vunpack.c.h.bf16 %v1011_v48 }
 0x3f3   : > { %v959_v45 = vsel %vm426_vm6, %v1895_v32, %v1896_v49  ;;  %v962_v27 = vmul.f32 %v1895_v32, %v2050_v59  ;;  %v964_v35 = vmul.f32 %v1895_v32, %v2178_v36  ;;  %v966_v54 = vmul.f32 %v1895_v32, %v3200_v57 }
 0x3f4   : > { %v963_v19 = vmul.f32 %v959_v45, %v2083_v15  ;;  %v965_v18 = vmul.f32 %v959_v45, %v2223_v0  ;;  %v967_v3 = vmul.f32 %v959_v45, %v3201_v10  ;;  %v1015_v57 = vperm.slane %v1013_v51, 0 }
 0x3f5   : > { %v974_v30 = vrot.slane %v962_v27, 4  ;;  %v976_v24 = vrot.slane %v964_v35, 4  ;;  %v980_v35 = vrot.slane %v966_v54, 4 }
 0x3f6   : > { %v975_v22 = vrot.slane %v963_v19, 4  ;;  %v978_v49 = vrot.slane %v965_v18, 4  ;;  %v982_v27 = vrot.slane %v967_v3, 4  ;;  %v1012_v19 = vunpack.c.l.bf16 %v1011_v48  ;;  %v2647_v3 = vpop.permute.xlu2 %934 }
 0x3f7   : > { %984 = vrot.lane.b32.xlu1 %v974_v30, %s1953_s7  ;;  %v977_v53 = vsel %vm495_vm4, %v974_v30, %v976_v24  ;;  %v981_v32 = vsel %vm495_vm4, %v976_v24, %v980_v35  ;;  %v159_v18 = vmul.f32 %v2449_v13, %v2073_v8  ;;  %v1076_v13 = vld [vmem:[%s2041_s3 + $0x20] sm:$0x7] }
 0x3f8   : > { %988 = vrot.lane.b32.xlu0 %v977_v53, %s1953_s7  ;;  %986 = vrot.lane.b32.xlu2 %v975_v22, %s1953_s7  ;;  %v979_v30 = vsel %vm495_vm4, %v975_v22, %v978_v49  ;;  %v983_v45 = vsel %vm495_vm4, %v978_v49, %v982_v27  ;;  %v1014_v53 = vperm.slane %v1012_v19, 0  ;;  %v158_v49 = vmul.f32 %v2453_v20, %v2052_v60 }
 0x3f9   : > { %v285_v22 = vadd.f32 %v2318_v43, %v159_v18  ;;  %v519_v27 = vsel %vm518_vm12, %v2312_v40, %v2310_v23 }
 0x3fa   : > { %v1897_v10 = vpack.i.bf16 %v1015_v57, %v1014_v53  ;;  %v2656_v57 = vpop.permute.xlu1 %932 }
 0x3fb   : > { %v529_v54 = vadd.f32 %v2310_v23, %v285_v22  ;;  %3229 = vst [vmem:[#allocation26_spill] sm:$0xff] %v2656_v57 }
 0x3fd   : > { %v767_v24 = vadd.f32 %v2457_v61, %v529_v54 }
 0x3ff   : > { %990 = vrot.lane.b32.xlu1 %v979_v30, %s1953_s7 }
 0x400   : > { %994 = vrot.lane.b32.xlu0 %v983_v45, %s1953_s7  ;;  %992 = vrot.lane.b32.xlu2 %v981_v32, %s1953_s7 }
 0x407   : > { %1898 = vrot.lane.b32.xlu1 %v1897_v10, %s1949_s27  ;;  %v275_v10 = vsel %vm274_vm13, %v2300_v4, %v2318_v43 }
 0x408   : > { %v284_v35 = vadd.f32 %v275_v10, %v158_v49 }
 0x40a   : > { %v528_v19 = vadd.f32 %v519_v27, %v284_v35 }
 0x40c   : > { %v766_v61 = vadd.f32 %v2463_v62, %v528_v19  ;;  %v3230_v19 = vunpack.c.h.bf16 %v2618_v31 }
 0x452   : > { %v987_v48 = vpop.permute.xlu2 %986 }
 0x453   : > { %v2652_v51 = vadd.f32 %v987_v48, %v767_v24 }
 0x469   : > { %v985_v30 = vpop.permute.xlu1 %984 }
 0x46a   : > { %v996_v45 = vsel %vm518_vm12, %v985_v30, %v987_v48  ;;  %v989_v53 = vpop.permute.xlu0 %988  ;;  %v3231_v30 = vunpack.c.l.bf16 %v2618_v31  ;;  %v3232_v31 = vunpack.c.l.bf16 %v2439_v9 }
 0x46b   : > { %v2666_v32 = vadd.f32 %v996_v45, %v766_v61 }
 0x471   : > { %v991_v18 = vpop.permute.xlu1 %990 }
 0x472   : > { %v997_v22 = vsel %vm518_vm12, %v989_v53, %v991_v18  ;;  %v2670_v54 = vadd.f32 %v991_v18, %v2472_v25 }
 0x473   : > { %v2673_v4 = vadd.f32 %v997_v22, %v2474_v26 }
 0x479   : > { %v1899_v23 = vpop.permute.xlu1 %1898 }
 0x47a   : > { %v1901_v40 = vunpack.i.h.bf16 %v1899_v23  ;;  %v1900_v43 = vunpack.i.l.bf16 %v1899_v23 }
 0x47c   : > { %v1022_v62 = vsel %vm426_vm6, %v1900_v43, %v1901_v40  ;;  %v1025_v24 = vmul.f32 %v1900_v43, %v2050_v59  ;;  %v1027_v48 = vmul.f32 %v1900_v43, %v2178_v36  ;;  %v1029_v45 = vmul.f32 %v1900_v43, %v3231_v30 }
 0x47d   : > { %v1026_v49 = vmul.f32 %v1022_v62, %v2083_v15  ;;  %v1028_v25 = vmul.f32 %v1022_v62, %v2223_v0  ;;  %v1030_v61 = vmul.f32 %v1022_v62, %v3230_v19  ;;  %v1080_v40 = vperm.slane %v3232_v31, 6  ;;  %v2708_v19 = vpop.permute.xlu0 %994 }
 0x47e   : > { %v1037_v10 = vrot.slane %v1025_v24, 5  ;;  %v1039_v27 = vrot.slane %v1027_v48, 5  ;;  %v1043_v18 = vrot.slane %v1029_v45, 5  ;;  %v3233_v43 = vunpack.c.h.bf16 %v2439_v9  ;;  %v2699_v48 = vpop.permute.xlu2 %992 }
 0x47f   : > { %v1038_v35 = vrot.slane %v1026_v49, 5  ;;  %v1041_v36 = vrot.slane %v1028_v25, 5  ;;  %v1045_v53 = vrot.slane %v1030_v61, 5  ;;  %v1075_v25 = vld [vmem:[%s2041_s3 + $0x14] sm:$0xf]  ;;  %v583_v31 = vsel %vm274_vm13, %v2282_v16, %v2302_v33 }
 0x480   : > { %1047 = vrot.lane.b32.xlu2 %v1037_v10, %s1952_s6  ;;  %v1040_v26 = vsel %vm560_vm7, %v1037_v10, %v1039_v27  ;;  %v1044_v23 = vsel %vm560_vm7, %v1039_v27, %v1043_v18  ;;  %v1081_v62 = vperm.slane %v3233_v43, 6  ;;  %v2710_v45 = vunpack.c.l.bf16 %v1075_v25 }
 0x481   : > { %1051 = vrot.lane.b32.xlu1 %v1040_v26, %s1952_s6  ;;  %1049 = vrot.lane.b32.xlu0 %v1038_v35, %s1952_s6  ;;  %v1042_v0 = vsel %vm560_vm7, %v1038_v35, %v1041_v36  ;;  %v1046_v22 = vsel %vm560_vm7, %v1041_v36, %v1045_v53  ;;  %v1074_v35 = vld [vmem:[%s2041_s3 + $0x8] sm:$0xc]  ;;  %v180_v36 = vmul.f32 %v2514_v46, %v2073_v8  ;;  %vm1525_vm6 = vcmask 982016   ;;  %s1961_s3 = smov 116  }
 0x482   : > { %v1902_v24 = vpack.i.bf16 %v1081_v62, %v1080_v40  ;;  %v2706_v26 = vunpack.c.l.bf16 %v1074_v35  ;;  %v179_v53 = vmul.f32 %v2511_v38, %v2052_v60  ;;  %vm1566_vm7 = vcmask 64512  }
 0x488   : > { %1053 = vrot.lane.b32.xlu2 %v1042_v0, %s1952_s6 }
 0x489   : > { %1057 = vrot.lane.b32.xlu1 %v1046_v22, %s1952_s6  ;;  %1055 = vrot.lane.b32.xlu0 %v1044_v23, %s1952_s6  ;;  %v336_v23 = vadd.f32 %v2278_v2, %v180_v36 }
 0x48b   : > { %v593_v35 = vadd.f32 %v2302_v33, %v336_v23 }
 0x48d   : > { %v827_v16 = vadd.f32 %v2516_v37, %v593_v35 }
 0x490   : > { %1903 = vrot.lane.b32.xlu2 %v1902_v24, %s1954_s20 }
 0x4da   : > { %v1048_v49 = vpop.permute.xlu2 %1047 }
 0x4e2   : > { %v1054_v10 = vpop.permute.xlu2 %1053 }
 0x4e3   : > { %v2702_v27 = vadd.f32 %v1054_v10, %v2535_v34  ;;  %v326_v34 = vsel %vm325_vm10, %v2284_v29, %v2278_v2 }
 0x4e4   : > { %v335_v43 = vadd.f32 %v326_v34, %v179_v53 }
 0x4e6   : > { %v592_v57 = vadd.f32 %v583_v31, %v335_v43 }
 0x4e8   : > { %v826_v36 = vadd.f32 %v2520_v42, %v592_v57 }
 0x4ea   : > { %v1904_v9 = vpop.permute.xlu2 %1903 }
 0x4eb   : > { %v1906_v61 = vunpack.i.h.bf16 %v1904_v9  ;;  %v1905_v30 = vunpack.i.l.bf16 %v1904_v9 }
 0x4ed   : > { %v1095_v18 = vmul.f32 %v1906_v61, %v2706_v26  ;;  %v1093_v0 = vmul.f32 %v1905_v30, %v2052_v60  ;;  %v1089_v22 = vsel %vm1088_vm0, %v1905_v30, %v1906_v61  ;;  %v1098_v24 = vmul.f32 %v1906_v61, %v2710_v45 }
 0x4ee   : > { %v1094_v40 = vmul.f32 %v1089_v22, %v2073_v8  ;;  %v1096_v9 = vmul.f32 %v1905_v30, %v2050_v59  ;;  %v1097_v2 = vmul.f32 %v1089_v22, %v2083_v15 }
 0x4ef   : > { %v1113_v62 = vrot.slane %v1095_v18, 7  ;;  %v1111_v29 = vrot.slane %v1093_v0, 7  ;;  %v1118_v33 = vrot.slane %v1098_v24, 7  ;;  %v2737_v18 = vunpack.c.l.bf16 %v1076_v13 }
 0x4f0   : > { %v1112_v25 = vrot.slane %v1094_v40, 7  ;;  %v1114_v40 = vrot.slane %v1096_v9, 7  ;;  %v1116_v35 = vrot.slane %v1097_v2, 7  ;;  %v1099_v24 = vmul.f32 %v1905_v30, %v2048_v58 }
 0x4f1   : > { %1130 = vrot.lane.b32.xlu2 %v1113_v62, %s1952_s6  ;;  %1126 = vrot.lane.b32.xlu0 %v1111_v29, %s1952_s6  ;;  %v1119_v42 = vsel %vm251_vm2, %v1113_v62, %v1118_v33  ;;  %v1101_v13 = vmul.f32 %v1906_v61, %v2737_v18  ;;  %v3234_v30 = vunpack.c.l.bf16 %v2363_v63 }
 0x4f2   : > { %1128 = vrot.lane.b32.xlu1 %v1112_v25, %s1952_s6  ;;  %v1115_v57 = vsel %vm251_vm2, %v1111_v29, %v1114_v40  ;;  %v1120_v9 = vrot.slane %v1099_v24, 7 }
 0x4f3   : > { %v1052_v34 = vpop.permute.xlu1 %1051  ;;  %v1050_v53 = vpop.permute.xlu0 %1049 }
 0x4f4   : > { %v1060_v0 = vsel %vm274_vm13, %v1052_v34, %v1054_v10  ;;  %v1059_v23 = vsel %vm274_vm13, %v1048_v49, %v1050_v53  ;;  %v2741_v31 = vadd.f32 %v1050_v53, %v827_v16  ;;  %v1117_v49 = vsel %vm251_vm2, %v1112_v25, %v1116_v35 }
 0x4f5   : > { %v2744_v43 = vadd.f32 %v1060_v0, %v2537_v11  ;;  %v2746_v37 = vadd.f32 %v1059_v23, %v826_v36  ;;  %v1100_v11 = vmul.f32 %v1089_v22, %v2067_v5  ;;  %v1124_v10 = vrot.slane %v1101_v13, 7 }
 0x4f6   : > { %v1121_v29 = vsel %vm251_vm2, %v1114_v40, %v1120_v9  ;;  %v1162_v25 = vperm.slane %v3234_v30, 5  ;;  %v3235_v22 = vunpack.c.h.bf16 %v2363_v63  ;;  %v391_v34 = vsel %vm390_vm9, %v2294_v6, %v2320_v14 }
 0x4f7   : > { %v1122_v2 = vrot.slane %v1100_v11, 7  ;;  %v1125_v62 = vsel %vm251_vm2, %v1118_v33, %v1124_v10  ;;  %v197_v33 = vmul.f32 %v2330_v47, %v2052_v60  ;;  %v198_v0 = vmul.f32 %v2337_v44, %v2073_v8 }
 0x4f8   : > { %v1163_v16 = vperm.slane %v3235_v22, 5 }
 0x4f9   : > { %1136 = vrot.lane.b32.xlu2 %v1119_v42, %s1952_s6  ;;  %1132 = vrot.lane.b32.xlu0 %v1115_v57, %s1952_s6  ;;  %v1123_v61 = vsel %vm251_vm2, %v1116_v35, %v1122_v2  ;;  %v400_v63 = vadd.f32 %v391_v34, %v197_v33  ;;  %v401_v40 = vadd.f32 %v2320_v14, %v198_v0  ;;  %v3236_v35 = vld [vmem:[#allocation5_spill] sm:$0xff]  ;;  %vm1291_vm2 = vcmask 457728  }
 0x4fa   : > { %1134 = vrot.lane.b32.xlu1 %v1117_v49, %s1952_s6  ;;  %v1907_v36 = vpack.i.bf16 %v1163_v16, %v1162_v25  ;;  %v644_v42 = vsel %vm325_vm10, %v3236_v35, %v2384_v55 }
 0x4fb   : > { %v2771_v53 = vpop.permute.xlu0 %1055  ;;  %v2777_v23 = vpop.permute.xlu1 %1057  ;;  %v654_v57 = vadd.f32 %v2384_v55, %v401_v40  ;;  %v653_v6 = vadd.f32 %v644_v42, %v400_v63 }
 0x4fd   : > { %v890_v49 = vadd.f32 %v2584_v52, %v653_v6  ;;  %v891_v11 = vadd.f32 %v2577_v7, %v654_v57 }
 0x501   : > { %1142 = vrot.lane.b32.xlu2 %v1125_v62, %s1952_s6  ;;  %1138 = vrot.lane.b32.xlu0 %v1121_v29, %s1952_s6 }
 0x502   : > { %1140 = vrot.lane.b32.xlu1 %v1123_v61, %s1952_s6 }
 0x509   : > { %1908 = vrot.lane.b32.xlu0 %v1907_v36, %s1954_s20 }
 0x54b   : > { %v1131_v13 = vpop.permute.xlu2 %1130 }
 0x553   : > { %v1137_v61 = vpop.permute.xlu2 %1136 }
 0x563   : > { %v1127_v24 = vpop.permute.xlu0 %1126 }
 0x564   : > { %v1129_v10 = vpop.permute.xlu1 %1128 }
 0x565   : > { %v1144_v9 = vsel %vm274_vm13, %v1127_v24, %v1129_v10  ;;  %v1145_v2 = vsel %vm274_vm13, %v1129_v10, %v1131_v13  ;;  %v3237_v13 = vld [vmem:[#allocation22_spill] sm:$0xff] }
 0x566   : > { %v2788_v62 = vadd.f32 %v1144_v9, %v890_v49  ;;  %v2790_v14 = vadd.f32 %v1145_v2, %v891_v11  ;;  %v3238_v24 = vunpack.c.l.bf16 %v3237_v13  ;;  %v3239_v11 = vunpack.c.h.bf16 %v3237_v13  ;;  %v2826_v2 = vpop.permute.xlu2 %1142 }
 0x568   : > { %v1228_v49 = vperm.slane %v3238_v24, 4  ;;  %v1229_v10 = vperm.slane %v3239_v11, 4 }
 0x56a   : > { %v1912_v9 = vpack.i.bf16 %v1229_v10, %v1228_v49 }
 0x56b   : > { %v1133_v29 = vpop.permute.xlu0 %1132 }
 0x56c   : > { %v1135_v30 = vpop.permute.xlu1 %1134 }
 0x56d   : > { %v1146_v55 = vsel %vm274_vm13, %v1133_v29, %v1135_v30  ;;  %v1147_v25 = vsel %vm274_vm13, %v1135_v30, %v1137_v61 }
 0x56e   : > { %v2795_v52 = vadd.f32 %v1146_v55, %v2580_v17  ;;  %v2798_v7 = vadd.f32 %v1147_v25, %v2563_v41 }
 0x573   : > { %v2800_v22 = vpop.permute.xlu0 %1138 }
 0x574   : > { %v2828_v29 = vpop.permute.xlu1 %1140 }
 0x57b   : > { %v1909_v16 = vpop.permute.xlu0 %1908 }
 0x57c   : > { %v1911_v36 = vunpack.i.h.bf16 %v1909_v16  ;;  %v1910_v34 = vunpack.i.l.bf16 %v1909_v16 }
 0x57e   : > { %v1176_v33 = vmul.f32 %v1911_v36, %v2706_v26  ;;  %v1174_v0 = vmul.f32 %v1910_v34, %v2052_v60  ;;  %v1170_v63 = vsel %vm1088_vm0, %v1910_v34, %v1911_v36  ;;  %v1179_v41 = vmul.f32 %v1911_v36, %v2710_v45 }
 0x57f   : > { %v1175_v40 = vmul.f32 %v1170_v63, %v2073_v8  ;;  %v1177_v17 = vmul.f32 %v1910_v34, %v2050_v59  ;;  %v1178_v35 = vmul.f32 %v1170_v63, %v2083_v15  ;;  %v1182_v42 = vmul.f32 %v1911_v36, %v2737_v18 }
 0x580   : > { %1196 = vrot.lane.b32.xlu0 %v1176_v33, %s1950_s4  ;;  %1192 = vrot.lane.b32.xlu1 %v1174_v0, %s1950_s4  ;;  %v1180_v57 = vmul.f32 %v1910_v34, %v2048_v58  ;;  %v1181_v6 = vmul.f32 %v1170_v63, %v2067_v5 }
 0x581   : > { %1194 = vrot.lane.b32.xlu2 %v1175_v40, %s1950_s4 }
 0x588   : > { %1202 = vrot.lane.b32.xlu0 %v1179_v41, %s1950_s4  ;;  %1198 = vrot.lane.b32.xlu1 %v1177_v17, %s1950_s4 }
 0x589   : > { %1200 = vrot.lane.b32.xlu2 %v1178_v35, %s1950_s4 }
 0x590   : > { %1208 = vrot.lane.b32.xlu0 %v1182_v42, %s1950_s4  ;;  %1204 = vrot.lane.b32.xlu1 %v1180_v57, %s1950_s4 }
 0x591   : > { %1206 = vrot.lane.b32.xlu2 %v1181_v6, %s1950_s4 }
 0x598   : > { %1913 = vrot.lane.b32.xlu1 %v1912_v9, %s1954_s20 }
 0x5db   : > { %v1195_v61 = vpop.permute.xlu2 %1194 }
 0x5e3   : > { %v1201_v33 = vpop.permute.xlu2 %1200 }
 0x5f2   : > { %v1197_v30 = vpop.permute.xlu0 %1196  ;;  %v1193_v55 = vpop.permute.xlu1 %1192 }
 0x5f3   : > { %v1211_v25 = vsel %vm325_vm10, %v1195_v61, %v1197_v30  ;;  %v1210_v16 = vsel %vm325_vm10, %v1193_v55, %v1195_v61 }
 0x5f4   : > { %v2833_v36 = vadd.f32 %v1211_v25, %v2606_v12  ;;  %v2836_v34 = vadd.f32 %v1210_v16, %v2608_v28 }
 0x5fa   : > { %v1203_v0 = vpop.permute.xlu0 %1202  ;;  %v1199_v63 = vpop.permute.xlu1 %1198 }
 0x5fb   : > { %v1213_v40 = vsel %vm325_vm10, %v1201_v33, %v1203_v0  ;;  %v1212_v41 = vsel %vm325_vm10, %v1199_v63, %v1201_v33 }
 0x5fc   : > { %v2841_v17 = vadd.f32 %v1213_v40, %v2612_v39  ;;  %v2844_v35 = vadd.f32 %v1212_v41, %v2615_v56 }
 0x5fe   : > { %3240 = vst [vmem:[#allocation5_spill] sm:$0xff] %v2841_v17  ;;  %v3248_v17 = vld [vmem:[#allocation24_spill] sm:$0xff] }
 0x602   : > { %v2846_v42 = vpop.permute.xlu1 %1204 }
 0x60a   : > { %v1914_v12 = vpop.permute.xlu1 %1913 }
 0x60b   : > { %v1916_v57 = vunpack.i.h.bf16 %v1914_v12  ;;  %v1915_v6 = vunpack.i.l.bf16 %v1914_v12 }
 0x60d   : > { %v1242_v28 = vmul.f32 %v1916_v57, %v2706_v26  ;;  %v1245_v13 = vmul.f32 %v1916_v57, %v2710_v45  ;;  %v1240_v24 = vmul.f32 %v1915_v6, %v2052_v60  ;;  %v1243_v49 = vmul.f32 %v1915_v6, %v2050_v59 }
 0x60e   : > { %v1236_v11 = vsel %vm1088_vm0, %v1915_v6, %v1916_v57  ;;  %v1248_v16 = vmul.f32 %v1916_v57, %v2737_v18  ;;  %v1246_v33 = vmul.f32 %v1915_v6, %v2048_v58 }
 0x60f   : > { %v1264_v39 = vrot.slane %v1242_v28, 1  ;;  %v1265_v10 = vrot.slane %v1245_v13, 1  ;;  %v1258_v9 = vrot.slane %v1240_v24, 1  ;;  %v1259_v56 = vrot.slane %v1243_v49, 1  ;;  %v2871_v24 = vld [vmem:[%s3177_s1 + $0x8] sm:$0x88] }
 0x610   : > { %v1241_v61 = vmul.f32 %v1236_v11, %v2073_v8  ;;  %v1244_v30 = vmul.f32 %v1236_v11, %v2083_v15  ;;  %v1247_v41 = vmul.f32 %v1236_v11, %v2067_v5  ;;  %v1271_v12 = vrot.slane %v1248_v16, 1  ;;  %v2882_v16 = vpop.permute.xlu0 %1208 }
 0x611   : > { %v1266_v55 = vsel %vm367_vm3, %v1264_v39, %v1265_v10  ;;  %v1260_v25 = vsel %vm367_vm3, %v1258_v9, %v1259_v56  ;;  %v1267_v28 = vrot.slane %v1246_v33, 1  ;;  %v1311_v11 = vunpack.c.l.bf16 %v2871_v24 }
 0x612   : > { %1277 = vrot.lane.b32.xlu1 %v1266_v55, %s1955_s21  ;;  %1273 = vrot.lane.b32.xlu2 %v1260_v25, %s1955_s21  ;;  %v1261_v0 = vrot.slane %v1241_v61, 1  ;;  %v1262_v63 = vrot.slane %v1244_v30, 1  ;;  %v1269_v13 = vrot.slane %v1247_v41, 1  ;;  %v1272_v57 = vsel %vm367_vm3, %v1265_v10, %v1271_v12  ;;  %v2880_v61 = vpop.permute.xlu2 %1206 }
 0x613   : > { %v1268_v6 = vsel %vm367_vm3, %v1259_v56, %v1267_v28  ;;  %v1312_v39 = vunpack.c.h.bf16 %v2871_v24  ;;  %v1313_v10 = vperm.slane %v1311_v11, 6 }
 0x614   : > { %v1263_v40 = vsel %vm367_vm3, %v1261_v0, %v1262_v63  ;;  %v1270_v49 = vsel %vm367_vm3, %v1262_v63, %v1269_v13  ;;  %vm1388_vm3 = vcmask 785408  }
 0x615   : > { %1275 = vrot.lane.b32.xlu0 %v1263_v40, %s1955_s21  ;;  %v1314_v9 = vperm.slane %v1312_v39, 6 }
 0x617   : > { %v1917_v56 = vpack.i.bf16 %v1314_v9, %v1313_v10  ;;  %v162_v9 = vmul.f32 %v2453_v20, %v2048_v58 }
 0x61a   : > { %1283 = vrot.lane.b32.xlu1 %v1272_v57, %s1955_s21  ;;  %1279 = vrot.lane.b32.xlu2 %v1268_v6, %s1955_s21 }
 0x61d   : > { %1281 = vrot.lane.b32.xlu0 %v1270_v49, %s1955_s21 }
 0x622   : > { %1289 = vrot.lane.b32.xlu1 %v1271_v12, %s1955_s21  ;;  %1285 = vrot.lane.b32.xlu2 %v1267_v28, %s1955_s21 }
 0x625   : > { %1287 = vrot.lane.b32.xlu0 %v1269_v13, %s1955_s21 }
 0x62a   : > { %1918 = vrot.lane.b32.xlu2 %v1917_v56, %s1956_s24 }
 0x66c   : > { %v1274_v30 = vpop.permute.xlu2 %1273 }
 0x674   : > { %v1280_v55 = vpop.permute.xlu2 %1279 }
 0x67c   : > { %v1286_v25 = vpop.permute.xlu2 %1285 }
 0x684   : > { %v1278_v33 = vpop.permute.xlu1 %1277  ;;  %v1919_v0 = vpop.permute.xlu2 %1918 }
 0x685   : > { %v1921_v63 = vunpack.i.h.bf16 %v1919_v0  ;;  %v1920_v40 = vunpack.i.l.bf16 %v1919_v0 }
 0x687   : > { %v1276_v41 = vpop.permute.xlu0 %1275  ;;  %v1328_v12 = vmul.f32 %v1921_v63, %v2706_v26  ;;  %v1326_v28 = vmul.f32 %v1920_v40, %v2052_v60  ;;  %v1322_v13 = vsel %vm1321_vm1, %v1920_v40, %v1921_v63 }
 0x688   : > { %v1292_v57 = vsel %vm1291_vm2, %v1274_v30, %v1276_v41  ;;  %v1293_v6 = vsel %vm1291_vm2, %v1276_v41, %v1278_v33  ;;  %v1327_v24 = vmul.f32 %v1322_v13, %v2073_v8  ;;  %v3243_v30 = vld [vmem:[#allocation10_spill] sm:$0xff]  ;;  %v3244_v33 = vld [vmem:[#allocation11_spill] sm:$0xff]  ;;  %v1330_v20 = vmul.f32 %v1322_v13, %v2083_v15 }
 0x689   : > { %v2890_v49 = vadd.f32 %v1292_v57, %v2666_v32  ;;  %v2893_v10 = vadd.f32 %v1293_v6, %v2652_v51  ;;  %1348 = vrot.lane.b32.xlu2 %v1328_v12, %s1955_s21  ;;  %1344 = vrot.lane.b32.xlu0 %v1326_v28, %s1955_s21  ;;  %v277_v0 = vsel %vm274_vm13, %v3244_v33, %v3243_v30  ;;  %v3245_v57 = vld [vmem:[#allocation12_spill] sm:$0xff]  ;;  %v3246_v6 = vld [vmem:[#allocation9_spill] sm:$0xff]  ;;  %v3247_v30 = vld [vmem:[#allocation23_spill] sm:$0xff] }
 0x68a   : > { %1346 = vrot.lane.b32.xlu1 %v1327_v24, %s1955_s21  ;;  %v1331_v32 = vmul.f32 %v1921_v63, %v2710_v45  ;;  %v1329_v51 = vmul.f32 %v1920_v40, %v2050_v59  ;;  %v521_v12 = vsel %vm518_vm12, %v3246_v6, %v3245_v57  ;;  %v759_v6 = vsel %vm518_vm12, %v3248_v17, %v3247_v30 }
 0x68b   : > { %3241 = vst [vmem:[#allocation22_spill] sm:$0xff] %v2890_v49  ;;  %v288_v49 = vadd.f32 %v277_v0, %v162_v9  ;;  %v998_v9 = vsel %vm518_vm12, %v2699_v48, %v2708_v19  ;;  %v1333_v17 = vmul.f32 %v1322_v13, %v2067_v5  ;;  %v1380_v48 = vperm.slane %v1311_v11, 7 }
 0x68c   : > { %3242 = vst [vmem:[#allocation27_spill] sm:$0xff] %v2893_v10  ;;  %v1284_v56 = vpop.permute.xlu1 %1283  ;;  %vm1721_vm12 = vcmask 523268  }
 0x68f   : > { %v1282_v41 = vpop.permute.xlu0 %1281 }
 0x690   : > { %v1294_v28 = vsel %vm1291_vm2, %v1280_v55, %v1282_v41  ;;  %v1295_v24 = vsel %vm1291_vm2, %v1282_v41, %v1284_v56  ;;  %v532_v55 = vadd.f32 %v521_v12, %v288_v49  ;;  %v1332_v41 = vmul.f32 %v1920_v40, %v2048_v58 }
 0x691   : > { %v2912_v10 = vadd.f32 %v1294_v28, %v2673_v4  ;;  %v2915_v33 = vadd.f32 %v1295_v24, %v2670_v54  ;;  %1354 = vrot.lane.b32.xlu2 %v1331_v32, %s1955_s21  ;;  %1350 = vrot.lane.b32.xlu0 %v1329_v51, %s1955_s21  ;;  %v1334_v54 = vmul.f32 %v1921_v63, %v2737_v18  ;;  %v1381_v49 = vperm.slane %v1312_v39, 7  ;;  %v3249_v39 = vld [vmem:[#allocation3_spill] sm:$0xff] }
 0x692   : > { %1352 = vrot.lane.b32.xlu1 %v1330_v20, %s1955_s21  ;;  %v770_v4 = vadd.f32 %v759_v6, %v532_v55  ;;  %v3250_v6 = vld [vmem:[#allocation2_spill] sm:$0xff] }
 0x693   : > { %v1922_v12 = vpack.i.bf16 %v1381_v49, %v1380_v48  ;;  %v328_v55 = vsel %vm325_vm10, %v3250_v6, %v3249_v39 }
 0x694   : > { %v1009_v56 = vadd.f32 %v998_v9, %v770_v4  ;;  %v2938_v63 = vpop.permute.xlu1 %1289  ;;  %v183_v4 = vmul.f32 %v2511_v38, %v2048_v58 }
 0x697   : > { %v2926_v0 = vpop.permute.xlu0 %1287 }
 0x698   : > { %v1296_v32 = vsel %vm1291_vm2, %v1286_v25, %v2926_v0 }
 0x699   : > { %v2933_v51 = vadd.f32 %v1296_v32, %v1009_v56  ;;  %1360 = vrot.lane.b32.xlu2 %v1334_v54, %s1955_s21  ;;  %1356 = vrot.lane.b32.xlu0 %v1332_v41, %s1955_s21  ;;  %v3251_v41 = vld [vmem:[#allocation14_spill] sm:$0xff]  ;;  %v3252_v32 = vld [vmem:[#allocation8_spill] sm:$0xff] }
 0x69a   : > { %1358 = vrot.lane.b32.xlu1 %v1333_v17, %s1955_s21  ;;  %v585_v17 = vsel %vm274_vm13, %v3252_v32, %v3251_v41 }
 0x6a1   : > { %1923 = vrot.lane.b32.xlu0 %v1922_v12, %s1957_s25 }
 0x6e3   : > { %v1349_v40 = vpop.permute.xlu2 %1348 }
 0x6eb   : > { %v1355_v56 = vpop.permute.xlu2 %1354 }
 0x6fb   : > { %v1345_v28 = vpop.permute.xlu0 %1344 }
 0x6fc   : > { %v1347_v25 = vpop.permute.xlu1 %1346 }
 0x6fd   : > { %v1362_v13 = vsel %vm1291_vm2, %v1345_v28, %v1347_v25  ;;  %v1363_v24 = vsel %vm1291_vm2, %v1347_v25, %v1349_v40  ;;  %v3253_v40 = vld [vmem:[#allocation25_spill] sm:$0xff]  ;;  %v1061_v25 = vsel %vm274_vm13, %v2771_v53, %v2777_v23 }
 0x6fe   : > { %v2943_v20 = vadd.f32 %v1362_v13, %v2746_v37  ;;  %v2946_v11 = vadd.f32 %v1363_v24, %v2741_v31  ;;  %v339_v31 = vadd.f32 %v328_v55, %v183_v4  ;;  %v819_v38 = vsel %vm274_vm13, %v3253_v40, %v2565_v1 }
 0x700   : > { %v596_v28 = vadd.f32 %v585_v17, %v339_v31 }
 0x702   : > { %v830_v13 = vadd.f32 %v819_v38, %v596_v28 }
 0x703   : > { %v1351_v9 = vpop.permute.xlu0 %1350 }
 0x704   : > { %v1353_v54 = vpop.permute.xlu1 %1352  ;;  %v1072_v6 = vadd.f32 %v1061_v25, %v830_v13 }
 0x705   : > { %v1364_v37 = vsel %vm1291_vm2, %v1351_v9, %v1353_v54  ;;  %v1365_v48 = vsel %vm1291_vm2, %v1353_v54, %v1355_v56 }
 0x706   : > { %v2959_v49 = vadd.f32 %v1364_v37, %v2744_v43  ;;  %v2962_v12 = vadd.f32 %v1365_v48, %v2702_v27  ;;  %v1447_v27 = vld [vmem:[%s3177_s1 + $0x10] sm:$0x11] }
 0x707   : > { %v1448_v32 = vunpack.c.l.bf16 %v1447_v27  ;;  %v1449_v53 = vunpack.c.h.bf16 %v1447_v27 }
 0x709   : > { %v1450_v40 = vperm.slane %v1448_v32, 0  ;;  %v1451_v38 = vperm.slane %v1449_v53, 0 }
 0x70b   : > { %v1357_v24 = vpop.permute.xlu0 %1356  ;;  %v1927_v28 = vpack.i.bf16 %v1451_v38, %v1450_v40 }
 0x70c   : > { %v2970_v9 = vpop.permute.xlu1 %1358 }
 0x70d   : > { %v1366_v43 = vsel %vm1291_vm2, %v1357_v24, %v2970_v9 }
 0x70e   : > { %v2974_v55 = vadd.f32 %v1366_v43, %v1072_v6 }
 0x713   : > { %v1924_v4 = vpop.permute.xlu0 %1923 }
 0x714   : > { %v1926_v56 = vunpack.i.h.bf16 %v1924_v4  ;;  %v1925_v54 = vunpack.i.l.bf16 %v1924_v4  ;;  %v2997_v4 = vpop.permute.xlu2 %1360 }
 0x716   : > { %v1395_v17 = vmul.f32 %v1926_v56, %v2706_v26  ;;  %v1393_v37 = vmul.f32 %v1925_v54, %v2052_v60  ;;  %v1389_v48 = vsel %vm1388_vm3, %v1925_v54, %v1926_v56  ;;  %v1396_v25 = vmul.f32 %v1925_v54, %v2050_v59 }
 0x717   : > { %v1394_v31 = vmul.f32 %v1389_v48, %v2073_v8  ;;  %v1397_v13 = vmul.f32 %v1389_v48, %v2083_v15  ;;  %v1398_v24 = vmul.f32 %v1926_v56, %v2710_v45  ;;  %v1400_v6 = vmul.f32 %v1389_v48, %v2067_v5 }
 0x718   : > { %1415 = vrot.lane.b32.xlu0 %v1395_v17, %s1955_s21  ;;  %1411 = vrot.lane.b32.xlu1 %v1393_v37, %s1955_s21  ;;  %v1399_v43 = vmul.f32 %v1925_v54, %v2048_v58  ;;  %v1401_v27 = vmul.f32 %v1926_v56, %v2737_v18  ;;  %v1517_v56 = vperm.slane %v1448_v32, 1 }
 0x719   : > { %1413 = vrot.lane.b32.xlu2 %v1394_v31, %s1955_s21 }
 0x720   : > { %1417 = vrot.lane.b32.xlu1 %v1396_v25, %s1955_s21  ;;  %1419 = vrot.lane.b32.xlu0 %v1397_v13, %s1955_s21  ;;  %v1518_v25 = vperm.slane %v1449_v53, 1 }
 0x721   : > { %1928 = vrot.lane.b32.xlu2 %v1927_v28, %s1958_s28 }
 0x722   : > { %v1932_v13 = vpack.i.bf16 %v1518_v25, %v1517_v56 }
 0x728   : > { %1421 = vrot.lane.b32.xlu1 %v1398_v24, %s1955_s21  ;;  %1425 = vrot.lane.b32.xlu0 %v1400_v6, %s1955_s21 }
 0x729   : > { %1423 = vrot.lane.b32.xlu2 %v1399_v43, %s1955_s21 }
 0x730   : > { %1427 = vrot.lane.b32.xlu1 %v1401_v27, %s1955_s21 }
 0x773   : > { %v1414_v17 = vpop.permute.xlu2 %1413 }
 0x77b   : > { %v1929_v37 = vpop.permute.xlu2 %1928 }
 0x77c   : > { %v1931_v31 = vunpack.i.h.bf16 %v1929_v37  ;;  %v1930_v40 = vunpack.i.l.bf16 %v1929_v37 }
 0x77e   : > { %v1465_v48 = vmul.f32 %v1931_v31, %v2706_v26  ;;  %v1463_v54 = vmul.f32 %v1930_v40, %v2052_v60  ;;  %v1459_v38 = vsel %vm1458_vm5, %v1930_v40, %v1931_v31  ;;  %v1466_v24 = vmul.f32 %v1930_v40, %v2050_v59 }
 0x77f   : > { %v1464_v28 = vmul.f32 %v1459_v38, %v2073_v8  ;;  %v1467_v6 = vmul.f32 %v1459_v38, %v2083_v15  ;;  %v1469_v56 = vmul.f32 %v1930_v40, %v2048_v58 }
 0x780   : > { %1485 = vrot.lane.b32.xlu1 %v1465_v48, %s1955_s21  ;;  %1481 = vrot.lane.b32.xlu2 %v1463_v54, %s1955_s21  ;;  %v1468_v54 = vmul.f32 %v1931_v31, %v2710_v45 }
 0x781   : > { %1483 = vrot.lane.b32.xlu0 %v1464_v28, %s1955_s21  ;;  %v1470_v28 = vmul.f32 %v1459_v38, %v2067_v5 }
 0x788   : > { %1933 = vrot.lane.b32.xlu1 %v1932_v13, %s1959_s29  ;;  %1487 = vrot.lane.b32.xlu2 %v1466_v24, %s1955_s21 }
 0x789   : > { %1489 = vrot.lane.b32.xlu0 %v1467_v6, %s1955_s21 }
 0x78a   : > { %v1416_v43 = vpop.permute.xlu0 %1415  ;;  %v1412_v27 = vpop.permute.xlu1 %1411 }
 0x78b   : > { %v1430_v37 = vsel %vm1291_vm2, %v1414_v17, %v1416_v43  ;;  %v1429_v32 = vsel %vm1291_vm2, %v1412_v27, %v1414_v17 }
 0x78c   : > { %v3012_v53 = vadd.f32 %v1430_v37, %v2790_v14  ;;  %v3015_v48 = vadd.f32 %v1429_v32, %v2788_v62  ;;  %v1471_v62 = vmul.f32 %v1931_v31, %v2737_v18 }
 0x790   : > { %1491 = vrot.lane.b32.xlu2 %v1468_v54, %s1955_s21  ;;  %1495 = vrot.lane.b32.xlu1 %v1470_v28, %s1955_s21 }
 0x791   : > { %1493 = vrot.lane.b32.xlu0 %v1469_v56, %s1955_s21 }
 0x792   : > { %v1418_v25 = vpop.permute.xlu1 %1417  ;;  %v1420_v17 = vpop.permute.xlu0 %1419 }
 0x793   : > { %v1431_v14 = vsel %vm1291_vm2, %v1418_v25, %v1420_v17 }
 0x794   : > { %v1443_v13 = vadd.f32 %v1431_v14, %v2795_v52 }
 0x798   : > { %1497 = vrot.lane.b32.xlu2 %v1471_v62, %s1955_s21 }
 0x79a   : > { %v1422_v24 = vpop.permute.xlu1 %1421  ;;  %v3033_v43 = vpop.permute.xlu0 %1425 }
 0x79b   : > { %v1432_v38 = vsel %vm1291_vm2, %v1420_v17, %v1422_v24 }
 0x79c   : > { %v3029_v40 = vadd.f32 %v1432_v38, %v2798_v7 }
 0x7a2   : > { %v3031_v6 = vpop.permute.xlu1 %1427 }
 0x7f2   : > { %v1486_v27 = vpop.permute.xlu1 %1485 }
 0x7f3   : > { %v3035_v37 = vpop.permute.xlu0 %1483 }
 0x7f4   : > { %v1500_v52 = vsel %vm1291_vm2, %v3035_v37, %v1486_v27 }
 0x7f5   : > { %v3040_v31 = vadd.f32 %v1500_v52, %v2833_v36 }
 0x7fa   : > { %v1934_v32 = vpop.permute.xlu1 %1933 }
 0x7fb   : > { %v1936_v54 = vunpack.i.h.bf16 %v1934_v32  ;;  %v1935_v28 = vunpack.i.l.bf16 %v1934_v32 }
 0x7fd   : > { %v1532_v7 = vmul.f32 %v1936_v54, %v2706_v26  ;;  %v1530_v56 = vmul.f32 %v1935_v28, %v2052_v60  ;;  %v1526_v25 = vsel %vm1525_vm6, %v1935_v28, %v1936_v54  ;;  %v1535_v14 = vmul.f32 %v1936_v54, %v2710_v45  ;;  %v1424_v45 = vpop.permute.xlu2 %1423 }
 0x7fe   : > { %v1531_v17 = vmul.f32 %v1526_v25, %v2073_v8  ;;  %v1533_v36 = vmul.f32 %v1935_v28, %v2050_v59  ;;  %v1534_v62 = vmul.f32 %v1526_v25, %v2083_v15  ;;  %v1538_v26 = vmul.f32 %v1936_v54, %v2737_v18 }
 0x7ff   : > { %1552 = vrot.lane.b32.xlu2 %v1532_v7, %s1960_s30  ;;  %1548 = vrot.lane.b32.xlu0 %v1530_v56, %s1960_s30  ;;  %v1536_v60 = vmul.f32 %v1935_v28, %v2048_v58  ;;  %v1537_v24 = vmul.f32 %v1526_v25, %v2067_v5  ;;  %v184_v8 = vmul.f32 %v2514_v46, %v2067_v5 }
 0x800   : > { %1550 = vrot.lane.b32.xlu1 %v1531_v17, %s1960_s30  ;;  %v1367_v18 = vsel %vm1291_vm2, %v2970_v9, %v2997_v4  ;;  %v3256_v9 = vld [vmem:[#allocation18_spill] sm:$0xff]  ;;  %v3257_v4 = vld [vmem:[#allocation15_spill] sm:$0xff]  ;;  %v1433_v56 = vsel %vm1291_vm2, %v1424_v45, %v3033_v43  ;;  %v3262_v45 = vld [vmem:[#allocation20_spill] sm:$0xff] }
 0x801   : > { %v340_v59 = vadd.f32 %v3249_v39, %v184_v8  ;;  %v3254_v39 = vld [vmem:[#allocation13_spill] sm:$0xff]  ;;  %v646_v32 = vsel %vm325_vm10, %v3257_v4, %v3256_v9 }
 0x803   : > { %v597_v38 = vadd.f32 %v3251_v41, %v340_v59  ;;  %v201_v41 = vmul.f32 %v2330_v47, %v2048_v58  ;;  %v1149_v47 = vsel %vm274_vm13, %v2828_v29, %v2826_v2 }
 0x805   : > { %v831_v15 = vadd.f32 %v2565_v1, %v597_v38  ;;  %v1482_v27 = vpop.permute.xlu2 %1481  ;;  %v3255_v1 = vld [vmem:[#allocation4_spill] sm:$0xff] }
 0x807   : > { %1558 = vrot.lane.b32.xlu2 %v1535_v14, %s1960_s30  ;;  %1554 = vrot.lane.b32.xlu0 %v1533_v36, %s1960_s30  ;;  %v1073_v46 = vadd.f32 %v2777_v23, %v831_v15  ;;  %v1490_v14 = vpop.permute.xlu0 %1489  ;;  %v3260_v36 = vld [vmem:[#allocation7_spill] sm:$0xff] }
 0x808   : > { %1556 = vrot.lane.b32.xlu1 %v1534_v62, %s1960_s30 }
 0x809   : > { %v1379_v52 = vadd.f32 %v1367_v18, %v1073_v46  ;;  %v1496_v18 = vpop.permute.xlu1 %1495 }
 0x80d   : > { %v1488_v23 = vpop.permute.xlu2 %1487 }
 0x80f   : > { %1564 = vrot.lane.b32.xlu2 %v1538_v26, %s1960_s30  ;;  %1560 = vrot.lane.b32.xlu0 %v1536_v60, %s1960_s30  ;;  %v3261_v26 = vld [vmem:[#allocation16_spill] sm:$0xff] }
 0x810   : > { %1562 = vrot.lane.b32.xlu1 %v1537_v24, %s1960_s30  ;;  %v222_v60 = vmul.f32 %v3261_v26, %v2048_v58  ;;  %v3264_v58 = vld [vmem:[#allocation26_spill] sm:$0xff] }
 0x811   : > { %v938_v46 = vsel %vm390_vm9, %v3264_v58, %v2647_v3 }
 0x817   : > { %1595 = vrot.lane.b32.xlu2 %v2959_v49, %s1961_s3  ;;  %1591 = vrot.lane.b32.xlu0 %v2943_v20, %s1961_s3  ;;  %v202_v20 = vmul.f32 %v2337_v44, %v2067_v5  ;;  %v883_v44 = vsel %vm325_vm10, %v2591_v50, %v2593_v21 }
 0x818   : > { %1593 = vrot.lane.b32.xlu1 %v2946_v11, %s1961_s3  ;;  %v393_v11 = vsel %vm390_vm9, %v3255_v1, %v3254_v39 }
 0x819   : > { %v405_v49 = vadd.f32 %v3254_v39, %v202_v20  ;;  %v1494_v20 = vpop.permute.xlu0 %1493  ;;  %v1214_v39 = vsel %vm325_vm10, %v2846_v42, %v2880_v61 }
 0x81f   : > { %1601 = vrot.lane.b32.xlu2 %v1379_v52, %s1961_s3  ;;  %1597 = vrot.lane.b32.xlu0 %v2962_v12, %s1961_s3  ;;  %v404_v12 = vadd.f32 %v393_v11, %v201_v41 }
 0x820   : > { %1599 = vrot.lane.b32.xlu1 %v2974_v55, %s1961_s3  ;;  %v658_v55 = vadd.f32 %v3256_v9, %v405_v49  ;;  %v3265_v9 = vld [vmem:[#allocation5_spill] sm:$0xff] }
 0x821   : > { %v657_v54 = vadd.f32 %v646_v32, %v404_v12 }
 0x822   : > { %v895_v28 = vadd.f32 %v2593_v21, %v658_v55  ;;  %v1492_v21 = vpop.permute.xlu2 %1491 }
 0x823   : > { %v894_v7 = vadd.f32 %v883_v44, %v657_v54  ;;  %v1502_v1 = vsel %vm1291_vm2, %v1490_v14, %v1492_v21 }
 0x824   : > { %v1161_v50 = vadd.f32 %v1149_v47, %v895_v28 }
 0x827   : > { %1629 = vrot.lane.b32.xlu2 %v1443_v13, %s1951_s5  ;;  %1625 = vrot.lane.b32.xlu0 %v3015_v48, %s1951_s5  ;;  %v1148_v13 = vsel %vm274_vm13, %v2800_v22, %v2828_v29  ;;  %v1434_v48 = vsel %vm1291_vm2, %v3033_v43, %v3031_v6  ;;  %v1499_v22 = vsel %vm1291_vm2, %v1482_v27, %v3035_v37  ;;  %v3259_v43 = vld [vmem:[#allocation6_spill] sm:$0xff]  ;;  %v3263_v37 = vld [vmem:[#allocation19_spill] sm:$0xff] }
 0x828   : > { %1627 = vrot.lane.b32.xlu1 %v3012_v53, %s1951_s5  ;;  %v1160_v2 = vadd.f32 %v1148_v13, %v894_v7  ;;  %v1446_v25 = vadd.f32 %v1434_v48, %v1161_v50  ;;  %v1501_v29 = vsel %vm1291_vm2, %v1488_v23, %v1490_v14  ;;  %v3258_v53 = vld [vmem:[#allocation17_spill] sm:$0xff]  ;;  %v459_v62 = vsel %vm390_vm9, %v3260_v36, %v3259_v43 }
 0x829   : > { %v223_v6 = vmul.f32 %v3258_v53, %v2067_v5  ;;  %v1513_v8 = vadd.f32 %v1501_v29, %v2844_v35  ;;  %v706_v59 = vsel %vm390_vm9, %v3263_v37, %v3262_v45  ;;  %v470_v38 = vadd.f32 %v459_v62, %v222_v60  ;;  %v3266_v14 = vld [vmem:[#allocation21_spill] sm:$0xff]  ;;  %v3269_v37 = vld [vmem:[#allocation22_spill] sm:$0xff] }
 0x82a   : > { %v1445_v17 = vadd.f32 %v1433_v56, %v1160_v2  ;;  %v1498_v52 = vpop.permute.xlu2 %1497 }
 0x82b   : > { %v471_v24 = vadd.f32 %v3259_v43, %v223_v6  ;;  %v717_v35 = vadd.f32 %v706_v59, %v470_v38  ;;  %v1504_v11 = vsel %vm1291_vm2, %v1496_v18, %v1498_v52  ;;  %v3267_v6 = vld [vmem:[#allocation10_spill] sm:$0xff] }
 0x82d   : > { %v718_v15 = vadd.f32 %v3262_v45, %v471_v24  ;;  %v949_v41 = vadd.f32 %v938_v46, %v717_v35 }
 0x82f   : > { %1635 = vrot.lane.b32.xlu2 %v1446_v25, %s1951_s5  ;;  %1631 = vrot.lane.b32.xlu0 %v3029_v40, %s1951_s5  ;;  %v1511_v40 = vadd.f32 %v1499_v22, %v2836_v34  ;;  %v1215_v34 = vsel %vm325_vm10, %v2880_v61, %v2882_v16  ;;  %v950_v27 = vadd.f32 %v2647_v3, %v718_v15 }
 0x830   : > { %1633 = vrot.lane.b32.xlu1 %v1445_v17, %s1951_s5  ;;  %v1503_v16 = vsel %vm1291_vm2, %v1494_v20, %v1496_v18  ;;  %v1226_v23 = vadd.f32 %v1214_v39, %v949_v41  ;;  %v1514_v3 = vadd.f32 %v1502_v1, %v3265_v9  ;;  %v163_v22 = vmul.f32 %v3266_v14, %v2067_v5 }
 0x831   : > { %v1227_v49 = vadd.f32 %v1215_v34, %v950_v27  ;;  %v1297_v5 = vsel %vm1291_vm2, %v2926_v0, %v2938_v63 }
 0x832   : > { %v1515_v32 = vadd.f32 %v1503_v16, %v1226_v23  ;;  %v289_v43 = vadd.f32 %v3267_v6, %v163_v22 }
 0x833   : > { %v1516_v4 = vadd.f32 %v1504_v11, %v1227_v49 }
 0x834   : > { %v533_v26 = vadd.f32 %v3245_v57, %v289_v43 }
 0x836   : > { %v771_v24 = vadd.f32 %v3247_v30, %v533_v26 }
 0x837   : > { %1662 = vrot.lane.b32.xlu2 %v1513_v8, %s1950_s4  ;;  %1658 = vrot.lane.b32.xlu0 %v1511_v40, %s1950_s4  ;;  %v3268_v40 = vld [vmem:[#allocation27_spill] sm:$0xff] }
 0x838   : > { %1660 = vrot.lane.b32.xlu1 %v3040_v31, %s1950_s4  ;;  %v1010_v38 = vadd.f32 %v2708_v19, %v771_v24 }
 0x83a   : > { %v1309_v35 = vadd.f32 %v1297_v5, %v1010_v38 }
 0x83f   : > { %1668 = vrot.lane.b32.xlu2 %v1516_v4, %s1950_s4  ;;  %1664 = vrot.lane.b32.xlu0 %v1514_v3, %s1950_s4 }
 0x840   : > { %1666 = vrot.lane.b32.xlu1 %v1515_v32, %s1950_s4  ;;  %s1790_s4 = sshll.u32 %s3271_s10, 4 }
 0x841   : > { %s143_s7 = scalar_lea.vmem %s3178_s2, %s1790_s4 }
 0x859   : > { %v1553_v42 = vpop.permute.xlu2 %1552 }
 0x861   : > { %v1559_v61 = vpop.permute.xlu2 %1558 }
 0x869   : > { %v1565_v55 = vpop.permute.xlu2 %1564 }
 0x871   : > { %v1549_v31 = vpop.permute.xlu0 %1548  ;;  %v1596_v54 = vpop.permute.xlu2 %1595 }
 0x872   : > { %v1551_v12 = vpop.permute.xlu1 %1550 }
 0x873   : > { %v1568_v36 = vsel %vm1566_vm7, %v1551_v12, %v1553_v42  ;;  %v1567_v60 = vsel %vm1566_vm7, %v1549_v31, %v1551_v12 }
 0x874   : > { %v1580_v8 = vadd.f32 %v1568_v36, %v3268_v40  ;;  %v1579_v59 = vadd.f32 %v1567_v60, %v3269_v37 }
 0x879   : > { %v1555_v44 = vpop.permute.xlu0 %1554  ;;  %v1602_v7 = vpop.permute.xlu2 %1601 }
 0x87a   : > { %v1557_v47 = vpop.permute.xlu1 %1556 }
 0x87b   : > { %v1570_v15 = vsel %vm1566_vm7, %v1557_v47, %v1559_v61  ;;  %v1569_v27 = vsel %vm1566_vm7, %v1555_v44, %v1557_v47 }
 0x87c   : > { %v1582_v0 = vadd.f32 %v1570_v15, %v2915_v33  ;;  %v1581_v49 = vadd.f32 %v1569_v27, %v2912_v10 }
 0x881   : > { %v1561_v28 = vpop.permute.xlu0 %1560  ;;  %v1630_v25 = vpop.permute.xlu2 %1629 }
 0x882   : > { %v1563_v13 = vpop.permute.xlu1 %1562 }
 0x883   : > { %v1572_v30 = vsel %vm1566_vm7, %v1563_v13, %v1565_v55  ;;  %v1571_v63 = vsel %vm1566_vm7, %v1561_v28, %v1563_v13 }
 0x884   : > { %v1584_v39 = vadd.f32 %v1572_v30, %v1309_v35  ;;  %v1583_v33 = vadd.f32 %v1571_v63, %v2933_v51 }
 0x886   : > { %v1618_v42 = vadd.f32 %v1602_v7, %v1584_v39 }
 0x889   : > { %v1592_v48 = vpop.permute.xlu0 %1591  ;;  %v1636_v29 = vpop.permute.xlu2 %1635 }
 0x88a   : > { %v1594_v50 = vpop.permute.xlu1 %1593  ;;  %v1651_v10 = vadd.f32 %v1636_v29, %v1618_v42 }
 0x88b   : > { %v1604_v45 = vsel %vm1603_vm8, %v1592_v48, %v1594_v50  ;;  %v1614_v18 = vadd.f32 %v1594_v50, %v1580_v8 }
 0x88c   : > { %v1613_v46 = vadd.f32 %v1604_v45, %v1579_v59 }
 0x891   : > { %v1598_v56 = vpop.permute.xlu0 %1597  ;;  %v1663_v57 = vpop.permute.xlu2 %1662 }
 0x892   : > { %v1600_v2 = vpop.permute.xlu1 %1599  ;;  %v1605_v1 = vsel %vm1603_vm8, %v1596_v54, %v1598_v56  ;;  %v1616_v23 = vadd.f32 %v1598_v56, %v1582_v0 }
 0x893   : > { %v1606_v9 = vsel %vm1603_vm8, %v1600_v2, %v1602_v7  ;;  %v1615_v4 = vadd.f32 %v1605_v1, %v1581_v49 }
 0x894   : > { %v1617_v12 = vadd.f32 %v1606_v9, %v1583_v33 }
 0x899   : > { %v1626_v17 = vpop.permute.xlu0 %1625  ;;  %v1669_v28 = vpop.permute.xlu2 %1668 }
 0x89a   : > { %v1628_v21 = vpop.permute.xlu1 %1627 }
 0x89b   : > { %v1637_v58 = vsel %vm390_vm9, %v1626_v17, %v1628_v21  ;;  %v1647_v52 = vadd.f32 %v1628_v21, %v1614_v18  ;;  %v1684_v17 = vadd.f32 %v1669_v28, %v1651_v10 }
 0x89c   : > { %v1646_v20 = vadd.f32 %v1637_v58, %v1613_v46 }
 0x8a1   : > { %v1632_v53 = vpop.permute.xlu0 %1631 }
 0x8a2   : > { %v1634_v62 = vpop.permute.xlu1 %1633  ;;  %v1638_v3 = vsel %vm390_vm9, %v1630_v25, %v1632_v53  ;;  %v1649_v61 = vadd.f32 %v1632_v53, %v1616_v23 }
 0x8a3   : > { %v1639_v31 = vsel %vm390_vm9, %v1634_v62, %v1636_v29  ;;  %v1648_v55 = vadd.f32 %v1638_v3, %v1615_v4  ;;  %vm1688_vm9 = vsmask.f32 1280 }
 0x8a4   : > { %v1650_v50 = vadd.f32 %v1639_v31, %v1617_v12  ;;  %vm1690_vm13 = vmor %vm1688_vm9, %vm1689_vm11 }
 0x8a9   : > { %v1659_v34 = vpop.permute.xlu0 %1658 }
 0x8aa   : > { %v1661_v19 = vpop.permute.xlu1 %1660 }
 0x8ab   : > { %v1670_v11 = vsel %vm325_vm10, %v1659_v34, %v1661_v19  ;;  %v1680_v41 = vadd.f32 %v1661_v19, %v1647_v52 }
 0x8ac   : > { %v1679_v16 = vadd.f32 %v1670_v11, %v1646_v20 }
 0x8ae   : > { %v1685_v32 = vpack.c.bf16 %v1680_v41, %v1679_v16 }
 0x8b0   : > { %v1692_v44 = vshrl.u32 %v1685_v32, 16  ;;  %v1695_v47 = vshll.u32 %v1685_v32, 16 }
 0x8b1   : > { %v1665_v54 = vpop.permute.xlu0 %1664 }
 0x8b2   : > { %v1671_v13 = vsel %vm325_vm10, %v1663_v57, %v1665_v54  ;;  %v1682_v48 = vadd.f32 %v1665_v54, %v1649_v61  ;;  %v1694_v56 = vrot.slane %v1692_v44, 6  ;;  %v1697_v51 = vrot.slane %v1695_v47, 7  ;;  %v1667_v25 = vpop.permute.xlu1 %1666 }
 0x8b3   : > { %v1681_v2 = vadd.f32 %v1671_v13, %v1648_v55  ;;  %v1672_v7 = vsel %vm325_vm10, %v1667_v25, %v1669_v28  ;;  %vm1722_vm10 = vmor %vm1721_vm12, %vm495_vm4 }
 0x8b4   : > { %v1683_v14 = vadd.f32 %v1672_v7, %v1650_v50  ;;  %v1698_v22 = vor.u32 %v1697_v51, %v1694_v56 }
 0x8b5   : > { %v1686_v21 = vpack.c.bf16 %v1682_v48, %v1681_v2 }
 0x8b6   : > { %v1687_v6 = vpack.c.bf16 %v1684_v17, %v1683_v14  ;;  %v1699_v60 = vrot.slane %v1698_v22, 4 }
 0x8b7   : > { %v1701_v53 = vshrl.u32 %v1686_v21, 16  ;;  %v1704_v29 = vshll.u32 %v1686_v21, 16 }
 0x8b8   : > { %v1711_v62 = vshrl.u32 %v1687_v6, 16  ;;  %v1714_v26 = vshll.u32 %v1687_v6, 16 }
 0x8b9   : > { %v1703_v43 = vrot.slane %v1701_v53, 6  ;;  %v1706_v36 = vrot.slane %v1704_v29, 7 }
 0x8ba   : > { %v1713_v40 = vrot.slane %v1711_v62, 6  ;;  %v1716_v8 = vrot.slane %v1714_v26, 7 }
 0x8bb   : > { %v1707_v24 = vor.u32 %v1706_v36, %v1703_v43 }
 0x8bc   : > { %v1717_v37 = vor.u32 %v1716_v8, %v1713_v40 }
 0x8bd   : > { %v1708_v45 = vsel %vm1690_vm13, %v1699_v60, %v1707_v24  ;;  %v1709_v5 = vrot.slane %v1707_v24, 4 }
 0x8be   : > { %1723 = vst.msk [vmem:[%s143_s7] sm:$0xff] %vm1722_vm10, %v1708_v45 }
 0x8bf   : > { %v1718_v59 = vsel %vm1690_vm13, %v1709_v5, %v1717_v37 }
 0x8c0   : > { %1724 = vst.msk [vmem:[%s143_s7 + $0x8] sm:$0xff] %vm1722_vm10, %v1718_v59 }
 0x8c1 PF: > { %s12_s9 = sadd.s32 1, %s1943_s9  }
 0x8c2   : > { %p9_p4 = scmp.ge.s32.totalorder %s12_s9, 4  }
 0x8c4   :  { %11 = sbr.rel (!%p9_p4) target bundleno = 1 (0x1), region = 58 }

// kernel: hglm_forward.3
= control target key start
LH: loop header
LB: loop body
LE: loop exit
PB: predicated region body
PF: predicated region fallthrough
CT: control target
= control target key end

     0   :  { %s2454_s27 = smov 0   ;;  %s3571_s0 = inlined_call_operand.vmem [shape: bf16[512,12], index: 0, kind: input, shape index: {}]   ;;  %s3572_s1 = inlined_call_operand.vmem [shape: f32[512,32], index: 1, kind: input, shape index: {}]   ;;  %s3573_s2 = inlined_call_operand.vmem [shape: bf16[32,128], index: 2, kind: input, shape index: {}]   ;;  %s3574_s3 = inlined_call_operand.vmem [shape: bf16[12,128], index: 3, kind: input, shape index: {}]   ;;  %s3575_s4 = inlined_call_operand.vmem [shape: f32[1,128], index: 4, kind: input, shape index: {}]   ;;  %s3576_s5 = inlined_call_operand.vmem [shape: bf16[128,32], index: 5, kind: input, shape index: {}]   ;;  %s3577_s6 = inlined_call_operand.vmem [shape: f32[1,32], index: 6, kind: input, shape index: {}]   ;;  %s3578_s7 = inlined_call_operand.vmem [shape: f32[1,32], index: 7, kind: input, shape index: {}]   ;;  %s3579_s8 = inlined_call_operand.vmem [shape: f32[512,32], index: 8, kind: output, shape index: {}]  }
   0x1 LB: > { %s2036_s28 = sadd.s32 4294967295, %s2406_s27   ;;  %p2040_p0 = scmp.ge.s32.totalorder %s2406_s27, 1  ;;  %s2406_s27 = sphi %s2454_s27, %s18_s27  }
   0x2   : > { %p274_p1 = scmp.lt.s32.totalorder %s2406_s27, 3 }
   0x4   : > { %p275_p2 = pnand %p2040_p0, %p274_p1 }
   0x6   : > { %278 = sbr.rel (%p275_p2) target bundleno = 592 (0x250), region = 52 }
   0xb   : > { %v2190_v0 = vld [vmem:[%s3573_s2 + $0x8] sm:$0xff]  ;;  %v2113_v1 = vld [vmem:[%s3574_s3] sm:$0xf]  ;;  %v2207_v2 = vld [vmem:[%s3574_s3] sm:$0x30]  ;;  %vm552_vm0 = vcmask 1045504  }
   0xc   : > { %v2114_v3 = vor.u32 %v2207_v2, %v2113_v1  ;;  %s2041_s13 = sshll.u32 %s2036_s28, 5  ;;  %712 = vmatpush.bf16.msra.mxu1 %v2190_v0  ;;  %v2189_v4 = vld [vmem:[%s3573_s2] sm:$0xff]  ;;  %vm503_vm1 = vcmask 97280   ;;  %vm657_vm2 = vcmask 261120   ;;  %v2215_v50 = vld [vmem:[%s3576_s5 + $0x38] sm:$0xff]  ;;  %v2214_v53 = vld [vmem:[%s3576_s5 + $0x30] sm:$0xff] }
   0xd   : > { %p314_p3 = scmp.lt.s32.totalorder %s2041_s13, 63  ;;  %1743 = vmatpush.bf16.msra.mxu2 %v2215_v50  ;;  %v2557_v56 = vld [vmem:[%s3575_s4] ss:$0 sm:$0xff]  ;;  %v2213_v60 = vld [vmem:[%s3576_s5 + $0x28] sm:$0xff] }
   0xe   : > { %v554_v5 = vsel %vm552_vm0, %v2114_v3, 0  ;;  %v2212_v63 = vld [vmem:[%s3576_s5 + $0x20] sm:$0xff] }
   0xf   : > { %563 = vmatpush.bf16.msra.mxu0 %v554_v5  ;;  %s3628_s13 = smov (!%p314_p3, %s2041_s13), 63  ;;  %2216 = vmatpush.bf16.msra.mxu3 %v554_v5  ;;  %v2211_v5 = vld [vmem:[%s3576_s5 + $0x18] sm:$0xff] }
  0x10   : > { %713 = vmatpush.bf16.msra.mxu1 %v2189_v4  ;;  %s2042_s16 = sshll.u32 %s3628_s13, 2  ;;  %s2044_s17 = sshll.u32 %s3628_s13, 3 }
  0x11   : > { %s2481_s20 = scalar_lea.vmem %s3571_s0, %s2042_s16  ;;  %s2488_s23 = scalar_lea.vmem %s3572_s1, %s2044_s17  ;;  %1744 = vmatpush.bf16.msra.mxu2 %v2214_v53 }
  0x12   : > { %v2191_v6 = vld [vmem:[%s2481_s20] sm:$0xff]  ;;  %v333_v8 = vld [vmem:[%s2488_s23 + $0x8] sm:$0xff]  ;;  %v334_v10 = vld [vmem:[%s2488_s23 + $0x10] sm:$0xff]  ;;  %s3243_s11 = scalar_lea.vmem %s3579_s8, %s2044_s17 }
  0x13   : > { %2217 = vmatpush.bf16.msrb.mxu3 %v2190_v0  ;;  %v332_v7 = vld [vmem:[%s2488_s23] sm:$0xff]  ;;  %2115 = vmatmul.msk.bf16.vlgmr.msra.gmra.mxu0 %vm503_vm1, %v2191_v6  ;;  %v335_v11 = vld [vmem:[%s2488_s23 + $0x18] sm:$0xff]  ;;  %v2192_v12 = vld [vmem:[%s2481_s20 + $0x8] sm:$0xff] }
  0x14   : > { %v364_v9 = vpack.c.bf16 %v333_v8, %v332_v7  ;;  %v365_v13 = vpack.c.bf16 %v335_v11, %v334_v10  ;;  %v2204_v14 = vld [vmem:[%s2481_s20 + $0x68] sm:$0xff]  ;;  %v336_v15 = vld [vmem:[%s2488_s23 + $0x20] sm:$0xff]  ;;  %v2193_v17 = vld [vmem:[%s2481_s20 + $0x10] sm:$0xff] }
  0x15   : > { %2128 = vmatmul.msk.bf16.vlgmr.msra.gmra.mxu3 %vm503_vm1, %v2204_v14  ;;  %v337_v16 = vld [vmem:[%s2488_s23 + $0x28] sm:$0xff]  ;;  %v2205_v19 = vld [vmem:[%s2481_s20 + $0x70] sm:$0xff]  ;;  %v339_v21 = vld [vmem:[%s2488_s23 + $0x38] sm:$0xff]  ;;  %1745 = vmatpush.bf16.msra.mxu2 %v2213_v60 }
  0x16   : > { %2139 = vmatmul.msk.bf16.vlgmr.msra.gmra.mxu1 %vm657_vm2, %v364_v9  ;;  %v366_v18 = vpack.c.bf16 %v337_v16, %v336_v15  ;;  %v338_v20 = vld [vmem:[%s2488_s23 + $0x30] sm:$0xff]  ;;  %v2194_v22 = vld [vmem:[%s2481_s20 + $0x18] sm:$0xff]  ;;  %v340_v25 = vld [vmem:[%s2488_s23 + $0x40] sm:$0xff] }
  0x17   : > { %2218 = vmatpush.bf16.msrb.mxu3 %v2189_v4  ;;  %v367_v23 = vpack.c.bf16 %v339_v21, %v338_v20  ;;  %v2206_v24 = vld [vmem:[%s2481_s20 + $0x78] sm:$0xff]  ;;  %v341_v26 = vld [vmem:[%s2488_s23 + $0x48] sm:$0xff]  ;;  %v2195_v27 = vld [vmem:[%s2481_s20 + $0x20] sm:$0xff] }
  0x18   : > { %v368_v28 = vpack.c.bf16 %v341_v26, %v340_v25  ;;  %v358_v29 = vld [vmem:[%s2488_s23 + $0xd0] sm:$0xff]  ;;  %v359_v30 = vld [vmem:[%s2488_s23 + $0xd8] sm:$0xff]  ;;  %v2196_v34 = vld [vmem:[%s2481_s20 + $0x28] sm:$0xff] }
  0x19   : > { %v377_v31 = vpack.c.bf16 %v359_v30, %v358_v29  ;;  %v342_v32 = vld [vmem:[%s2488_s23 + $0x50] sm:$0xff]  ;;  %v343_v33 = vld [vmem:[%s2488_s23 + $0x58] sm:$0xff]  ;;  %v360_v36 = vld [vmem:[%s2488_s23 + $0xe0] sm:$0xff]  ;;  %1746 = vmatpush.bf16.msra.mxu2 %v2212_v63 }
  0x1a   : > { %v369_v35 = vpack.c.bf16 %v343_v33, %v342_v32  ;;  %v361_v37 = vld [vmem:[%s2488_s23 + $0xe8] sm:$0xff]  ;;  %v344_v39 = vld [vmem:[%s2488_s23 + $0x60] sm:$0xff]  ;;  %v2197_v41 = vld [vmem:[%s2481_s20 + $0x30] sm:$0xff] }
  0x1b   : > { %v378_v38 = vpack.c.bf16 %v361_v37, %v360_v36  ;;  %v345_v40 = vld [vmem:[%s2488_s23 + $0x68] sm:$0xff]  ;;  %v362_v43 = vld [vmem:[%s2488_s23 + $0xf0] sm:$0xff]  ;;  %v363_v44 = vld [vmem:[%s2488_s23 + $0xf8] sm:$0xff]  ;;  %2219 = vmatpush.bf16.msra.mxu3 %v2215_v50 }
  0x1c   : > { %v370_v42 = vpack.c.bf16 %v345_v40, %v344_v39  ;;  %v346_v45 = vld [vmem:[%s2488_s23 + $0x70] sm:$0xff]  ;;  %v347_v46 = vld [vmem:[%s2488_s23 + $0x78] sm:$0xff]  ;;  %v379_v47 = vpack.c.bf16 %v363_v44, %v362_v43  ;;  %v348_v51 = vld [vmem:[%s2488_s23 + $0x80] sm:$0xff] }
  0x1d   : > { %v2198_v48 = vld [vmem:[%s2481_s20 + $0x38] sm:$0xff]  ;;  %v371_v49 = vpack.c.bf16 %v347_v46, %v346_v45  ;;  %v349_v52 = vld [vmem:[%s2488_s23 + $0x88] sm:$0xff]  ;;  %v2199_v54 = vld [vmem:[%s2481_s20 + $0x40] sm:$0xff]  ;;  %1747 = vmatpush.bf16.msra.mxu2 %v2211_v5 }
  0x1e   : > { %v372_v57 = vpack.c.bf16 %v349_v52, %v348_v51  ;;  %v350_v8 = vld [vmem:[%s2488_s23 + $0x90] sm:$0xff]  ;;  %v351_v9 = vld [vmem:[%s2488_s23 + $0x98] sm:$0xff]  ;;  %v2208_v26 = vld [vmem:[%s3576_s5] sm:$0xff] }
  0x1f   : > { %2220 = vmatpush.bf16.msra.mxu3 %v2214_v53  ;;  %v2210_v11 = vld [vmem:[%s3576_s5 + $0x10] sm:$0xff]  ;;  %v373_v15 = vpack.c.bf16 %v351_v9, %v350_v8 }
  0x20   : > { %v2201_v46 = vld [vmem:[%s2481_s20 + $0x50] sm:$0xff] }
  0x21   : > { %1748 = vmatpush.bf16.msra.mxu2 %v2210_v11 }
  0x23   : > { %2116 = vmatmul.msk.bf16.gmra.mxu0 %vm503_vm1, %v2192_v12  ;;  %2221 = vmatpush.bf16.msra.mxu3 %v2213_v60  ;;  %v2200_v12 = vld [vmem:[%s2481_s20 + $0x48] sm:$0xff] }
  0x25   : > { %2129 = vmatmul.msk.bf16.gmra.mxu3 %vm503_vm1, %v2205_v19  ;;  %v2209_v19 = vld [vmem:[%s3576_s5 + $0x8] sm:$0xff] }
  0x26   : > { %2140 = vmatmul.msk.bf16.gmra.mxu1 %vm657_vm2, %v365_v13  ;;  %1749 = vmatpush.bf16.msra.mxu2 %v2209_v19 }
  0x27   : > { %2222 = vmatpush.bf16.msra.mxu3 %v2212_v63 }
  0x2a   : > { %1750 = vmatpush.bf16.msra.mxu2 %v2208_v26 }
  0x2b   : > { %2223 = vmatpush.bf16.msra.mxu3 %v2211_v5 }
  0x2f   : > { %2224 = vmatpush.bf16.msra.mxu3 %v2210_v11 }
  0x33   : > { %2117 = vmatmul.msk.bf16.gmra.mxu0 %vm503_vm1, %v2193_v17  ;;  %2225 = vmatpush.bf16.msra.mxu3 %v2209_v19 }
  0x35   : > { %2130 = vmatmul.msk.bf16.gmra.mxu3 %vm503_vm1, %v2206_v24 }
  0x36   : > { %2141 = vmatmul.msk.bf16.gmra.mxu1 %vm657_vm2, %v366_v18 }
  0x37   : > { %2226 = vmatpush.bf16.msra.mxu3 %v2208_v26 }
  0x43   : > { %2118 = vmatmul.msk.bf16.gmra.mxu0 %vm503_vm1, %v2194_v22 }
  0x45   : > { %2152 = vmatmul.msk.bf16.vlgmr.msrb.gmra.mxu3 %vm657_vm2, %v377_v31 }
  0x46   : > { %2142 = vmatmul.msk.bf16.gmra.mxu1 %vm657_vm2, %v367_v23 }
  0x53   : > { %2119 = vmatmul.msk.bf16.gmra.mxu0 %vm503_vm1, %v2195_v27 }
  0x55   : > { %2153 = vmatmul.msk.bf16.gmra.mxu3 %vm657_vm2, %v378_v38 }
  0x56   : > { %2143 = vmatmul.msk.bf16.gmra.mxu1 %vm657_vm2, %v368_v28 }
  0x63   : > { %2120 = vmatmul.msk.bf16.gmra.mxu0 %vm503_vm1, %v2196_v34 }
  0x65   : > { %2154 = vmatmul.msk.bf16.gmra.mxu3 %vm657_vm2, %v379_v47 }
  0x66   : > { %2144 = vmatmul.msk.bf16.gmra.mxu1 %vm657_vm2, %v369_v35 }
  0x73   : > { %2121 = vmatmul.msk.bf16.gmra.mxu0 %vm503_vm1, %v2197_v41  ;;  %v352_v41 = vld [vmem:[%s2488_s23 + $0xa0] sm:$0xff] }
  0x76   : > { %2145 = vmatmul.msk.bf16.gmra.mxu1 %vm657_vm2, %v370_v42  ;;  %v353_v42 = vld [vmem:[%s2488_s23 + $0xa8] sm:$0xff] }
  0x77   : > { %v374_v52 = vpack.c.bf16 %v353_v42, %v352_v41 }
  0x83   : > { %2122 = vmatmul.msk.bf16.gmra.mxu0 %vm503_vm1, %v2198_v48 }
  0x86   : > { %2146 = vmatmul.msk.bf16.gmra.mxu1 %vm657_vm2, %v371_v49 }
  0x90   : > { %v565_v55 = vpop.f32.mrf.mxu0 }
  0x93   : > { %v715_v58 = vpop.f32.mrf.mxu1  ;;  %2123 = vmatmul.msk.bf16.gmra.mxu0 %vm503_vm1, %v2199_v54 }
  0x94   : > { %v716_v59 = vadd.f32 %v715_v58, %v565_v55 }
  0x96   : > { %v2564_v61 = vadd.f32 %v2557_v56, %v716_v59  ;;  %2147 = vmatmul.msk.bf16.gmra.mxu1 %vm657_vm2, %v372_v57 }
  0x98   : > { %v2568_v62 = vmul.f32 0.70710677, %v2564_v61  ;;  %v567_v1 = vpop.f32.mrf.mxu0  ;;  %v2622_v59 = vpop.f32.mrf.mxu3 }
  0x9a   : > { %v959_v0 = vand.u32 2147483647, %v2568_v62  ;;  %vm895_vm3 = vcmp.ge.f32.partialorder %v2568_v62, 0.0  ;;  %v355_v62 = vld [vmem:[%s2488_s23 + $0xb8] sm:$0xff] }
  0x9b   : > { %v717_v2 = vpop.f32.mrf.mxu1 }
  0x9c   : > { %v991_v3 = vmul.f32 0.3275911, %v959_v0  ;;  %v718_v4 = vadd.f32 %v717_v2, %v567_v1  ;;  %v1375_v21 = vsub.f32 0.0, %v959_v0 }
  0x9e   : > { %v1023_v6 = vadd.f32 1.0, %v991_v3  ;;  %v2578_v7 = vadd.f32 %v2557_v56, %v718_v4  ;;  %v1407_v28 = vmul.f32 %v1375_v21, %v959_v0 }
  0xa0   : > { %2239 = vrcp.f32 %v1023_v6  ;;  %v2583_v10 = vmul.f32 0.70710677, %v2578_v7  ;;  %v570_v14 = vpop.f32.mrf.mxu0  ;;  %v1439_v37 = vmul.f32 1.442695, %v1407_v28  ;;  %v2643_v26 = vpop.f32.mrf.mxu3 }
  0xa2   : > { %v960_v13 = vand.u32 2147483647, %v2583_v10  ;;  %vm896_vm4 = vcmp.ge.f32.partialorder %v2583_v10, 0.0 }
  0xa3   : > { %v720_v16 = vpop.f32.mrf.mxu1  ;;  %2124 = vmatmul.msk.bf16.gmra.mxu0 %vm503_vm1, %v2200_v12 }
  0xa4   : > { %v992_v17 = vmul.f32 0.3275911, %v960_v13  ;;  %v721_v18 = vadd.f32 %v720_v16, %v570_v14  ;;  %v1376_v38 = vsub.f32 0.0, %v960_v13 }
  0xa6   : > { %v2240_v20 = vpop.eup %2239  ;;  %v1024_v22 = vadd.f32 1.0, %v992_v17  ;;  %v2595_v23 = vadd.f32 %v2557_v56, %v721_v18  ;;  %2148 = vmatmul.msk.bf16.gmra.mxu1 %vm657_vm2, %v373_v15  ;;  %v1408_v49 = vmul.f32 %v1376_v38, %v960_v13 }
  0xa7   : > { %v1087_v24 = vmul.f32 1.0614054, %v2240_v20 }
  0xa8   : > { %2241 = vrcp.f32 %v1024_v22  ;;  %v2599_v25 = vmul.f32 0.70710677, %v2595_v23  ;;  %v572_v30 = vpop.f32.mrf.mxu0  ;;  %v1441_v1 = vmul.f32 1.442695, %v1408_v49 }
  0xa9   : > { %v1119_v27 = vadd.f32 -1.4531521, %v1087_v24 }
  0xaa   : > { %v961_v29 = vand.u32 2147483647, %v2599_v25  ;;  %vm897_vm5 = vcmp.ge.f32.partialorder %v2599_v25, 0.0  ;;  %v356_v25 = vld [vmem:[%s2488_s23 + $0xc0] sm:$0xff] }
  0xab   : > { %v722_v31 = vpop.f32.mrf.mxu1  ;;  %v1151_v32 = vmul.f32 %v2240_v20, %v1119_v27 }
  0xac   : > { %v993_v33 = vmul.f32 0.3275911, %v961_v29  ;;  %v723_v34 = vadd.f32 %v722_v31, %v572_v30  ;;  %v1377_v2 = vsub.f32 0.0, %v961_v29 }
  0xad   : > { %v1183_v35 = vadd.f32 1.4214138, %v1151_v32 }
  0xae   : > { %v2605_v36 = vpop.eup %2241  ;;  %v1025_v39 = vadd.f32 1.0, %v993_v33  ;;  %v2608_v40 = vadd.f32 %v2557_v56, %v723_v34  ;;  %v1409_v15 = vmul.f32 %v1377_v2, %v961_v29  ;;  %v354_v34 = vld [vmem:[%s2488_s23 + $0xb0] sm:$0xff] }
  0xaf   : > { %v1088_v43 = vmul.f32 1.0614054, %v2605_v36  ;;  %v1215_v44 = vmul.f32 %v2240_v20, %v1183_v35  ;;  %v3583_v35 = vmov -1.0  }
  0xb0   : > { %2243 = vrcp.f32 %v1025_v39  ;;  %v2614_v45 = vmul.f32 0.70710677, %v2608_v40  ;;  %v575_v51 = vpop.f32.mrf.mxu0  ;;  %v1443_v30 = vmul.f32 1.442695, %v1409_v15 }
  0xb1   : > { %v1120_v47 = vadd.f32 -1.4531521, %v1088_v43  ;;  %v1247_v48 = vadd.f32 -0.28449672, %v1215_v44  ;;  %2245 = vpow2.f32 %v1439_v37  ;;  %v927_v37 = vsel %vm895_vm3, 1.0, %v3583_v35 }
  0xb2   : > { %v2618_v50 = vand.u32 2147483647, %v2614_v45  ;;  %vm898_vm6 = vcmp.ge.f32.partialorder %v2614_v45, 0.0 }
  0xb3   : > { %v725_v53 = vpop.f32.mrf.mxu1  ;;  %v1152_v54 = vmul.f32 %v2605_v36, %v1120_v47  ;;  %v1279_v55 = vmul.f32 %v2240_v20, %v1247_v48  ;;  %2125 = vmatmul.msk.bf16.gmra.mxu0 %vm503_vm1, %v2201_v46  ;;  %v2202_v46 = vld [vmem:[%s2481_s20 + $0x58] sm:$0xff] }
  0xb4   : > { %v994_v57 = vmul.f32 0.3275911, %v2618_v50  ;;  %v726_v58 = vadd.f32 %v725_v53, %v575_v51  ;;  %v1378_v31 = vsub.f32 0.0, %v2618_v50  ;;  %v375_v53 = vpack.c.bf16 %v355_v62, %v354_v34 }
  0xb5   : > { %v1184_v60 = vadd.f32 1.4214138, %v1152_v54  ;;  %v1311_v63 = vadd.f32 0.2548296, %v1279_v55  ;;  %v831_v54 = vmul.f32 0.5, %v2564_v61  ;;  %v832_v61 = vmul.f32 0.5, %v2578_v7 }
  0xb6   : > { %v2625_v0 = vpop.eup %2243  ;;  %v1026_v3 = vadd.f32 1.0, %v994_v57  ;;  %v2628_v4 = vadd.f32 %v2557_v56, %v726_v58  ;;  %2149 = vmatmul.msk.bf16.gmra.mxu1 %vm657_vm2, %v374_v52  ;;  %v1410_v51 = vmul.f32 %v1378_v31, %v2618_v50  ;;  %v928_v50 = vsel %vm896_vm4, 1.0, %v3583_v35 }
  0xb7   : > { %v1216_v5 = vmul.f32 %v2605_v36, %v1184_v60  ;;  %v1343_v6 = vmul.f32 %v2240_v20, %v1311_v63  ;;  %v1089_v8 = vmul.f32 1.0614054, %v2625_v0  ;;  %v2246_v9 = vpop.eup %2245 }
  0xb8   : > { %2247 = vrcp.f32 %v1026_v3  ;;  %v2634_v11 = vmul.f32 0.70710677, %v2628_v4  ;;  %v577_v17 = vpop.f32.mrf.mxu0  ;;  %v2673_v3 = vpop.f32.mrf.mxu3 }
  0xb9   : > { %v1248_v12 = vadd.f32 -0.28449672, %v1216_v5  ;;  %v1503_v13 = vmul.f32 %v2246_v9, %v1343_v6  ;;  %v1121_v14 = vadd.f32 -1.4531521, %v1089_v8  ;;  %2249 = vpow2.f32 %v1441_v1 }
  0xba   : > { %v2637_v16 = vand.u32 2147483647, %v2634_v11  ;;  %vm899_vm7 = vcmp.ge.f32.partialorder %v2634_v11, 0.0 }
  0xbb   : > { %v727_v18 = vpop.f32.mrf.mxu1  ;;  %v1280_v19 = vmul.f32 %v2605_v36, %v1248_v12  ;;  %v1153_v20 = vmul.f32 %v2625_v0, %v1121_v14  ;;  %v1535_v24 = vsub.f32 1.0, %v1503_v13  ;;  %v1445_v12 = vmul.f32 1.442695, %v1410_v51 }
  0xbc   : > { %v995_v21 = vmul.f32 0.3275911, %v2637_v16  ;;  %v728_v22 = vadd.f32 %v727_v18, %v577_v17  ;;  %v1379_v13 = vsub.f32 0.0, %v2637_v16 }
  0xbd   : > { %v1312_v27 = vadd.f32 0.2548296, %v1280_v19  ;;  %v1185_v28 = vadd.f32 1.4214138, %v1153_v20  ;;  %v1567_v44 = vmul.f32 %v1535_v24, %v927_v37 }
  0xbe   : > { %v2645_v29 = vpop.eup %2247  ;;  %v1027_v32 = vadd.f32 1.0, %v995_v21  ;;  %v2649_v33 = vadd.f32 %v2557_v56, %v728_v22 }
  0xbf   : > { %v1344_v38 = vmul.f32 %v2605_v36, %v1312_v27  ;;  %v1090_v39 = vmul.f32 1.0614054, %v2645_v29  ;;  %v1217_v41 = vmul.f32 %v2625_v0, %v1185_v28  ;;  %v2250_v42 = vpop.eup %2249  ;;  %v1599_v2 = vadd.f32 1.0, %v1567_v44 }
  0xc0   : > { %2251 = vrcp.f32 %v1027_v32  ;;  %v2658_v43 = vmul.f32 0.70710677, %v2649_v33  ;;  %v580_v52 = vpop.f32.mrf.mxu0 }
  0xc1   : > { %v1504_v47 = vmul.f32 %v2250_v42, %v1344_v38  ;;  %v1122_v48 = vadd.f32 -1.4531521, %v1090_v39  ;;  %v1249_v49 = vadd.f32 -0.28449672, %v1217_v41  ;;  %2253 = vpow2.f32 %v1443_v30  ;;  %v2698_v42 = vpop.f32.mrf.mxu3 }
  0xc2   : > { %v2664_v36 = vand.u32 2147483647, %v2658_v43  ;;  %v1631_v21 = vmul.f32 %v1599_v2, %v831_v54  ;;  %v1411_v30 = vmul.f32 %v1379_v13, %v2637_v16  ;;  %vm900_vm8 = vcmp.ge.f32.partialorder %v2658_v43, 0.0 }
  0xc3   : > { %v730_v55 = vpop.f32.mrf.mxu1  ;;  %v1536_v57 = vsub.f32 1.0, %v1504_v47  ;;  %v1154_v58 = vmul.f32 %v2645_v29, %v1122_v48  ;;  %v1281_v60 = vmul.f32 %v2625_v0, %v1249_v49  ;;  %2126 = vmatmul.msk.bf16.gmra.mxu0 %vm503_vm1, %v2202_v46 }
  0xc4   : > { %v996_v63 = vmul.f32 0.3275911, %v2664_v36  ;;  %v731_v1 = vadd.f32 %v730_v55, %v580_v52  ;;  %v1447_v47 = vmul.f32 1.442695, %v1411_v30  ;;  %v1380_v48 = vsub.f32 0.0, %v2664_v36  ;;  %v357_v52 = vld [vmem:[%s2488_s23 + $0xc8] sm:$0xff] }
  0xc5   : > { %v1568_v5 = vmul.f32 %v1536_v57, %v928_v50  ;;  %v1186_v6 = vadd.f32 1.4214138, %v1154_v58  ;;  %v1313_v8 = vadd.f32 0.2548296, %v1281_v60 }
  0xc6   : > { %v2677_v9 = vpop.eup %2251  ;;  %v1028_v14 = vadd.f32 1.0, %v996_v63  ;;  %v2681_v15 = vadd.f32 %v2557_v56, %v731_v1  ;;  %2150 = vmatmul.msk.bf16.gmra.mxu1 %vm657_vm2, %v375_v53  ;;  %v929_v53 = vsel %vm897_vm5, 1.0, %v3583_v35  ;;  %v2203_v1 = vld [vmem:[%s2481_s20 + $0x60] sm:$0xff] }
  0xc7   : > { %v1600_v10 = vadd.f32 1.0, %v1568_v5  ;;  %v1218_v17 = vmul.f32 %v2645_v29, %v1186_v6  ;;  %v1345_v18 = vmul.f32 %v2625_v0, %v1313_v8  ;;  %v1091_v7 = vmul.f32 1.0614054, %v2677_v9  ;;  %v2254_v19 = vpop.eup %2253 }
  0xc8   : > { %2255 = vrcp.f32 %v1028_v14  ;;  %v2688_v20 = vmul.f32 0.70710677, %v2681_v15  ;;  %v582_v32 = vpop.f32.mrf.mxu0  ;;  %v1412_v5 = vmul.f32 %v1380_v48, %v2664_v36  ;;  %v376_v8 = vpack.c.bf16 %v357_v52, %v356_v25 }
  0xc9   : > { %v1632_v22 = vmul.f32 %v1600_v10, %v832_v61  ;;  %v1250_v24 = vadd.f32 -0.28449672, %v1218_v17  ;;  %v1505_v27 = vmul.f32 %v2254_v19, %v1345_v18  ;;  %v1123_v28 = vadd.f32 -1.4531521, %v1091_v7 }
  0xca   : > { %2257 = vpow2.f32 %v1445_v12  ;;  %v2692_v31 = vand.u32 2147483647, %v2688_v20  ;;  %v833_v12 = vmul.f32 0.5, %v2595_v23  ;;  %v930_v36 = vsel %vm898_vm6, 1.0, %v3583_v35 }
  0xcb   : > { %v732_v0 = vpop.f32.mrf.mxu1  ;;  %v1663_v34 = vpack.c.bf16 %v1632_v22, %v1631_v21  ;;  %v1282_v62 = vmul.f32 %v2645_v29, %v1250_v24  ;;  %v1155_v37 = vmul.f32 %v2677_v9, %v1123_v28  ;;  %v1537_v41 = vsub.f32 1.0, %v1505_v27 }
  0xcc   : > { %v997_v38 = vmul.f32 0.3275911, %v2692_v31  ;;  %v733_v39 = vadd.f32 %v732_v0, %v582_v32  ;;  %v834_v21 = vmul.f32 0.5, %v2608_v40  ;;  %v1449_v28 = vmul.f32 1.442695, %v1412_v5 }
  0xcd   : > { %1751 = vmatmul.bf16.vlgmr.msra.gmra.mxu2 %v1663_v34  ;;  %v1314_v16 = vadd.f32 0.2548296, %v1282_v62  ;;  %v1187_v44 = vadd.f32 1.4214138, %v1155_v37  ;;  %v1569_v63 = vmul.f32 %v1537_v41, %v929_v53  ;;  %v1381_v30 = vsub.f32 0.0, %v2692_v31  ;;  %v2739_v62 = vpop.f32.mrf.mxu3 }
  0xce   : > { %v2700_v46 = vpop.eup %2255  ;;  %v1029_v49 = vadd.f32 1.0, %v997_v38  ;;  %v2704_v51 = vadd.f32 %v2557_v56, %v733_v39  ;;  %vm901_vm9 = vcmp.ge.f32.partialorder %v2688_v20, 0.0 }
  0xcf   : > { %v1346_v54 = vmul.f32 %v2645_v29, %v1314_v16  ;;  %v1092_v55 = vmul.f32 1.0614054, %v2700_v46  ;;  %v1219_v57 = vmul.f32 %v2677_v9, %v1187_v44  ;;  %v1601_v19 = vadd.f32 1.0, %v1569_v63 }
  0xd0   : > { %v2258_v58 = vpop.eup %2257  ;;  %2259 = vrcp.f32 %v1029_v49  ;;  %v2713_v60 = vmul.f32 0.70710677, %v2704_v51  ;;  %v585_v6 = vpop.f32.mrf.mxu0  ;;  %v1413_v49 = vmul.f32 %v1381_v30, %v2692_v31  ;;  %v933_v20 = vsel %vm901_vm9, 1.0, %v3583_v35 }
  0xd1   : > { %v1506_v50 = vmul.f32 %v2258_v58, %v1346_v54  ;;  %v1124_v2 = vadd.f32 -1.4531521, %v1092_v55  ;;  %v1251_v61 = vadd.f32 -0.28449672, %v1219_v57  ;;  %2261 = vpow2.f32 %v1447_v47 }
  0xd2   : > { %v2719_v29 = vand.u32 2147483647, %v2713_v60  ;;  %v1633_v41 = vmul.f32 %v1601_v19, %v833_v12  ;;  %vm902_vm10 = vcmp.ge.f32.partialorder %v2713_v60, 0.0 }
  0xd3   : > { %v735_v13 = vpop.f32.mrf.mxu1  ;;  %v1538_v14 = vsub.f32 1.0, %v1506_v50  ;;  %v1156_v10 = vmul.f32 %v2700_v46, %v1124_v2  ;;  %v1283_v17 = vmul.f32 %v2677_v9, %v1251_v61  ;;  %2127 = vmatmul.msk.bf16.gmra.mxu0 %vm503_vm1, %v2203_v1  ;;  %v1451_v2 = vmul.f32 1.442695, %v1413_v49 }
  0xd4   : > { %v998_v18 = vmul.f32 0.3275911, %v2719_v29  ;;  %v736_v7 = vadd.f32 %v735_v13, %v585_v6  ;;  %v1382_v61 = vsub.f32 0.0, %v2719_v29 }
  0xd5   : > { %v1570_v22 = vmul.f32 %v1538_v14, %v930_v36  ;;  %v1188_v23 = vadd.f32 1.4214138, %v1156_v10  ;;  %v1315_v24 = vadd.f32 0.2548296, %v1283_v17  ;;  %v931_v17 = vsel %vm899_vm7, 1.0, %v3583_v35  ;;  %v2769_v36 = vpop.f32.mrf.mxu3 }
  0xd6   : > { %v2730_v27 = vpop.eup %2259  ;;  %v1030_v32 = vadd.f32 1.0, %v998_v18  ;;  %v2734_v0 = vadd.f32 %v2557_v56, %v736_v7  ;;  %2151 = vmatmul.msk.bf16.gmra.mxu1 %vm657_vm2, %v376_v8 }
  0xd7   : > { %v1602_v45 = vadd.f32 1.0, %v1570_v22  ;;  %v1220_v34 = vmul.f32 %v2700_v46, %v1188_v23  ;;  %v1347_v40 = vmul.f32 %v2677_v9, %v1315_v24  ;;  %v1093_v37 = vmul.f32 1.0614054, %v2730_v27  ;;  %v2262_v38 = vpop.eup %2261 }
  0xd8   : > { %2263 = vrcp.f32 %v1030_v32  ;;  %v2743_v39 = vmul.f32 0.70710677, %v2734_v0  ;;  %v587_v9 = vpop.f32.mrf.mxu0 }
  0xd9   : > { %v1634_v16 = vmul.f32 %v1602_v45, %v834_v21  ;;  %v1252_v44 = vadd.f32 -0.28449672, %v1220_v34  ;;  %v1507_v47 = vmul.f32 %v2262_v38, %v1347_v40  ;;  %v1125_v48 = vadd.f32 -1.4531521, %v1093_v37 }
  0xda   : > { %2265 = vpow2.f32 %v1449_v28  ;;  %v2747_v25 = vand.u32 2147483647, %v2743_v39  ;;  %v1414_v21 = vmul.f32 %v1382_v61, %v2719_v29  ;;  %v932_v34 = vsel %vm900_vm8, 1.0, %v3583_v35 }
  0xdb   : > { %v737_v52 = vpop.f32.mrf.mxu1  ;;  %v1664_v53 = vpack.c.bf16 %v1634_v16, %v1633_v41  ;;  %v1284_v54 = vmul.f32 %v2700_v46, %v1252_v44  ;;  %v1157_v55 = vmul.f32 %v2730_v27, %v1125_v48  ;;  %v1539_v1 = vsub.f32 1.0, %v1507_v47 }
  0xdc   : > { %v999_v57 = vmul.f32 0.3275911, %v2747_v25  ;;  %v738_v58 = vadd.f32 %v737_v52, %v587_v9  ;;  %2267 = vpow2.f32 %v1451_v2  ;;  %v835_v41 = vmul.f32 0.5, %v2628_v4 }
  0xdd   : > { %1756 = vmatmul.bf16.gmra.mxu2 %v1664_v53  ;;  %v1316_v63 = vadd.f32 0.2548296, %v1284_v54  ;;  %v1189_v50 = vadd.f32 1.4214138, %v1157_v55  ;;  %v1571_v7 = vmul.f32 %v1539_v1, %v931_v17  ;;  %v1453_v16 = vmul.f32 1.442695, %v1414_v21  ;;  %v780_v2 = vpop.f32.mrf.mxu3 }
  0xde   : > { %v2753_v31 = vpop.eup %2263  ;;  %v2757_v5 = vadd.f32 %v2557_v56, %v738_v58  ;;  %v1031_v6 = vadd.f32 1.0, %v999_v57  ;;  %v836_v48 = vmul.f32 0.5, %v2649_v33  ;;  %vm903_vm11 = vcmp.ge.f32.partialorder %v2743_v39, 0.0 }
  0xdf   : > { %v1348_v8 = vmul.f32 %v2700_v46, %v1316_v63  ;;  %v1094_v12 = vmul.f32 1.0614054, %v2753_v31  ;;  %v1221_v13 = vmul.f32 %v2730_v27, %v1189_v50  ;;  %v1603_v29 = vadd.f32 1.0, %v1571_v7 }
  0xe0   : > { %v2266_v14 = vpop.eup %2265  ;;  %v2764_v10 = vmul.f32 0.70710677, %v2757_v5  ;;  %v590_v23 = vpop.f32.mrf.mxu0  ;;  %2269 = vrcp.f32 %v1031_v6  ;;  %v935_v39 = vsel %vm903_vm11, 1.0, %v3583_v35 }
  0xe1   : > { %v1508_v18 = vmul.f32 %v2266_v14, %v1348_v8  ;;  %v1126_v19 = vadd.f32 -1.4531521, %v1094_v12  ;;  %v1253_v46 = vadd.f32 -0.28449672, %v1221_v13  ;;  %v1635_v54 = vmul.f32 %v1603_v29, %v835_v41 }
  0xe2   : > { %v2773_v22 = vand.u32 2147483647, %v2764_v10  ;;  %v2268_v43 = vpop.eup %2267  ;;  %vm904_vm12 = vcmp.ge.f32.partialorder %v2764_v10, 0.0 }
  0xe3   : > { %v740_v24 = vpop.f32.mrf.mxu1  ;;  %v1540_v28 = vsub.f32 1.0, %v1508_v18  ;;  %v1158_v30 = vmul.f32 %v2753_v31, %v1126_v19  ;;  %v1285_v11 = vmul.f32 %v2730_v27, %v1253_v46 }
  0xe4   : > { %v1000_v32 = vmul.f32 0.3275911, %v2773_v22  ;;  %v741_v45 = vadd.f32 %v740_v24, %v590_v23 }
  0xe5   : > { %v1572_v40 = vmul.f32 %v1540_v28, %v932_v34  ;;  %v1190_v37 = vadd.f32 1.4214138, %v1158_v30  ;;  %v1317_v38 = vadd.f32 0.2548296, %v1285_v11  ;;  %v1383_v11 = vsub.f32 0.0, %v2747_v25  ;;  %v782_v41 = vpop.f32.mrf.mxu3 }
  0xe6   : > { %v1032_v44 = vadd.f32 1.0, %v1000_v32  ;;  %v2783_v47 = vadd.f32 %v2557_v56, %v741_v45  ;;  %v2788_v53 = vpop.eup %2269  ;;  %v1384_v34 = vsub.f32 0.0, %v2773_v22 }
  0xe7   : > { %v1604_v49 = vadd.f32 1.0, %v1572_v40  ;;  %v1222_v9 = vmul.f32 %v2753_v31, %v1190_v37  ;;  %v1349_v52 = vmul.f32 %v2730_v27, %v1317_v38  ;;  %v1095_v27 = vmul.f32 1.0614054, %v2788_v53 }
  0xe8   : > { %2271 = vrcp.f32 %v1032_v44  ;;  %v2791_v58 = vmul.f32 0.70710677, %v2783_v47  ;;  %v592_v63 = vpop.f32.mrf.mxu0  ;;  %v934_v40 = vsel %vm902_vm10, 1.0, %v3583_v35 }
  0xe9   : > { %v1636_v55 = vmul.f32 %v1604_v49, %v836_v48  ;;  %v1254_v57 = vadd.f32 -0.28449672, %v1222_v9  ;;  %v1509_v4 = vmul.f32 %v2268_v43, %v1349_v52  ;;  %2273 = vpow2.f32 %v1453_v16 }
  0xea   : > { %v2799_v13 = vand.u32 2147483647, %v2791_v58  ;;  %v1127_v46 = vadd.f32 -1.4531521, %v1095_v27  ;;  %v781_v48 = vadd.f32 %v780_v2, %v2622_v59  ;;  %v837_v49 = vmul.f32 0.5, %v2681_v15 }
  0xeb   : > { %v742_v1 = vpop.f32.mrf.mxu1  ;;  %v1665_v33 = vpack.c.bf16 %v1636_v55, %v1635_v54  ;;  %v1286_v50 = vmul.f32 %v2753_v31, %v1254_v57  ;;  %v1541_v8 = vsub.f32 1.0, %v1509_v4  ;;  %v838_v9 = vmul.f32 0.5, %v2704_v51 }
  0xec   : > { %v743_v61 = vadd.f32 %v742_v1, %v592_v63  ;;  %v1001_v24 = vmul.f32 0.3275911, %v2799_v13  ;;  %v1159_v29 = vmul.f32 %v2788_v53, %v1127_v46  ;;  %v1415_v52 = vmul.f32 %v1383_v11, %v2747_v25 }
  0xed   : > { %1761 = vmatmul.bf16.gmra.mxu2 %v1665_v33  ;;  %v1318_v6 = vadd.f32 0.2548296, %v1286_v50  ;;  %v1573_v23 = vmul.f32 %v1541_v8, %v933_v20  ;;  %v1416_v54 = vmul.f32 %v1384_v34, %v2773_v22  ;;  %v783_v55 = vadd.f32 %v782_v41, %v2643_v26  ;;  %v785_v34 = vpop.f32.mrf.mxu3 }
  0xee   : > { %v2796_v12 = vpop.eup %2271  ;;  %v2802_v14 = vadd.f32 %v2557_v56, %v743_v61  ;;  %v1033_v44 = vadd.f32 1.0, %v1001_v24  ;;  %v1191_v57 = vadd.f32 1.4214138, %v1159_v29  ;;  %v2828_v59 = vadd.f32 %v2557_v56, %v781_v48 }
  0xef   : > { %v1350_v17 = vmul.f32 %v2753_v31, %v1318_v6  ;;  %v1096_v18 = vmul.f32 1.0614054, %v2796_v12  ;;  %v2274_v7 = vpop.eup %2273  ;;  %v1605_v38 = vadd.f32 1.0, %v1573_v23  ;;  %v1455_v15 = vmul.f32 1.442695, %v1415_v52 }
  0xf0   : > { %v2807_v19 = vmul.f32 0.70710677, %v2802_v14  ;;  %v595_v30 = vpop.f32.mrf.mxu0  ;;  %2275 = vrcp.f32 %v1033_v44  ;;  %3596 = vst [vmem:[#allocation2_spill] sm:$0xff] %v2828_v59  ;;  %v1457_v25 = vmul.f32 1.442695, %v1416_v54  ;;  %v2832_v22 = vadd.f32 %v2557_v56, %v783_v55 }
  0xf1   : > { %v1510_v21 = vmul.f32 %v2274_v7, %v1350_v17  ;;  %v1128_v31 = vadd.f32 -1.4531521, %v1096_v18  ;;  %v1637_v63 = vmul.f32 %v1605_v38, %v837_v49  ;;  %v1385_v26 = vsub.f32 0.0, %v2799_v13 }
  0xf2   : > { %v2813_v28 = vand.u32 2147483647, %v2807_v19  ;;  %3597 = vst [vmem:[#allocation3_spill] sm:$0xff] %v2832_v22  ;;  %v1223_v27 = vmul.f32 %v2788_v53, %v1191_v57  ;;  %v2838_v8 = vmul.f32 0.5, %v2734_v0  ;;  %v2841_v17 = vmul.f32 0.70710677, %v2828_v59 }
  0xf3   : > { %v745_v32 = vpop.f32.mrf.mxu1  ;;  %v1542_v45 = vsub.f32 1.0, %v1510_v21  ;;  %v1160_v16 = vmul.f32 %v2796_v12, %v1128_v31  ;;  %v2851_v23 = vmul.f32 0.70710677, %v2832_v22  ;;  %v1417_v0 = vmul.f32 %v1385_v26, %v2799_v13 }
  0xf4   : > { %v1002_v60 = vmul.f32 0.3275911, %v2813_v28  ;;  %v746_v61 = vadd.f32 %v745_v32, %v595_v30  ;;  %v1255_v18 = vadd.f32 -0.28449672, %v1223_v27  ;;  %v1386_v46 = vsub.f32 0.0, %v2813_v28 }
  0xf5   : > { %v1574_v37 = vmul.f32 %v1542_v45, %v934_v40  ;;  %v1192_v33 = vadd.f32 1.4214138, %v1160_v16  ;;  %v2858_v31 = vmul.f32 0.5, %v2757_v5  ;;  %vm905_vm13 = vcmp.ge.f32.partialorder %v2791_v58, 0.0 }
  0xf6   : > { %v1034_v4 = vadd.f32 1.0, %v1002_v60  ;;  %v2844_v20 = vpop.eup %2275  ;;  %v2848_v21 = vadd.f32 %v2557_v56, %v746_v61  ;;  %v1287_v24 = vmul.f32 %v2788_v53, %v1255_v18  ;;  %v985_v45 = vand.u32 2147483647, %v2841_v17  ;;  %v787_v61 = vpop.f32.mrf.mxu3 }
  0xf7   : > { %v1606_v43 = vadd.f32 1.0, %v1574_v37  ;;  %v1224_v6 = vmul.f32 %v2796_v12, %v1192_v33  ;;  %v1097_v13 = vmul.f32 1.0614054, %v2844_v20  ;;  %v1418_v38 = vmul.f32 %v1386_v46, %v2813_v28 }
  0xf8   : > { %v597_v50 = vpop.f32.mrf.mxu0  ;;  %2277 = vrcp.f32 %v1034_v4  ;;  %v1319_v60 = vadd.f32 0.2548296, %v1287_v24  ;;  %v2867_v41 = vmul.f32 0.70710677, %v2848_v21  ;;  %v986_v5 = vand.u32 2147483647, %v2851_v23 }
  0xf9   : > { %v1638_v1 = vmul.f32 %v1606_v43, %v838_v9  ;;  %2279 = vpow2.f32 %v1455_v15  ;;  %v1256_v7 = vadd.f32 -0.28449672, %v1224_v6  ;;  %v936_v16 = vsel %vm904_vm12, 1.0, %v3583_v35 }
  0xfa   : > { %2281 = vpow2.f32 %v1457_v25  ;;  %v2874_v48 = vmul.f32 0.5, %v2783_v47  ;;  %v1459_v49 = vmul.f32 1.442695, %v1417_v0  ;;  %v1351_v9 = vmul.f32 %v2788_v53, %v1319_v60 }
  0xfb   : > { %v747_v2 = vpop.f32.mrf.mxu1  ;;  %v1666_v51 = vpack.c.bf16 %v1638_v1, %v1637_v63  ;;  %v1288_v30 = vmul.f32 %v2796_v12, %v1256_v7  ;;  %v1017_v54 = vmul.f32 0.3275911, %v985_v45  ;;  %v2884_v55 = vsel %vm905_vm13, 1.0, %v3583_v35 }
  0xfc   : > { %v748_v11 = vadd.f32 %v747_v2, %v597_v50  ;;  %v1401_v57 = vsub.f32 0.0, %v985_v45  ;;  %v1129_v63 = vadd.f32 -1.4531521, %v1097_v13  ;;  %v1461_v1 = vmul.f32 1.442695, %v1418_v38 }
  0xfd   : > { %1766 = vmatmul.bf16.gmra.mxu2 %v1666_v51  ;;  %v1320_v37 = vadd.f32 0.2548296, %v1288_v30  ;;  %v971_v53 = vand.u32 2147483647, %v2867_v41  ;;  %2283 = vpow2.f32 %v1459_v49  ;;  %v2889_v33 = vmul.f32 0.5, %v2802_v14 }
  0xfe   : > { %v2862_v40 = vpop.eup %2277  ;;  %v2879_v28 = vadd.f32 %v2557_v56, %v748_v11  ;;  %v1049_v2 = vadd.f32 1.0, %v1017_v54  ;;  %v786_v25 = vadd.f32 %v785_v34, %v2673_v3  ;;  %v1161_v46 = vmul.f32 %v2844_v20, %v1129_v63 }
  0xff   : > { %v2280_v44 = vpop.eup %2279  ;;  %v1352_v52 = vmul.f32 %v2796_v12, %v1320_v37  ;;  %v1098_v10 = vmul.f32 1.0614054, %v2862_v40  ;;  %v1018_v12 = vmul.f32 0.3275911, %v986_v5  ;;  %2285 = vpow2.f32 %v1461_v1 }
 0x100   : > { %v600_v32 = vpop.f32.mrf.mxu0  ;;  %v2282_v43 = vpop.eup %2281  ;;  %v1511_v47 = vmul.f32 %v2280_v44, %v1351_v9  ;;  %v2892_v58 = vmul.f32 0.70710677, %v2879_v28  ;;  %v1387_v14 = vsub.f32 0.0, %v971_v53  ;;  %v1433_v0 = vmul.f32 %v1401_v57, %v985_v45 }
 0x101   : > { %v1512_v4 = vmul.f32 %v2282_v43, %v1352_v52  ;;  %v1130_v26 = vadd.f32 -1.4531521, %v1098_v10  ;;  %v1050_v24 = vadd.f32 1.0, %v1018_v12  ;;  %vm906_vm14 = vcmp.ge.f32.partialorder %v2807_v19, 0.0  ;;  %v790_v12 = vpop.f32.mrf.mxu3 }
 0x102   : > { %v1543_v50 = vsub.f32 1.0, %v1511_v47  ;;  %v1402_v11 = vsub.f32 0.0, %v986_v5  ;;  %v1003_v13 = vmul.f32 0.3275911, %v971_v53  ;;  %v972_v3 = vand.u32 2147483647, %v2892_v58 }
 0x103   : > { %v750_v29 = vpop.f32.mrf.mxu1  ;;  %v1544_v15 = vsub.f32 1.0, %v1512_v4  ;;  %v2902_v34 = vpop.eup %2283  ;;  %v2908_v44 = vmul.f32 0.5, %v2848_v21  ;;  %v1419_v49 = vmul.f32 %v1387_v14, %v971_v53  ;;  %2287 = vrcp.f32 %v1049_v2 }
 0x104   : > { %v751_v27 = vadd.f32 %v750_v29, %v600_v32  ;;  %v1575_v18 = vmul.f32 %v1543_v50, %v935_v39  ;;  %v2899_v32 = vadd.f32 %v2557_v56, %v786_v25  ;;  %v1162_v39 = vmul.f32 %v2862_v40, %v1130_v26 }
 0x105   : > { %v1576_v7 = vmul.f32 %v1544_v15, %v936_v16  ;;  %v1193_v16 = vadd.f32 1.4214138, %v1161_v46  ;;  %v788_v9 = vadd.f32 %v787_v61, %v2698_v42  ;;  %v1491_v52 = vmul.f32 1.442695, %v1433_v0  ;;  %v2914_v57 = vpop.eup %2285 }
 0x106   : > { %v1607_v60 = vadd.f32 1.0, %v1575_v18  ;;  %3598 = vst [vmem:[#allocation4_spill] sm:$0xff] %v2899_v32  ;;  %v813_v29 = vadd.f32 %v2557_v56, %v751_v27  ;;  %v1434_v54 = vmul.f32 %v1402_v11, %v986_v5  ;;  %v1004_v47 = vmul.f32 0.3275911, %v972_v3 }
 0x107   : > { %v1608_v37 = vadd.f32 1.0, %v1576_v7  ;;  %2289 = vrcp.f32 %v1050_v24  ;;  %v1194_v21 = vadd.f32 1.4214138, %v1162_v39  ;;  %v1035_v4 = vadd.f32 1.0, %v1003_v13 }
 0x108   : > { %v602_v51 = vpop.f32.mrf.mxu0  ;;  %v1639_v45 = vmul.f32 %v1607_v60, %v2838_v8  ;;  %v1388_v63 = vsub.f32 0.0, %v972_v3  ;;  %v2919_v1 = vmul.f32 0.70710677, %v813_v29  ;;  %v1225_v53 = vmul.f32 %v2844_v20, %v1193_v16 }
 0x109   : > { %v1640_v38 = vmul.f32 %v1608_v37, %v2858_v31  ;;  %v2917_v31 = vmul.f32 0.70710677, %v2899_v32  ;;  %v1463_v5 = vmul.f32 1.442695, %v1419_v49  ;;  %v2923_v15 = vadd.f32 %v2557_v56, %v788_v9  ;;  %v2929_v26 = vpop.eup %2287 }
 0x10a   : > { %v1226_v2 = vmul.f32 %v2862_v40, %v1194_v21  ;;  %2291 = vpow2.f32 %v1491_v52  ;;  %v1493_v25 = vmul.f32 1.442695, %v1434_v54  ;;  %v1257_v61 = vadd.f32 -0.28449672, %v1225_v53  ;;  %v792_v53 = vpop.f32.mrf.mxu3 }
 0x10b   : > { %v752_v6 = vpop.f32.mrf.mxu1  ;;  %v1667_v10 = vpack.c.bf16 %v1640_v38, %v1639_v45  ;;  %3599 = vst [vmem:[#allocation5_spill] sm:$0xff] %v2917_v31  ;;  %v1036_v27 = vadd.f32 1.0, %v1004_v47  ;;  %v2935_v18 = vand.u32 2147483647, %v2917_v31  ;;  %2293 = vrcp.f32 %v1035_v4 }
 0x10c   : > { %v753_v30 = vadd.f32 %v752_v6, %v602_v51  ;;  %3600 = vst [vmem:[#allocation6_spill] sm:$0xff] %v2923_v15  ;;  %v1258_v7 = vadd.f32 -0.28449672, %v1226_v2  ;;  %v1420_v46 = vmul.f32 %v1388_v63, %v972_v3  ;;  %v973_v14 = vand.u32 2147483647, %v2919_v1 }
 0x10d   : > { %1771 = vmatmul.bf16.gmra.mxu2 %v1667_v10  ;;  %v1289_v0 = vmul.f32 %v2844_v20, %v1257_v61  ;;  %v2939_v24 = vpop.eup %2289  ;;  %2295 = vpow2.f32 %v1463_v5  ;;  %v2945_v11 = vmul.f32 0.70710677, %v2923_v15  ;;  %v791_v45 = vadd.f32 %v790_v12, %v2739_v62  ;;  %v2975_v5 = vld [vmem:[%s3575_s4] ss:$0 sm:$0xff] }
 0x10e   : > { %v2912_v43 = vadd.f32 %v2557_v56, %v753_v30  ;;  %v2942_v30 = vmul.f32 0.5, %v2879_v28  ;;  %2297 = vpow2.f32 %v1493_v25  ;;  %v1290_v37 = vmul.f32 %v2862_v40, %v1258_v7 }
 0x10f   : > { %3601 = vst [vmem:[#allocation7_spill] sm:$0xff] %v2945_v11  ;;  %v1321_v13 = vadd.f32 0.2548296, %v1289_v0  ;;  %2299 = vrcp.f32 %v1036_v27  ;;  %v1019_v28 = vmul.f32 0.3275911, %v2935_v18  ;;  %v2960_v54 = vmul.f32 0.5, %v813_v29 }
 0x110   : > { %v605_v8 = vpop.f32.mrf.mxu0  ;;  %v2927_v51 = vmul.f32 0.70710677, %v2912_v43  ;;  %v2957_v38 = vpop.eup %2291  ;;  %v1465_v16 = vmul.f32 1.442695, %v1420_v46  ;;  %v1005_v19 = vmul.f32 0.3275911, %v973_v14  ;;  %v2981_v2 = vadd.f32 %v2975_v5, %v791_v45 }
 0x111   : > { %3602 = vst [vmem:[#allocation8_spill] sm:$0xff] %v2957_v38  ;;  %v1322_v9 = vadd.f32 0.2548296, %v1290_v37  ;;  %v1353_v52 = vmul.f32 %v2844_v20, %v1321_v13  ;;  %v1389_v10 = vsub.f32 0.0, %v973_v14  ;;  %v2965_v21 = vpop.eup %2293  ;;  %v1051_v29 = vadd.f32 1.0, %v1019_v28 }
 0x112   : > { %v974_v60 = vand.u32 2147483647, %v2927_v51  ;;  %3603 = vst [vmem:[#allocation9_spill] sm:$0xff] %v2981_v2  ;;  %2301 = vpow2.f32 %v1465_v16  ;;  %v793_v37 = vadd.f32 %v792_v53, %v2769_v36  ;;  %vm907_vm15 = vcmp.ge.f32.partialorder %v2867_v41, 0.0 }
 0x113   : > { %v755_v42 = vpop.f32.mrf.mxu1  ;;  %v1354_v62 = vmul.f32 %v2862_v40, %v1322_v9  ;;  %v2969_v12 = vpop.eup %2295  ;;  %v1421_v7 = vmul.f32 %v1389_v10, %v973_v14  ;;  %2303 = vrcp.f32 %v1051_v29  ;;  %v2997_v14 = vmul.f32 0.70710677, %v2981_v2 }
 0x114   : > { %v756_v50 = vadd.f32 %v755_v42, %v605_v8  ;;  %v2963_v8 = vand.u32 2147483647, %v2945_v11  ;;  %v1006_v4 = vmul.f32 0.3275911, %v974_v60  ;;  %v1390_v63 = vsub.f32 0.0, %v974_v60  ;;  %v2983_v40 = vpop.eup %2297 }
 0x115   : > { %v1513_v42 = vmul.f32 %v2902_v34, %v1353_v52  ;;  %3604 = vst [vmem:[#allocation10_spill] sm:$0xff] %v2983_v40  ;;  %v1037_v34 = vadd.f32 1.0, %v1005_v19  ;;  %v1514_v25 = vmul.f32 %v2914_v57, %v1354_v62  ;;  %v2986_v27 = vpop.eup %2299  ;;  %vm908_vm0 = vcmp.ge.f32.partialorder %v2892_v58, 0.0 }
 0x116   : > { %v2932_v6 = vadd.f32 %v2557_v56, %v756_v50  ;;  %v938_v56 = vsel %vm906_vm14, 1.0, %v3583_v35  ;;  %v1020_v0 = vmul.f32 0.3275911, %v2963_v8  ;;  %v1038_v13 = vadd.f32 1.0, %v1006_v4  ;;  %3605 = vst [vmem:[#allocation11_spill] sm:$0xff] %v2997_v14 }
 0x117   : > { %v1545_v61 = vsub.f32 1.0, %v1513_v42  ;;  %v1422_v28 = vmul.f32 %v1390_v63, %v974_v60  ;;  %2305 = vrcp.f32 %v1037_v34  ;;  %v1467_v60 = vmul.f32 1.442695, %v1421_v7 }
 0x118   : > { %v2953_v3 = vmul.f32 0.70710677, %v2932_v6  ;;  %v607_v39 = vpop.f32.mrf.mxu0  ;;  %v1052_v10 = vadd.f32 1.0, %v1020_v0  ;;  %v3003_v4 = vpop.eup %2301  ;;  %2307 = vrcp.f32 %v1038_v13  ;;  %v1099_v7 = vmul.f32 1.0614054, %v2965_v21 }
 0x119   : > { %v1577_v45 = vmul.f32 %v1545_v61, %v2884_v55  ;;  %v3001_v55 = vadd.f32 %v2975_v5, %v793_v37  ;;  %v1469_v63 = vmul.f32 1.442695, %v1422_v28  ;;  %v1100_v0 = vmul.f32 1.0614054, %v2986_v27  ;;  %v3013_v37 = vpop.eup %2303 }
 0x11a   : > { %v975_v20 = vand.u32 2147483647, %v2953_v3  ;;  %2309 = vpow2.f32 %v1467_v60  ;;  %vm909_vm1 = vcmp.ge.f32.partialorder %v2919_v1, 0.0  ;;  %vm910_vm3 = vcmp.ge.f32.partialorder %v2927_v51, 0.0 }
 0x11b   : > { %v757_v49 = vpop.f32.mrf.mxu1  ;;  %v1609_v36 = vadd.f32 1.0, %v1577_v45  ;;  %3606 = vst [vmem:[#allocation12_spill] sm:$0xff] %v3001_v55  ;;  %v3020_v28 = vmul.f32 0.70710677, %v3001_v55  ;;  %2311 = vrcp.f32 %v1052_v10  ;;  %v1131_v45 = vadd.f32 -1.4531521, %v1099_v7 }
 0x11c   : > { %v758_v47 = vadd.f32 %v757_v49, %v607_v39  ;;  %v1546_v39 = vsub.f32 1.0, %v1514_v25  ;;  %v1391_v16 = vsub.f32 0.0, %v975_v20  ;;  %v1403_v49 = vsub.f32 0.0, %v2935_v18 }
 0x11d   : > { %v1007_v62 = vmul.f32 0.3275911, %v975_v20  ;;  %v3006_v25 = vand.u32 2147483647, %v2997_v14  ;;  %3609 = vst [vmem:[#allocation15_spill] sm:$0xff] %v3020_v28  ;;  %2313 = vpow2.f32 %v1469_v63  ;;  %v1163_v10 = vmul.f32 %v2965_v21, %v1131_v45 }
 0x11e   : > { %v2978_v50 = vadd.f32 %v2975_v5, %v758_v47  ;;  %v1578_v9 = vmul.f32 %v1546_v39, %v938_v56  ;;  %v1423_v53 = vmul.f32 %v1391_v16, %v975_v20  ;;  %v1641_v56 = vmul.f32 %v1609_v36, %v2874_v48  ;;  %v3022_v39 = vpop.eup %2305 }
 0x11f   : > { %3607 = vst [vmem:[#allocation13_spill] sm:$0xff] %v3006_v25  ;;  %v3016_v20 = vmul.f32 %v1403_v49, %v2935_v18  ;;  %v1039_v48 = vadd.f32 1.0, %v1007_v62  ;;  %v3025_v16 = vmul.f32 0.5, %v2912_v43  ;;  %v1132_v18 = vadd.f32 -1.4531521, %v1100_v0  ;;  %v3028_v49 = vpop.eup %2307 }
 0x120   : > { %v2989_v46 = vmul.f32 0.70710677, %v2978_v50  ;;  %v610_v19 = vpop.f32.mrf.mxu0  ;;  %v1610_v42 = vadd.f32 1.0, %v1578_v9  ;;  %v1471_v36 = vmul.f32 1.442695, %v1423_v53  ;;  %vm911_vm4 = vcmp.ge.f32.partialorder %v2953_v3, 0.0 }
 0x121   : > { %3608 = vst [vmem:[#allocation14_spill] sm:$0xff] %v3016_v20  ;;  %v3035_v63 = vand.u32 2147483647, %v3020_v28  ;;  %2315 = vrcp.f32 %v1039_v48  ;;  %v1195_v53 = vadd.f32 1.4214138, %v1163_v10  ;;  %vm921_vm13 = vcmp.ge.f32.partialorder %v2841_v17, 0.0 }
 0x122   : > { %v976_v57 = vand.u32 2147483647, %v2989_v46  ;;  %v1642_v61 = vmul.f32 %v1610_v42, %v2889_v33  ;;  %v1164_v42 = vmul.f32 %v2986_v27, %v1132_v18  ;;  %2317 = vpow2.f32 %v1471_v36 }
 0x123   : > { %v760_v52 = vpop.f32.mrf.mxu1  ;;  %3610 = vst [vmem:[#allocation16_spill] sm:$0xff] %v3035_v63  ;;  %v1101_v41 = vmul.f32 1.0614054, %v3022_v39  ;;  %v1102_v48 = vmul.f32 1.0614054, %v3028_v49  ;;  %vm912_vm5 = vcmp.ge.f32.partialorder %v2989_v46, 0.0 }
 0x124   : > { %v761_v47 = vadd.f32 %v760_v52, %v610_v19  ;;  %v1008_v29 = vmul.f32 0.3275911, %v976_v57  ;;  %v1392_v34 = vsub.f32 0.0, %v976_v57  ;;  %v1668_v33 = vpack.c.bf16 %v1642_v61, %v1641_v56 }
 0x125   : > { %v1021_v19 = vmul.f32 0.3275911, %v3006_v25  ;;  %v3040_v56 = vmul.f32 0.5, %v2932_v6  ;;  %v1196_v0 = vadd.f32 1.4214138, %v1164_v42  ;;  %v1227_v6 = vmul.f32 %v2965_v21, %v1195_v53 }
 0x126   : > { %v817_v13 = vadd.f32 %v2975_v5, %v761_v47  ;;  %v1040_v52 = vadd.f32 1.0, %v1008_v29  ;;  %v1424_v60 = vmul.f32 %v1392_v34, %v976_v57  ;;  %1776 = vmatmul.bf16.gmra.mxu2 %v1668_v33  ;;  %v3045_v57 = vsel %vm907_vm15, 1.0, %v3583_v35  ;;  %v3047_v29 = vpop.eup %2309 }
 0x127   : > { %v3050_v34 = vmul.f32 0.5, %v2978_v50  ;;  %v1053_v61 = vadd.f32 1.0, %v1021_v19  ;;  %v3055_v33 = vpop.eup %2311  ;;  %v1022_v19 = vmul.f32 0.3275911, %v3035_v63  ;;  %v1228_v18 = vmul.f32 %v2986_v27, %v1196_v0 }
 0x128   : > { %v612_v9 = vpop.f32.mrf.mxu0  ;;  %v3032_v62 = vmul.f32 0.70710677, %v817_v13  ;;  %v3060_v45 = vpop.eup %2313  ;;  %2319 = vrcp.f32 %v1040_v52  ;;  %v1133_v10 = vadd.f32 -1.4531521, %v1101_v41  ;;  %v3065_v36 = vmul.f32 0.5, %v817_v13 }
 0x129   : > { %2321 = vrcp.f32 %v1053_v61  ;;  %v940_v52 = vsel %vm908_vm0, 1.0, %v3583_v35  ;;  %v3073_v53 = vpop.eup %2315  ;;  %v1260_v55 = vadd.f32 -0.28449672, %v1228_v18  ;;  %v1054_v41 = vadd.f32 1.0, %v1022_v19 }
 0x12a   : > { %v977_v50 = vand.u32 2147483647, %v3032_v62  ;;  %v3078_v28 = vpop.eup %2317  ;;  %vm913_vm6 = vcmp.ge.f32.partialorder %v3032_v62, 0.0  ;;  %vm922_vm14 = vcmp.ge.f32.partialorder %v2851_v23, 0.0 }
 0x12b   : > { %v762_v47 = vpop.f32.mrf.mxu1  ;;  %v1292_v58 = vmul.f32 %v2986_v27, %v1260_v55 }
 0x12c   : > { %v763_v43 = vadd.f32 %v762_v47, %v612_v9  ;;  %v1473_v9 = vmul.f32 1.442695, %v1424_v60  ;;  %v1259_v47 = vadd.f32 -0.28449672, %v1227_v6  ;;  %v1165_v6 = vmul.f32 %v3022_v39, %v1133_v10 }
 0x12d   : > { %v1009_v61 = vmul.f32 0.3275911, %v977_v50  ;;  %v1393_v18 = vsub.f32 0.0, %v977_v50  ;;  %v1324_v19 = vadd.f32 0.2548296, %v1292_v58 }
 0x12e   : > { %v3053_v7 = vadd.f32 %v2975_v5, %v763_v43  ;;  %v1134_v43 = vadd.f32 -1.4531521, %v1102_v48  ;;  %v1291_v2 = vmul.f32 %v2965_v21, %v1259_v47  ;;  %2323 = vpow2.f32 %v1473_v9  ;;  %v3081_v32 = vpop.eup %2319 }
 0x12f   : > { %v1197_v14 = vadd.f32 1.4214138, %v1165_v6  ;;  %v1041_v6 = vadd.f32 1.0, %v1009_v61  ;;  %2325 = vrcp.f32 %v1054_v41  ;;  %v1103_v41 = vmul.f32 1.0614054, %v3073_v53 }
 0x130   : > { %v3068_v42 = vmul.f32 0.70710677, %v3053_v7  ;;  %v615_v60 = vpop.f32.mrf.mxu0  ;;  %v1166_v13 = vmul.f32 %v3028_v49, %v1134_v43  ;;  %v1323_v35 = vadd.f32 0.2548296, %v1291_v2  ;;  %v3611_v43 = vmov -1.0  }
 0x131   : > { %v3090_v9 = vsel %vm909_vm1, 1.0, %v3611_v43  ;;  %v1229_v2 = vmul.f32 %v3022_v39, %v1197_v14  ;;  %v3103_v1 = vsel %vm910_vm3, 1.0, %v3611_v43  ;;  %v1104_v31 = vmul.f32 1.0614054, %v3081_v32 }
 0x132   : > { %v1198_v15 = vadd.f32 1.4214138, %v1166_v13  ;;  %v978_v47 = vand.u32 2147483647, %v3068_v42  ;;  %2327 = vrcp.f32 %v1041_v6  ;;  %vm914_vm7 = vcmp.ge.f32.partialorder %v3068_v42, 0.0 }
 0x133   : > { %v765_v0 = vpop.f32.mrf.mxu1 }
 0x134   : > { %v766_v48 = vadd.f32 %v765_v0, %v615_v60  ;;  %v1355_v60 = vmul.f32 %v2965_v21, %v1323_v35  ;;  %v1230_v55 = vmul.f32 %v3028_v49, %v1198_v15  ;;  %v3095_v0 = vpop.eup %2321  ;;  %v1261_v21 = vadd.f32 -0.28449672, %v1229_v2 }
 0x135   : > { %v3107_v58 = vpop.eup %2323  ;;  %v1425_v15 = vmul.f32 %v1393_v18, %v977_v50  ;;  %v1010_v11 = vmul.f32 0.3275911, %v978_v47 }
 0x136   : > { %v3085_v10 = vadd.f32 %v2975_v5, %v766_v48  ;;  %v1356_v48 = vmul.f32 %v2986_v27, %v1324_v19  ;;  %v1515_v35 = vmul.f32 %v2969_v12, %v1355_v60  ;;  %v1262_v14 = vadd.f32 -0.28449672, %v1230_v55  ;;  %v3118_v55 = vpop.eup %2325 }
 0x137   : > { %v1293_v25 = vmul.f32 %v3022_v39, %v1261_v21  ;;  %v1394_v12 = vsub.f32 0.0, %v978_v47  ;;  %v1135_v21 = vadd.f32 -1.4531521, %v1103_v41 }
 0x138   : > { %v3098_v13 = vmul.f32 0.70710677, %v3085_v10  ;;  %v617_v61 = vpop.f32.mrf.mxu0  ;;  %v1516_v63 = vmul.f32 %v3003_v4, %v1356_v48  ;;  %v1547_v51 = vsub.f32 1.0, %v1515_v35  ;;  %v1294_v27 = vmul.f32 %v3028_v49, %v1262_v14 }
 0x139   : > { %v1325_v2 = vadd.f32 0.2548296, %v1293_v25  ;;  %v1042_v48 = vadd.f32 1.0, %v1010_v11  ;;  %v1136_v14 = vadd.f32 -1.4531521, %v1104_v31  ;;  %v1426_v40 = vmul.f32 %v1394_v12, %v978_v47  ;;  %v3128_v31 = vpop.eup %2327 }
 0x13a   : > { %v979_v50 = vand.u32 2147483647, %v3098_v13  ;;  %v1548_v19 = vsub.f32 1.0, %v1516_v63  ;;  %v1579_v60 = vmul.f32 %v1547_v51, %v3045_v57  ;;  %v1326_v4 = vadd.f32 0.2548296, %v1294_v27 }
 0x13b   : > { %v767_v22 = vpop.f32.mrf.mxu1  ;;  %v1357_v20 = vmul.f32 %v3022_v39, %v1325_v2  ;;  %2329 = vrcp.f32 %v1042_v48  ;;  %v1167_v47 = vmul.f32 %v3073_v53, %v1135_v21  ;;  %vm915_vm8 = vcmp.ge.f32.partialorder %v3098_v13, 0.0 }
 0x13c   : > { %v768_v18 = vadd.f32 %v767_v22, %v617_v61  ;;  %v1580_v59 = vmul.f32 %v1548_v19, %v940_v52  ;;  %v1611_v6 = vadd.f32 1.0, %v1579_v60  ;;  %v1358_v22 = vmul.f32 %v3028_v49, %v1326_v4 }
 0x13d   : > { %v1475_v61 = vmul.f32 1.442695, %v1425_v15  ;;  %v1011_v63 = vmul.f32 0.3275911, %v979_v50  ;;  %v1395_v57 = vsub.f32 0.0, %v979_v50  ;;  %v1517_v11 = vmul.f32 %v3047_v29, %v1357_v20 }
 0x13e   : > { %v820_v35 = vadd.f32 %v2975_v5, %v768_v18  ;;  %v1612_v25 = vadd.f32 1.0, %v1580_v59  ;;  %v1518_v41 = vmul.f32 %v3060_v45, %v1358_v22  ;;  %v3131_v52 = vmul.f32 0.5, %v3053_v7 }
 0x13f   : > { %v1643_v15 = vmul.f32 %v1611_v6, %v2908_v44  ;;  %v1168_v20 = vmul.f32 %v3081_v32, %v1136_v14  ;;  %v1477_v29 = vmul.f32 1.442695, %v1426_v40  ;;  %v1549_v45 = vsub.f32 1.0, %v1517_v11 }
 0x140   : > { %v3123_v38 = vmul.f32 0.70710677, %v820_v35  ;;  %v620_v49 = vpop.f32.mrf.mxu0  ;;  %v1644_v59 = vmul.f32 %v1612_v25, %v2942_v30  ;;  %v1550_v51 = vsub.f32 1.0, %v1518_v41  ;;  %v1199_v18 = vadd.f32 1.4214138, %v1167_v47 }
 0x141   : > { %v1043_v19 = vadd.f32 1.0, %v1011_v63  ;;  %v1427_v60 = vmul.f32 %v1395_v57, %v979_v50  ;;  %v1200_v2 = vadd.f32 1.4214138, %v1168_v20  ;;  %2331 = vpow2.f32 %v1475_v61  ;;  %v3147_v6 = vpop.eup %2329 }
 0x142   : > { %v980_v39 = vand.u32 2147483647, %v3123_v38  ;;  %v1669_v7 = vpack.c.bf16 %v1644_v59, %v1643_v15  ;;  %v1582_v48 = vmul.f32 %v1550_v51, %v3103_v1  ;;  %v1231_v44 = vmul.f32 %v3073_v53, %v1199_v18 }
 0x143   : > { %v770_v27 = vpop.f32.mrf.mxu1  ;;  %v3144_v40 = vsel %vm911_vm4, 1.0, %v3611_v43  ;;  %v1232_v14 = vmul.f32 %v3081_v32, %v1200_v2  ;;  %v3150_v50 = vmul.f32 0.5, %v3085_v10  ;;  %v1581_v1 = vmul.f32 %v1549_v45, %v3090_v9 }
 0x144   : > { %v771_v12 = vadd.f32 %v770_v27, %v620_v49  ;;  %v1012_v4 = vmul.f32 0.3275911, %v980_v39  ;;  %1781 = vmatmul.bf16.gmra.mxu2 %v1669_v7  ;;  %v1396_v30 = vsub.f32 0.0, %v980_v39  ;;  %v3158_v61 = vsel %vm912_vm5, 1.0, %v3611_v43 }
 0x145   : > { %2333 = vpow2.f32 %v1477_v29  ;;  %v1479_v3 = vmul.f32 1.442695, %v1427_v60  ;;  %v1263_v63 = vadd.f32 -0.28449672, %v1231_v44  ;;  %v1264_v25 = vadd.f32 -0.28449672, %v1232_v14 }
 0x146   : > { %v821_v21 = vadd.f32 %v2975_v5, %v771_v12  ;;  %2335 = vrcp.f32 %v1043_v19  ;;  %v1044_v57 = vadd.f32 1.0, %v1012_v4  ;;  %v1614_v11 = vadd.f32 1.0, %v1582_v48 }
 0x147   : > { %v3164_v9 = vmul.f32 0.5, %v820_v35  ;;  %v1428_v41 = vmul.f32 %v1396_v30, %v980_v39  ;;  %v1295_v49 = vmul.f32 %v3073_v53, %v1263_v63  ;;  %v1296_v46 = vmul.f32 %v3081_v32, %v1264_v25  ;;  %v3176_v27 = vpop.eup %2331 }
 0x148   : > { %v3153_v22 = vmul.f32 0.70710677, %v821_v21  ;;  %v1613_v47 = vadd.f32 1.0, %v1581_v1  ;;  %v3173_v59 = vsel %vm913_vm6, 1.0, %v3611_v43  ;;  %v1105_v51 = vmul.f32 1.0614054, %v3128_v31  ;;  %v622_v35 = vpop.f32.mrf.mxu0 }
 0x149   : > { %2337 = vpow2.f32 %v1479_v3  ;;  %v1327_v39 = vadd.f32 0.2548296, %v1295_v49  ;;  %v1328_v20 = vadd.f32 0.2548296, %v1296_v46  ;;  %v1106_v29 = vmul.f32 1.0614054, %v3147_v6 }
 0x14a   : > { %v3162_v10 = vand.u32 2147483647, %v3153_v22  ;;  %2339 = vrcp.f32 %v1044_v57  ;;  %v1646_v45 = vmul.f32 %v1614_v11, %v3025_v16  ;;  %v1137_v7 = vadd.f32 -1.4531521, %v1105_v51 }
 0x14b   : > { %v772_v18 = vpop.f32.mrf.mxu1  ;;  %v3180_v19 = vpop.eup %2333  ;;  %v1359_v60 = vmul.f32 %v3073_v53, %v1327_v39  ;;  %v1360_v2 = vmul.f32 %v3081_v32, %v1328_v20  ;;  %v1138_v4 = vadd.f32 -1.4531521, %v1106_v29  ;;  %vm916_vm9 = vcmp.ge.f32.partialorder %v3123_v38, 0.0 }
 0x14c   : > { %v1013_v15 = vmul.f32 0.3275911, %v3162_v10  ;;  %v773_v62 = vadd.f32 %v772_v18, %v622_v35  ;;  %v3184_v48 = vpop.eup %2335  ;;  %v1481_v44 = vmul.f32 1.442695, %v1428_v41  ;;  %v1645_v30 = vmul.f32 %v1613_v47, %v2960_v54  ;;  %v3201_v54 = vld [vmem:[%s3577_s6] ss:$0 sm:$0xff] }
 0x14d   : > { %v1169_v16 = vmul.f32 %v3128_v31, %v1137_v7  ;;  %v1519_v1 = vmul.f32 %v3078_v28, %v1359_v60  ;;  %v1520_v53 = vmul.f32 %v3107_v58, %v1360_v2  ;;  %v1170_v32 = vmul.f32 %v3147_v6, %v1138_v4  ;;  %v3232_v7 = vld [vmem:[%s3578_s7] ss:$0 sm:$0xff] }
 0x14e   : > { %v1045_v12 = vadd.f32 1.0, %v1013_v15  ;;  %v3190_v14 = vadd.f32 %v2975_v5, %v773_v62  ;;  %v1670_v3 = vpack.c.bf16 %v1646_v45, %v1645_v30  ;;  %v3195_v63 = vmul.f32 0.5, %v821_v21 }
 0x14f   : > { %vm917_vm10 = vcmp.ge.f32.partialorder %v3153_v22, 0.0  ;;  %v1201_v25 = vadd.f32 1.4214138, %v1169_v16  ;;  %v3203_v57 = vpop.eup %2337  ;;  %v1397_v11 = vsub.f32 0.0, %v3162_v10  ;;  %v1551_v58 = vsub.f32 1.0, %v1519_v1 }
 0x150   : > { %2341 = vrcp.f32 %v1045_v12  ;;  %v3207_v28 = vmul.f32 0.70710677, %v3190_v14  ;;  %v1552_v41 = vsub.f32 1.0, %v1520_v53  ;;  %v1752_v21 = vpop.f32.mrf.mxu2  ;;  %v3209_v49 = vpop.eup %2339  ;;  %v1202_v46 = vadd.f32 1.4214138, %v1170_v32  ;;  %v2368_v12 = vld [vmem:[%s2488_s23] sm:$0xff] }
 0x151   : > { %2343 = vpow2.f32 %v1481_v44  ;;  %v1836_v22 = vmul.f32 %v3201_v54, %v1752_v21  ;;  %v1233_v47 = vmul.f32 %v3128_v31, %v1201_v25  ;;  %v3214_v15 = vsel %vm917_vm10, 1.0, %v3611_v43  ;;  %v625_v39 = vpop.f32.mrf.mxu0 }
 0x152   : > { %v3217_v51 = vand.u32 2147483647, %v3207_v28  ;;  %v1583_v35 = vmul.f32 %v1551_v58, %v3144_v40  ;;  %v3223_v20 = vsel %vm914_vm7, 1.0, %v3611_v43  ;;  %v1584_v45 = vmul.f32 %v1552_v41, %v3158_v61 }
 0x153   : > { %v1868_v18 = vadd.f32 %v2368_v12, %v1836_v22  ;;  %v775_v62 = vpop.f32.mrf.mxu1  ;;  %v1234_v40 = vmul.f32 %v3147_v6, %v1202_v46  ;;  %v1265_v60 = vadd.f32 -0.28449672, %v1233_v47  ;;  %v1429_v2 = vmul.f32 %v1397_v11, %v3162_v10 }
 0x154   : > { %1786 = vmatmul.bf16.gmra.mxu2 %v1670_v3  ;;  %v1014_v4 = vmul.f32 0.3275911, %v3217_v51  ;;  %v3248_v61 = vsel %vm915_vm8, 1.0, %v3611_v43  ;;  %v776_v30 = vadd.f32 %v775_v62, %v625_v39  ;;  %v1107_v10 = vmul.f32 1.0614054, %v3184_v48 }
 0x155   : > { %v1904_v44 = vadd.f32 %v3232_v7, %v1868_v18  ;;  %v1266_v16 = vadd.f32 -0.28449672, %v1234_v40  ;;  %v1615_v32 = vadd.f32 1.0, %v1583_v35  ;;  %v1108_v3 = vmul.f32 1.0614054, %v3209_v49 }
 0x156   : > { %v3225_v29 = vpop.eup %2341  ;;  %v1046_v53 = vadd.f32 1.0, %v1014_v4  ;;  %v1616_v11 = vadd.f32 1.0, %v1584_v45  ;;  %v3258_v13 = vadd.f32 %v2975_v5, %v776_v30  ;;  %v1297_v58 = vmul.f32 %v3128_v31, %v1265_v60  ;;  %v2369_v4 = vld [vmem:[%s2488_s23 + $0x8] sm:$0xff] }
 0x157   : > { %v1109_v42 = vmul.f32 1.0614054, %v3225_v29  ;;  %v3253_v25 = vpop.eup %2343  ;;  %1936 = vst.msk [vmem:[%s3243_s11] sm:$0xff] %vm657_vm2, %v1904_v44  ;;  %v1298_v41 = vmul.f32 %v3147_v6, %v1266_v16  ;;  %v1483_v22 = vmul.f32 1.442695, %v1429_v2  ;;  %v3266_v47 = vsel %vm916_vm9, 1.0, %v3611_v43 }
 0x158   : > { %2345 = vrcp.f32 %v1046_v53  ;;  %v1754_v46 = vpop.f32.mrf.mxu2  ;;  %v1398_v35 = vsub.f32 0.0, %v3217_v51  ;;  %v3270_v39 = vmul.f32 0.70710677, %v3258_v13  ;;  %v1139_v12 = vadd.f32 -1.4531521, %v1107_v10 }
 0x159   : > { %v1141_v1 = vadd.f32 -1.4531521, %v1109_v42  ;;  %v1837_v45 = vmul.f32 %v3201_v54, %v1754_v46  ;;  %v1647_v62 = vmul.f32 %v1615_v32, %v3040_v56  ;;  %v627_v40 = vpop.f32.mrf.mxu0  ;;  %v1329_v60 = vadd.f32 0.2548296, %v1297_v58 }
 0x15a   : > { %v1330_v42 = vadd.f32 0.2548296, %v1298_v41  ;;  %v1648_v2 = vmul.f32 %v1616_v11, %v3050_v34  ;;  %v983_v38 = vand.u32 2147483647, %v3270_v39  ;;  %v1140_v16 = vadd.f32 -1.4531521, %v1108_v3 }
 0x15b   : > { %v1173_v21 = vmul.f32 %v3225_v29, %v1141_v1  ;;  %v1869_v44 = vadd.f32 %v2369_v4, %v1837_v45  ;;  %v777_v30 = vpop.f32.mrf.mxu1  ;;  %v1361_v10 = vmul.f32 %v3128_v31, %v1329_v60  ;;  %v1171_v34 = vmul.f32 %v3184_v48, %v1139_v12 }
 0x15c   : > { %v778_v53 = vadd.f32 %v777_v30, %v627_v40  ;;  %v1015_v56 = vmul.f32 0.3275911, %v983_v38  ;;  %v1399_v32 = vsub.f32 0.0, %v983_v38  ;;  %2347 = vpow2.f32 %v1483_v22 }
 0x15d   : > { %v1205_v18 = vadd.f32 1.4214138, %v1173_v21  ;;  %v1362_v21 = vmul.f32 %v3147_v6, %v1330_v42  ;;  %v1905_v58 = vadd.f32 %v3232_v7, %v1869_v44  ;;  %v1521_v3 = vmul.f32 %v3176_v27, %v1361_v10 }
 0x15e   : > { %v3282_v11 = vpop.eup %2345  ;;  %v3285_v46 = vadd.f32 %v2975_v5, %v778_v53  ;;  %v3290_v31 = vmul.f32 0.5, %v3190_v14  ;;  %v1671_v40 = vpack.c.bf16 %v1648_v2, %v1647_v62  ;;  %v1172_v14 = vmul.f32 %v3209_v49, %v1140_v16 }
 0x15f   : > { %v1237_v1 = vmul.f32 %v3225_v29, %v1205_v18  ;;  %v1522_v45 = vmul.f32 %v3180_v19, %v1362_v21  ;;  %v1110_v6 = vmul.f32 1.0614054, %v3282_v11  ;;  %v1047_v18 = vadd.f32 1.0, %v1015_v56  ;;  %1937 = vst.msk [vmem:[%s3243_s11 + $0x8] sm:$0xff] %vm657_vm2, %v1905_v58  ;;  %v2370_v56 = vld [vmem:[%s2488_s23 + $0x10] sm:$0xff] }
 0x160   : > { %v3297_v60 = vmul.f32 0.70710677, %v3285_v46  ;;  %v1553_v5 = vsub.f32 1.0, %v1521_v3  ;;  %v1757_v42 = vpop.f32.mrf.mxu2  ;;  %v1430_v19 = vmul.f32 %v1398_v35, %v3217_v51  ;;  %v1431_v44 = vmul.f32 %v1399_v32, %v983_v38 }
 0x161   : > { %v1269_v41 = vadd.f32 -0.28449672, %v1237_v1  ;;  %v1142_v27 = vadd.f32 -1.4531521, %v1110_v6  ;;  %v1554_v22 = vsub.f32 1.0, %v1522_v45  ;;  %2349 = vrcp.f32 %v1047_v18 }
 0x162   : > { %v984_v30 = vand.u32 2147483647, %v3297_v60  ;;  %v1203_v1 = vadd.f32 1.4214138, %v1171_v34  ;;  %v1838_v2 = vmul.f32 %v3201_v54, %v1757_v42  ;;  %vm918_vm11 = vcmp.ge.f32.partialorder %v3207_v28, 0.0  ;;  %v2348_v16 = vpop.eup %2347 }
 0x163   : > { %v1301_v12 = vmul.f32 %v3225_v29, %v1269_v41  ;;  %v1174_v53 = vmul.f32 %v3282_v11, %v1142_v27  ;;  %v1586_v62 = vmul.f32 %v1554_v22, %v3223_v20  ;;  %v1585_v35 = vmul.f32 %v1553_v5, %v3173_v59 }
 0x164   : > { %1791 = vmatmul.bf16.gmra.mxu2 %v1671_v40  ;;  %v1016_v51 = vmul.f32 0.3275911, %v984_v30  ;;  %v1400_v21 = vsub.f32 0.0, %v984_v30  ;;  %v1870_v32 = vadd.f32 %v2370_v56, %v1838_v2  ;;  %v1204_v58 = vadd.f32 1.4214138, %v1172_v14 }
 0x165   : > { %v1333_v4 = vadd.f32 0.2548296, %v1301_v12  ;;  %v1206_v38 = vadd.f32 1.4214138, %v1174_v53  ;;  %v1485_v41 = vmul.f32 1.442695, %v1430_v19  ;;  %v1235_v18 = vmul.f32 %v3184_v48, %v1203_v1 }
 0x166   : > { %v1048_v20 = vadd.f32 1.0, %v1016_v51  ;;  %v1618_v3 = vadd.f32 1.0, %v1586_v62  ;;  %v1906_v6 = vadd.f32 %v3232_v7, %v1870_v32  ;;  %v1617_v59 = vadd.f32 1.0, %v1585_v35  ;;  %v2371_v62 = vld [vmem:[%s2488_s23 + $0x18] sm:$0xff] }
 0x167   : > { %v1365_v10 = vmul.f32 %v3225_v29, %v1333_v4  ;;  %v1238_v45 = vmul.f32 %v3282_v11, %v1206_v38  ;;  %v1487_v29 = vmul.f32 1.442695, %v1431_v44  ;;  %v1236_v5 = vmul.f32 %v3209_v49, %v1204_v58  ;;  %v3313_v42 = vpop.eup %2349 }
 0x168   : > { %2351 = vrcp.f32 %v1048_v20  ;;  %v1759_v40 = vpop.f32.mrf.mxu2  ;;  %v1432_v19 = vmul.f32 %v1400_v21, %v984_v30  ;;  %1938 = vst.msk [vmem:[%s3243_s11 + $0x10] sm:$0xff] %vm657_vm2, %v1906_v6  ;;  %v1267_v14 = vadd.f32 -0.28449672, %v1235_v18  ;;  %v950_v4 = vsel %vm918_vm11, 1.0, %v3611_v43 }
 0x169   : > { %v1525_v34 = vmul.f32 %v2348_v16, %v1365_v10  ;;  %v1270_v27 = vadd.f32 -0.28449672, %v1238_v45  ;;  %v1839_v22 = vmul.f32 %v3201_v54, %v1759_v40  ;;  %2353 = vpow2.f32 %v1485_v41 }
 0x16a   : > { %v1650_v44 = vmul.f32 %v1618_v3, %v3131_v52  ;;  %v1268_v1 = vadd.f32 -0.28449672, %v1236_v5  ;;  %2355 = vpow2.f32 %v1487_v29  ;;  %v1299_v30 = vmul.f32 %v3184_v48, %v1267_v14 }
 0x16b   : > { %v1557_v12 = vsub.f32 1.0, %v1525_v34  ;;  %v1302_v53 = vmul.f32 %v3282_v11, %v1270_v27  ;;  %v1871_v2 = vadd.f32 %v2371_v62, %v1839_v22  ;;  %v1649_v51 = vmul.f32 %v1617_v59, %v3065_v36 }
 0x16c   : > { %v1300_v35 = vmul.f32 %v3209_v49, %v1268_v1  ;;  %v1111_v28 = vmul.f32 1.0614054, %v3313_v42  ;;  %v1489_v38 = vmul.f32 1.442695, %v1432_v19  ;;  %v1331_v21 = vadd.f32 0.2548296, %v1299_v30 }
 0x16d   : > { %v1589_v10 = vmul.f32 %v1557_v12, %v3214_v15  ;;  %v1334_v16 = vadd.f32 0.2548296, %v1302_v53  ;;  %v1907_v52 = vadd.f32 %v3232_v7, %v1871_v2  ;;  %v1672_v32 = vpack.c.bf16 %v1650_v44, %v1649_v51  ;;  %v2372_v53 = vld [vmem:[%s2488_s23 + $0x20] sm:$0xff] }
 0x16e   : > { %v3330_v56 = vpop.eup %2351  ;;  %v1332_v58 = vadd.f32 0.2548296, %v1300_v35  ;;  %v1143_v34 = vadd.f32 -1.4531521, %v1111_v28  ;;  %v1113_v41 = vmul.f32 1.0614054, %v2929_v26  ;;  %v1363_v36 = vmul.f32 %v3184_v48, %v1331_v21 }
 0x16f   : > { %v1366_v15 = vmul.f32 %v3282_v11, %v1334_v16  ;;  %1939 = vst.msk [vmem:[%s3243_s11 + $0x18] sm:$0xff] %vm657_vm2, %v1907_v52  ;;  %v1112_v20 = vmul.f32 1.0614054, %v3330_v56  ;;  %v1114_v3 = vmul.f32 1.0614054, %v2939_v24  ;;  %v2354_v45 = vpop.eup %2353  ;;  %v1621_v29 = vadd.f32 1.0, %v1589_v10 }
 0x170   : > { %v1364_v6 = vmul.f32 %v3209_v49, %v1332_v58  ;;  %v1762_v18 = vpop.f32.mrf.mxu2  ;;  %v1175_v12 = vmul.f32 %v3313_v42, %v1143_v34  ;;  %v1145_v59 = vadd.f32 -1.4531521, %v1113_v41  ;;  %v3341_v40 = vpop.eup %2355  ;;  %v1523_v5 = vmul.f32 %v3203_v57, %v1363_v36 }
 0x171   : > { %v1526_v11 = vmul.f32 %v2354_v45, %v1366_v15  ;;  %v1840_v48 = vmul.f32 %v3201_v54, %v1762_v18  ;;  %v1144_v27 = vadd.f32 -1.4531521, %v1112_v20  ;;  %v1146_v14 = vadd.f32 -1.4531521, %v1114_v3 }
 0x172   : > { %v1524_v19 = vmul.f32 %v3253_v25, %v1364_v6  ;;  %v1207_v22 = vadd.f32 1.4214138, %v1175_v12  ;;  %v1177_v44 = vmul.f32 %v2929_v26, %v1145_v59  ;;  %v1555_v49 = vsub.f32 1.0, %v1523_v5  ;;  %v2373_v59 = vld [vmem:[%s2488_s23 + $0x28] sm:$0xff] }
 0x173   : > { %v1558_v1 = vsub.f32 1.0, %v1526_v11  ;;  %v1872_v62 = vadd.f32 %v2372_v53, %v1840_v48  ;;  %v1176_v2 = vmul.f32 %v3330_v56, %v1144_v27  ;;  %v1178_v10 = vmul.f32 %v2939_v24, %v1146_v14 }
 0x174   : > { %1796 = vmatmul.bf16.gmra.mxu2 %v1672_v32  ;;  %v1556_v30 = vsub.f32 1.0, %v1524_v19  ;;  %v1239_v57 = vmul.f32 %v3313_v42, %v1207_v22  ;;  %v1209_v51 = vadd.f32 1.4214138, %v1177_v44  ;;  %v1587_v25 = vmul.f32 %v1555_v49, %v3248_v61 }
 0x175   : > { %v1590_v35 = vmul.f32 %v1558_v1, %v950_v4  ;;  %v1908_v28 = vadd.f32 %v3232_v7, %v1872_v62  ;;  %v1208_v16 = vadd.f32 1.4214138, %v1176_v2  ;;  %v1210_v58 = vadd.f32 1.4214138, %v1178_v10 }
 0x176   : > { %v1588_v52 = vmul.f32 %v1556_v30, %v3266_v47  ;;  %v1271_v21 = vadd.f32 -0.28449672, %v1239_v57  ;;  %v1241_v34 = vmul.f32 %v2929_v26, %v1209_v51  ;;  %v1653_v32 = vmul.f32 %v1621_v29, %v3195_v63 }
 0x177   : > { %v1622_v41 = vadd.f32 1.0, %v1590_v35  ;;  %2357 = vpow2.f32 %v1489_v38  ;;  %1940 = vst.msk [vmem:[%s3243_s11 + $0x20] sm:$0xff] %vm657_vm2, %v1908_v28  ;;  %v1240_v4 = vmul.f32 %v3330_v56, %v1208_v16  ;;  %v1242_v20 = vmul.f32 %v2939_v24, %v1210_v58 }
 0x178   : > { %v1620_v15 = vadd.f32 1.0, %v1588_v52  ;;  %v1764_v61 = vpop.f32.mrf.mxu2  ;;  %v1303_v36 = vmul.f32 %v3313_v42, %v1271_v21  ;;  %v1273_v47 = vadd.f32 -0.28449672, %v1241_v34  ;;  %v1115_v63 = vmul.f32 1.0614054, %v3013_v37 }
 0x179   : > { %v1654_v3 = vmul.f32 %v1622_v41, %v3290_v31  ;;  %v1841_v45 = vmul.f32 %v3201_v54, %v1764_v61  ;;  %v1272_v6 = vadd.f32 -0.28449672, %v1240_v4  ;;  %v1619_v38 = vadd.f32 1.0, %v1587_v25  ;;  %v2374_v41 = vld [vmem:[%s2488_s23 + $0x30] sm:$0xff] }
 0x17a   : > { %v1335_v29 = vadd.f32 0.2548296, %v1303_v36  ;;  %v1274_v18 = vadd.f32 -0.28449672, %v1242_v20  ;;  %v1305_v12 = vmul.f32 %v2929_v26, %v1273_v47  ;;  %vm919_vm12 = vcmp.ge.f32.partialorder %v3270_v39, 0.0 }
 0x17b   : > { %v1873_v11 = vadd.f32 %v2373_v59, %v1841_v45  ;;  %v1674_v5 = vpack.c.bf16 %v1654_v3, %v1653_v32  ;;  %v1304_v48 = vmul.f32 %v3330_v56, %v1272_v6  ;;  %v1652_v27 = vmul.f32 %v1620_v15, %v3164_v9 }
 0x17c   : > { %v1367_v31 = vmul.f32 %v3313_v42, %v1335_v29  ;;  %v1306_v19 = vmul.f32 %v2939_v24, %v1274_v18  ;;  %v1337_v22 = vadd.f32 0.2548296, %v1305_v12  ;;  %v1116_v49 = vmul.f32 1.0614054, %v3055_v33  ;;  %v3613_v29 = vld [vmem:[#allocation10_spill] sm:$0xff] }
 0x17d   : > { %v2358_v14 = vpop.eup %2357  ;;  %v1909_v44 = vadd.f32 %v3232_v7, %v1873_v11  ;;  %1806 = vmatmul.bf16.vlgmr.msra.gmra.mxu3 %v1674_v5  ;;  %v1336_v1 = vadd.f32 0.2548296, %v1304_v48  ;;  %v1147_v53 = vadd.f32 -1.4531521, %v1115_v63  ;;  %v1404_v9 = vsub.f32 0.0, %v2963_v8  ;;  %v3612_v63 = vld [vmem:[#allocation8_spill] sm:$0xff] }
 0x17e   : > { %v1651_v42 = vmul.f32 %v1619_v38, %v3150_v50  ;;  %v1527_v62 = vmul.f32 %v3341_v40, %v1367_v31  ;;  %v1338_v2 = vadd.f32 0.2548296, %v1306_v19  ;;  %vm920_vm15 = vcmp.ge.f32.partialorder %v3297_v60, 0.0  ;;  %v3614_v60 = vld [vmem:[#allocation14_spill] sm:$0xff] }
 0x17f   : > { %1941 = vst.msk [vmem:[%s3243_s11 + $0x28] sm:$0xff] %vm657_vm2, %v1909_v44  ;;  %v1368_v30 = vmul.f32 %v3330_v56, %v1336_v1  ;;  %v1148_v57 = vadd.f32 -1.4531521, %v1116_v49  ;;  %v1179_v10 = vmul.f32 %v3013_v37, %v1147_v53  ;;  %v951_v25 = vsel %vm919_vm12, 1.0, %v3611_v43 }
 0x180   : > { %v1673_v51 = vpack.c.bf16 %v1652_v27, %v1651_v42  ;;  %v1767_v35 = vpop.f32.mrf.mxu2  ;;  %v1559_v50 = vsub.f32 1.0, %v1527_v62  ;;  %v1369_v40 = vmul.f32 %v2929_v26, %v1337_v22  ;;  %v1370_v58 = vmul.f32 %v2939_v24, %v1338_v2 }
 0x181   : > { %v1842_v28 = vmul.f32 %v3201_v54, %v1767_v35  ;;  %v1528_v16 = vmul.f32 %v2358_v14, %v1368_v30  ;;  %v1180_v52 = vmul.f32 %v3055_v33, %v1148_v57  ;;  %v1211_v21 = vadd.f32 1.4214138, %v1179_v10 }
 0x182   : > { %v1591_v56 = vmul.f32 %v1559_v50, %v951_v25  ;;  %v1117_v34 = vmul.f32 1.0614054, %v3095_v0  ;;  %v1118_v32 = vmul.f32 1.0614054, %v3118_v55  ;;  %v1436_v61 = vmul.f32 %v1404_v9, %v2963_v8  ;;  %v2375_v9 = vld [vmem:[%s2488_s23 + $0x38] sm:$0xff]  ;;  %v3615_v50 = vld [vmem:[#allocation2_spill] sm:$0xff] }
 0x183   : > { %v1874_v4 = vadd.f32 %v2374_v41, %v1842_v28  ;;  %v1560_v39 = vsub.f32 1.0, %v1528_v16  ;;  %v1212_v15 = vadd.f32 1.4214138, %v1180_v52  ;;  %v1243_v26 = vmul.f32 %v3013_v37, %v1211_v21  ;;  %v3616_v28 = vld [vmem:[#allocation13_spill] sm:$0xff]  ;;  %v3617_v21 = vld [vmem:[#allocation3_spill] sm:$0xff] }
 0x184   : > { %v855_v36 = vmul.f32 0.5, %v3258_v13  ;;  %v856_v20 = vmul.f32 0.5, %v3285_v46  ;;  %1801 = vmatmul.bf16.gmra.mxu2 %v1673_v51  ;;  %v952_v24 = vsel %vm920_vm15, 1.0, %v3611_v43  ;;  %v1623_v45 = vadd.f32 1.0, %v1591_v56 }
 0x185   : > { %v1910_v47 = vadd.f32 %v3232_v7, %v1874_v4  ;;  %v1592_v3 = vmul.f32 %v1560_v39, %v952_v24  ;;  %v1244_v6 = vmul.f32 %v3055_v33, %v1212_v15  ;;  %v1529_v38 = vmul.f32 %v3612_v63, %v1369_v40 }
 0x186   : > { %v1530_v18 = vmul.f32 %v3613_v29, %v1370_v58  ;;  %v1275_v8 = vadd.f32 -0.28449672, %v1243_v26  ;;  %v1149_v12 = vadd.f32 -1.4531521, %v1117_v34  ;;  %v1150_v59 = vadd.f32 -1.4531521, %v1118_v32 }
 0x187   : > { %1942 = vst.msk [vmem:[%s3243_s11 + $0x30] sm:$0xff] %vm657_vm2, %v1910_v47  ;;  %v1624_v13 = vadd.f32 1.0, %v1592_v3  ;;  %v1276_v46 = vadd.f32 -0.28449672, %v1244_v6  ;;  %v1495_v11 = vmul.f32 1.442695, %v3614_v60  ;;  %v1655_v19 = vmul.f32 %v1623_v45, %v855_v36 }
 0x188   : > { %v1497_v5 = vmul.f32 1.442695, %v1436_v61  ;;  %v1769_v48 = vpop.f32.mrf.mxu2  ;;  %v953_v27 = vsel %vm921_vm13, 1.0, %v3611_v43  ;;  %v954_v14 = vsel %vm922_vm14, 1.0, %v3611_v43  ;;  %v1561_v44 = vsub.f32 1.0, %v1529_v38  ;;  %v3618_v58 = vld [vmem:[#allocation16_spill] sm:$0xff] }
 0x189   : > { %v1843_v31 = vmul.f32 %v3201_v54, %v1769_v48  ;;  %v1656_v22 = vmul.f32 %v1624_v13, %v856_v20  ;;  %v1562_v1 = vsub.f32 1.0, %v1530_v18  ;;  %v1307_v49 = vmul.f32 %v3013_v37, %v1275_v8  ;;  %v2376_v3 = vld [vmem:[%s2488_s23 + $0x40] sm:$0xff]  ;;  %v3619_v8 = vld [vmem:[#allocation5_spill] sm:$0xff] }
 0x18a   : > { %v1181_v53 = vmul.f32 %v3095_v0, %v1149_v12  ;;  %v1308_v17 = vmul.f32 %v3055_v33, %v1276_v46  ;;  %v1182_v2 = vmul.f32 %v3118_v55, %v1150_v59  ;;  %2359 = vpow2.f32 %v1495_v11  ;;  %v3620_v12 = vld [vmem:[#allocation7_spill] sm:$0xff] }
 0x18b   : > { %v1875_v42 = vadd.f32 %v2375_v9, %v1843_v31  ;;  %v1675_v62 = vpack.c.bf16 %v1656_v22, %v1655_v19  ;;  %2361 = vpow2.f32 %v1497_v5  ;;  %v1593_v23 = vmul.f32 %v1561_v44, %v953_v27 }
 0x18c   : > { %v1594_v57 = vmul.f32 %v1562_v1, %v954_v14  ;;  %v1339_v10 = vadd.f32 0.2548296, %v1307_v49  ;;  %v1213_v51 = vadd.f32 1.4214138, %v1181_v53  ;;  %v1340_v35 = vadd.f32 0.2548296, %v1308_v17 }
 0x18d   : > { %v1911_v30 = vadd.f32 %v3232_v7, %v1875_v42  ;;  %1811 = vmatmul.bf16.gmra.mxu3 %v1675_v62  ;;  %v1214_v25 = vadd.f32 1.4214138, %v1182_v2  ;;  %v857_v40 = vmul.f32 0.5, %v3615_v50  ;;  %v1405_v16 = vsub.f32 0.0, %v3616_v28  ;;  %v2377_v14 = vld [vmem:[%s2488_s23 + $0x48] sm:$0xff]  ;;  %v3621_v62 = vld [vmem:[#allocation4_spill] sm:$0xff] }
 0x18e   : > { %v858_v56 = vmul.f32 0.5, %v3617_v21  ;;  %v1406_v34 = vsub.f32 0.0, %v3618_v58  ;;  %v1625_v32 = vadd.f32 1.0, %v1593_v23  ;;  %v1626_v41 = vadd.f32 1.0, %v1594_v57  ;;  %v3622_v2 = vld [vmem:[#allocation6_spill] sm:$0xff]  ;;  %v3624_v21 = vld [vmem:[#allocation15_spill] sm:$0xff] }
 0x18f   : > { %1943 = vst.msk [vmem:[%s3243_s11 + $0x38] sm:$0xff] %vm657_vm2, %v1911_v30  ;;  %v1371_v15 = vmul.f32 %v3013_v37, %v1339_v10  ;;  %v1372_v26 = vmul.f32 %v3055_v33, %v1340_v35  ;;  %v1245_v61 = vmul.f32 %v3095_v0, %v1213_v51  ;;  %v1246_v36 = vmul.f32 %v3118_v55, %v1214_v25 }
 0x190   : > { %v2360_v52 = vpop.eup %2359  ;;  %v1772_v39 = vpop.f32.mrf.mxu2  ;;  %v1437_v24 = vmul.f32 %v1405_v16, %v3616_v28  ;;  %v1438_v47 = vmul.f32 %v1406_v34, %v3618_v58  ;;  %v1657_v6 = vmul.f32 %v1625_v32, %v857_v40  ;;  %v1658_v63 = vmul.f32 %v1626_v41, %v858_v56 }
 0x191   : > { %v2362_v4 = vpop.eup %2361  ;;  %v1844_v20 = vmul.f32 %v3201_v54, %v1772_v39  ;;  %v1531_v38 = vmul.f32 %v2360_v52, %v1371_v15  ;;  %v1277_v37 = vadd.f32 -0.28449672, %v1245_v61  ;;  %v1278_v18 = vadd.f32 -0.28449672, %v1246_v36  ;;  %v3623_v52 = vld [vmem:[#allocation11_spill] sm:$0xff]  ;;  %v3625_v36 = vld [vmem:[#allocation9_spill] sm:$0xff] }
 0x192   : > { %v1532_v29 = vmul.f32 %v2362_v4, %v1372_v26  ;;  %vm923_vm0 = vcmp.ge.f32.partialorder %v3619_v8, 0.0  ;;  %vm924_vm1 = vcmp.ge.f32.partialorder %v3620_v12, 0.0  ;;  %v1499_v13 = vmul.f32 1.442695, %v1437_v24  ;;  %v2378_v4 = vld [vmem:[%s2488_s23 + $0x50] sm:$0xff] }
 0x193   : > { %v1876_v45 = vadd.f32 %v2376_v3, %v1844_v20  ;;  %v1501_v46 = vmul.f32 1.442695, %v1438_v47  ;;  %v1676_v59 = vpack.c.bf16 %v1658_v63, %v1657_v6  ;;  %v1563_v11 = vsub.f32 1.0, %v1531_v38  ;;  %v3626_v24 = vld [vmem:[#allocation12_spill] sm:$0xff]  ;;  %v2379_v63 = vld [vmem:[%s2488_s23 + $0x58] sm:$0xff] }
 0x194   : > { %v1564_v5 = vsub.f32 1.0, %v1532_v29  ;;  %v1309_v48 = vmul.f32 %v3095_v0, %v1277_v37  ;;  %v1310_v27 = vmul.f32 %v3118_v55, %v1278_v18  ;;  %v955_v19 = vsel %vm923_vm0, 1.0, %v3611_v43 }
 0x195   : > { %v1912_v33 = vadd.f32 %v3232_v7, %v1876_v45  ;;  %v956_v22 = vsel %vm924_vm1, 1.0, %v3611_v43  ;;  %2363 = vpow2.f32 %v1499_v13  ;;  %v1595_v1 = vmul.f32 %v1563_v11, %v955_v19  ;;  %v2380_v13 = vld [vmem:[%s2488_s23 + $0x60] sm:$0xff] }
 0x196   : > { %2365 = vpow2.f32 %v1501_v46  ;;  %v1596_v49 = vmul.f32 %v1564_v5, %v956_v22  ;;  %v1341_v53 = vadd.f32 0.2548296, %v1309_v48  ;;  %v1342_v9 = vadd.f32 0.2548296, %v1310_v27  ;;  %v2381_v5 = vld [vmem:[%s2488_s23 + $0x68] sm:$0xff]  ;;  %v2382_v22 = vld [vmem:[%s2488_s23 + $0x70] sm:$0xff] }
 0x197   : > { %1944 = vst.msk [vmem:[%s3243_s11 + $0x40] sm:$0xff] %vm657_vm2, %v1912_v33  ;;  %v859_v17 = vmul.f32 0.5, %v3621_v62  ;;  %v860_v30 = vmul.f32 0.5, %v3622_v2  ;;  %v1627_v57 = vadd.f32 1.0, %v1595_v1  ;;  %vm925_vm3 = vcmp.ge.f32.partialorder %v3623_v52, 0.0  ;;  %v2384_v2 = vld [vmem:[%s2488_s23 + $0x80] sm:$0xff] }
 0x198   : > { %v1774_v60 = vpop.f32.mrf.mxu2  ;;  %v1628_v10 = vadd.f32 1.0, %v1596_v49  ;;  %v1373_v51 = vmul.f32 %v3095_v0, %v1341_v53  ;;  %v1374_v35 = vmul.f32 %v3118_v55, %v1342_v9  ;;  %vm926_vm4 = vcmp.ge.f32.partialorder %v3624_v21, 0.0  ;;  %v2383_v53 = vld [vmem:[%s2488_s23 + $0x78] sm:$0xff] }
 0x199   : > { %v1845_v31 = vmul.f32 %v3201_v54, %v1774_v60  ;;  %v1659_v50 = vmul.f32 %v1627_v57, %v859_v17  ;;  %v957_v0 = vsel %vm925_vm3, 1.0, %v3611_v43  ;;  %v958_v55 = vsel %vm926_vm4, 1.0, %v3611_v43 }
 0x19a   : > { %v1660_v40 = vmul.f32 %v1628_v10, %v860_v30  ;;  %v861_v20 = vmul.f32 0.5, %v3625_v36  ;;  %v862_v47 = vmul.f32 0.5, %v3626_v24 }
 0x19b   : > { %v1877_v44 = vadd.f32 %v2377_v14, %v1845_v31  ;;  %v2364_v23 = vpop.eup %2363 }
 0x19c   : > { %v2366_v25 = vpop.eup %2365  ;;  %v1533_v28 = vmul.f32 %v2364_v23, %v1373_v51  ;;  %v1677_v58 = vpack.c.bf16 %v1660_v40, %v1659_v50  ;;  %v2385_v51 = vld [vmem:[%s2488_s23 + $0x88] sm:$0xff] }
 0x19d   : > { %1816 = vmatmul.bf16.gmra.mxu3 %v1676_v59  ;;  %v1913_v42 = vadd.f32 %v3232_v7, %v1877_v44  ;;  %v1534_v16 = vmul.f32 %v2366_v25, %v1374_v35 }
 0x19e   : > { %v1565_v34 = vsub.f32 1.0, %v1533_v28  ;;  %v2386_v28 = vld [vmem:[%s2488_s23 + $0x90] sm:$0xff] }
 0x19f   : > { %1945 = vst.msk [vmem:[%s3243_s11 + $0x48] sm:$0xff] %vm657_vm2, %v1913_v42  ;;  %v1566_v32 = vsub.f32 1.0, %v1534_v16 }
 0x1a0   : > { %v1597_v15 = vmul.f32 %v1565_v34, %v957_v0  ;;  %v2388_v0 = vld [vmem:[%s2488_s23 + $0xb0] sm:$0xff] }
 0x1a1   : > { %v1598_v26 = vmul.f32 %v1566_v32, %v958_v55  ;;  %v2387_v32 = vld [vmem:[%s2488_s23 + $0x98] sm:$0xff] }
 0x1a2   : > { %v1629_v45 = vadd.f32 1.0, %v1597_v15 }
 0x1a3   : > { %v1630_v6 = vadd.f32 1.0, %v1598_v26 }
 0x1a4   : > { %v1661_v29 = vmul.f32 %v1629_v45, %v861_v20  ;;  %v2389_v20 = vld [vmem:[%s2488_s23 + $0xa0] sm:$0xff] }
 0x1a5   : > { %v1662_v37 = vmul.f32 %v1630_v6, %v862_v47  ;;  %v2390_v47 = vld [vmem:[%s2488_s23 + $0xb8] sm:$0xff] }
 0x1a7   : > { %v1678_v33 = vpack.c.bf16 %v1662_v37, %v1661_v29  ;;  %v2391_v37 = vld [vmem:[%s2488_s23 + $0xa8] sm:$0xff] }
 0x1a9   : > { %v1777_v56 = vpop.f32.mrf.mxu2 }
 0x1aa   : > { %v1846_v41 = vmul.f32 %v3201_v54, %v1777_v56 }
 0x1ac   : > { %v1878_v39 = vadd.f32 %v2378_v4, %v1846_v41 }
 0x1ad   : > { %1821 = vmatmul.bf16.gmra.mxu3 %v1677_v58 }
 0x1ae   : > { %v1914_v61 = vadd.f32 %v3232_v7, %v1878_v39 }
 0x1b0   : > { %1946 = vst.msk [vmem:[%s3243_s11 + $0x50] sm:$0xff] %vm657_vm2, %v1914_v61 }
 0x1b1   : > { %v1779_v3 = vpop.f32.mrf.mxu2 }
 0x1b2   : > { %v1847_v43 = vmul.f32 %v3201_v54, %v1779_v3 }
 0x1b4   : > { %v1879_v38 = vadd.f32 %v2379_v63, %v1847_v43 }
 0x1b6   : > { %v1915_v18 = vadd.f32 %v3232_v7, %v1879_v38 }
 0x1b8   : > { %1947 = vst.msk [vmem:[%s3243_s11 + $0x58] sm:$0xff] %vm657_vm2, %v1915_v18 }
 0x1bd   : > { %1826 = vmatmul.bf16.gmra.mxu3 %v1678_v33  ;;  %v2392_v33 = vld [vmem:[%s2488_s23 + $0xc0] sm:$0xff] }
 0x1c7   : > { %v1782_v8 = vpop.f32.mrf.mxu2 }
 0x1c8   : > { %v1848_v12 = vmul.f32 %v3201_v54, %v1782_v8 }
 0x1ca   : > { %v1880_v46 = vadd.f32 %v2380_v13, %v1848_v12 }
 0x1cc   : > { %v1916_v59 = vadd.f32 %v3232_v7, %v1880_v46 }
 0x1ce   : > { %1948 = vst.msk [vmem:[%s3243_s11 + $0x60] sm:$0xff] %vm657_vm2, %v1916_v59 }
 0x1cf   : > { %v1784_v60 = vpop.f32.mrf.mxu2 }
 0x1d0   : > { %v1849_v11 = vmul.f32 %v3201_v54, %v1784_v60  ;;  %v2393_v60 = vld [vmem:[%s2488_s23 + $0xc8] sm:$0xff] }
 0x1d2   : > { %v1881_v48 = vadd.f32 %v2381_v5, %v1849_v11 }
 0x1d4   : > { %v1917_v27 = vadd.f32 %v3232_v7, %v1881_v48 }
 0x1d6   : > { %1949 = vst.msk [vmem:[%s3243_s11 + $0x68] sm:$0xff] %vm657_vm2, %v1917_v27 }
 0x1d7   : > { %v1787_v31 = vpop.f32.mrf.mxu2 }
 0x1d8   : > { %v1850_v19 = vmul.f32 %v3201_v54, %v1787_v31  ;;  %v2394_v31 = vld [vmem:[%s2488_s23 + $0xd0] sm:$0xff] }
 0x1da   : > { %v1882_v14 = vadd.f32 %v2382_v22, %v1850_v19 }
 0x1dc   : > { %v1918_v44 = vadd.f32 %v3232_v7, %v1882_v14 }
 0x1de   : > { %1950 = vst.msk [vmem:[%s3243_s11 + $0x70] sm:$0xff] %vm657_vm2, %v1918_v44 }
 0x1df   : > { %v1789_v1 = vpop.f32.mrf.mxu2 }
 0x1e0   : > { %v1851_v49 = vmul.f32 %v3201_v54, %v1789_v1  ;;  %v2395_v1 = vld [vmem:[%s2488_s23 + $0xd8] sm:$0xff] }
 0x1e2   : > { %v1883_v9 = vadd.f32 %v2383_v53, %v1851_v49 }
 0x1e4   : > { %v1919_v42 = vadd.f32 %v3232_v7, %v1883_v9 }
 0x1e6   : > { %1951 = vst.msk [vmem:[%s3243_s11 + $0x78] sm:$0xff] %vm657_vm2, %v1919_v42 }
 0x1e7   : > { %v1792_v62 = vpop.f32.mrf.mxu2 }
 0x1e8   : > { %v1852_v17 = vmul.f32 %v3201_v54, %v1792_v62  ;;  %v2396_v62 = vld [vmem:[%s2488_s23 + $0xe0] sm:$0xff] }
 0x1ea   : > { %v1884_v30 = vadd.f32 %v2384_v2, %v1852_v17 }
 0x1ec   : > { %v1920_v23 = vadd.f32 %v3232_v7, %v1884_v30 }
 0x1ee   : > { %1952 = vst.msk [vmem:[%s3243_s11 + $0x80] sm:$0xff] %vm657_vm2, %v1920_v23 }
 0x1ef   : > { %v1794_v57 = vpop.f32.mrf.mxu2 }
 0x1f0   : > { %v1853_v10 = vmul.f32 %v3201_v54, %v1794_v57  ;;  %v2397_v57 = vld [vmem:[%s2488_s23 + $0xe8] sm:$0xff] }
 0x1f2   : > { %v1885_v35 = vadd.f32 %v2385_v51, %v1853_v10 }
 0x1f4   : > { %v1921_v25 = vadd.f32 %v3232_v7, %v1885_v35 }
 0x1f6   : > { %1953 = vst.msk [vmem:[%s3243_s11 + $0x88] sm:$0xff] %vm657_vm2, %v1921_v25 }
 0x1f7   : > { %v1797_v50 = vpop.f32.mrf.mxu2 }
 0x1f8   : > { %v1854_v40 = vmul.f32 %v3201_v54, %v1797_v50  ;;  %v2398_v50 = vld [vmem:[%s2488_s23 + $0xf0] sm:$0xff] }
 0x1fa   : > { %v1886_v16 = vadd.f32 %v2386_v28, %v1854_v40 }
 0x1fc   : > { %v1922_v52 = vadd.f32 %v3232_v7, %v1886_v16 }
 0x1fe   : > { %1954 = vst.msk [vmem:[%s3243_s11 + $0x90] sm:$0xff] %vm657_vm2, %v1922_v52 }
 0x1ff   : > { %v1799_v21 = vpop.f32.mrf.mxu2 }
 0x200   : > { %v1855_v56 = vmul.f32 %v3201_v54, %v1799_v21  ;;  %v1807_v58 = vpop.f32.mrf.mxu3  ;;  %v2399_v21 = vld [vmem:[%s2488_s23 + $0xf8] sm:$0xff] }
 0x201   : > { %v1858_v34 = vmul.f32 %v3201_v54, %v1807_v58 }
 0x202   : > { %v1887_v41 = vadd.f32 %v2387_v32, %v1855_v56 }
 0x203   : > { %v1890_v55 = vadd.f32 %v2388_v0, %v1858_v34 }
 0x204   : > { %v1923_v4 = vadd.f32 %v3232_v7, %v1887_v41 }
 0x205   : > { %v1926_v39 = vadd.f32 %v3232_v7, %v1890_v55 }
 0x206   : > { %1955 = vst.msk [vmem:[%s3243_s11 + $0x98] sm:$0xff] %vm657_vm2, %v1923_v4 }
 0x207   : > { %v1802_v15 = vpop.f32.mrf.mxu2  ;;  %1958 = vst.msk [vmem:[%s3243_s11 + $0xb0] sm:$0xff] %vm657_vm2, %v1926_v39 }
 0x208   : > { %v1856_v26 = vmul.f32 %v3201_v54, %v1802_v15  ;;  %v1809_v61 = vpop.f32.mrf.mxu3 }
 0x209   : > { %v1859_v36 = vmul.f32 %v3201_v54, %v1809_v61 }
 0x20a   : > { %v1888_v24 = vadd.f32 %v2389_v20, %v1856_v26 }
 0x20b   : > { %v1891_v3 = vadd.f32 %v2390_v47, %v1859_v36 }
 0x20c   : > { %v1924_v45 = vadd.f32 %v3232_v7, %v1888_v24 }
 0x20d   : > { %v1927_v6 = vadd.f32 %v3232_v7, %v1891_v3 }
 0x20e   : > { %1956 = vst.msk [vmem:[%s3243_s11 + $0xa0] sm:$0xff] %vm657_vm2, %v1924_v45 }
 0x20f   : > { %v1804_v43 = vpop.f32.mrf.mxu2  ;;  %1959 = vst.msk [vmem:[%s3243_s11 + $0xb8] sm:$0xff] %vm657_vm2, %v1927_v6 }
 0x210   : > { %v1857_v63 = vmul.f32 %v3201_v54, %v1804_v43  ;;  %v1812_v38 = vpop.f32.mrf.mxu3 }
 0x211   : > { %v1860_v29 = vmul.f32 %v3201_v54, %v1812_v38 }
 0x212   : > { %v1889_v18 = vadd.f32 %v2391_v37, %v1857_v63 }
 0x213   : > { %v1892_v8 = vadd.f32 %v2392_v33, %v1860_v29 }
 0x214   : > { %v1925_v12 = vadd.f32 %v3232_v7, %v1889_v18 }
 0x215   : > { %v1928_v13 = vadd.f32 %v3232_v7, %v1892_v8 }
 0x216   : > { %1957 = vst.msk [vmem:[%s3243_s11 + $0xa8] sm:$0xff] %vm657_vm2, %v1925_v12 }
 0x217   : > { %1960 = vst.msk [vmem:[%s3243_s11 + $0xc0] sm:$0xff] %vm657_vm2, %v1928_v13 }
 0x218   : > { %v1814_v46 = vpop.f32.mrf.mxu3 }
 0x219   : > { %v1861_v59 = vmul.f32 %v3201_v54, %v1814_v46 }
 0x21b   : > { %v1893_v11 = vadd.f32 %v2393_v60, %v1861_v59 }
 0x21d   : > { %v1929_v5 = vadd.f32 %v3232_v7, %v1893_v11 }
 0x21f   : > { %1961 = vst.msk [vmem:[%s3243_s11 + $0xc8] sm:$0xff] %vm657_vm2, %v1929_v5 }
 0x220   : > { %v1817_v48 = vpop.f32.mrf.mxu3 }
 0x221   : > { %v1862_v27 = vmul.f32 %v3201_v54, %v1817_v48 }
 0x223   : > { %v1894_v19 = vadd.f32 %v2394_v31, %v1862_v27 }
 0x225   : > { %v1930_v22 = vadd.f32 %v3232_v7, %v1894_v19 }
 0x227   : > { %1962 = vst.msk [vmem:[%s3243_s11 + $0xd0] sm:$0xff] %vm657_vm2, %v1930_v22 }
 0x228   : > { %v1819_v14 = vpop.f32.mrf.mxu3 }
 0x229   : > { %v1863_v44 = vmul.f32 %v3201_v54, %v1819_v14 }
 0x22b   : > { %v1895_v49 = vadd.f32 %v2395_v1, %v1863_v44 }
 0x22d   : > { %v1931_v53 = vadd.f32 %v3232_v7, %v1895_v49 }
 0x22f   : > { %1963 = vst.msk [vmem:[%s3243_s11 + $0xd8] sm:$0xff] %vm657_vm2, %v1931_v53 }
 0x230   : > { %v1822_v9 = vpop.f32.mrf.mxu3 }
 0x231   : > { %v1864_v42 = vmul.f32 %v3201_v54, %v1822_v9 }
 0x233   : > { %v1896_v17 = vadd.f32 %v2396_v62, %v1864_v42 }
 0x235   : > { %v1932_v2 = vadd.f32 %v3232_v7, %v1896_v17 }
 0x237   : > { %1964 = vst.msk [vmem:[%s3243_s11 + $0xe0] sm:$0xff] %vm657_vm2, %v1932_v2 }
 0x238   : > { %v1824_v30 = vpop.f32.mrf.mxu3 }
 0x239   : > { %v1865_v23 = vmul.f32 %v3201_v54, %v1824_v30 }
 0x23b   : > { %v1897_v10 = vadd.f32 %v2397_v57, %v1865_v23 }
 0x23d   : > { %v1933_v51 = vadd.f32 %v3232_v7, %v1897_v10 }
 0x23f   : > { %1965 = vst.msk [vmem:[%s3243_s11 + $0xe8] sm:$0xff] %vm657_vm2, %v1933_v51 }
 0x240   : > { %v1827_v35 = vpop.f32.mrf.mxu3 }
 0x241   : > { %v1866_v25 = vmul.f32 %v3201_v54, %v1827_v35 }
 0x243   : > { %v1898_v40 = vadd.f32 %v2398_v50, %v1866_v25 }
 0x245   : > { %v1934_v28 = vadd.f32 %v3232_v7, %v1898_v40 }
 0x247   : > { %1966 = vst.msk [vmem:[%s3243_s11 + $0xf0] sm:$0xff] %vm657_vm2, %v1934_v28 }
 0x248   : > { %v1829_v16 = vpop.f32.mrf.mxu3 }
 0x249   : > { %v1867_v52 = vmul.f32 %v3201_v54, %v1829_v16 }
 0x24b   : > { %v1899_v56 = vadd.f32 %v2399_v21, %v1867_v52 }
 0x24d   : > { %v1935_v58 = vadd.f32 %v3232_v7, %v1899_v56 }
 0x24f   : > { %1967 = vst.msk [vmem:[%s3243_s11 + $0xf8] sm:$0xff] %vm657_vm2, %v1935_v58 }
 0x250 PF: > { %s18_s27 = sadd.s32 1, %s2406_s27  }
 0x251   : > { %p15_p4 = scmp.ge.s32.totalorder %s18_s27, 4  }
 0x253   :  { %17 = sbr.rel (!%p15_p4) target bundleno = 1 (0x1), region = 85 }

</bundles_post_ra>
